<compile_context>
chip_gen: v7x
topology: tpu7x:2x2x1
jax: 0.10.0
libtpu: 0.0.40
codegen_flags: <defaults>
</compile_context>

<pallas_src>
import numpy as np
import jax
import jax.numpy as jnp
from jax.experimental import pallas as pl
from jax.experimental.pallas import tpu as pltpu

INPUT_DIM = 12
HIDDEN = 64
OUTPUT_DIM = 1
NITERS = 4
BN_EPS = 1e-5
LANES = 128


def _vmem(n):
    return [pl.BlockSpec(memory_space=pltpu.MemorySpace.VMEM) for _ in range(n)]


def _round_up(n, m):
    return ((n + m - 1) // m) * m


# --------------------------------------------------------------------------
# Fused kernel: input net -> NITERS x EdgeConv -> edge net
# --------------------------------------------------------------------------

def graphnet_kernel(x_ref, gsrc_p_ref, gdst_p_ref, gsrc0_ref, gdst0_ref,
                    w1_ref, b1_ref, bnsc_ref, bnsh_ref, w2_ref, b2_ref,
                    cw1_ref, cb1_ref, cw2_ref, cb2_ref,
                    ew1_ref, eb1_ref, ew2_ref, eb2_ref, ew3_ref, eb3_ref,
                    o_ref):
    # ---- input network: Linear(12,64) -> BN(eval, folded) -> ELU -> Linear(64,64) -> ReLU
    x = x_ref[...]
    h = jnp.dot(x, w1_ref[...], preferred_element_type=jnp.float32) + b1_ref[...]
    h = h * bnsc_ref[...] + bnsh_ref[...]
    h = jnp.where(h > 0.0, h, jnp.exp(h) - 1.0)                  # ELU(alpha=1)
    h = jnp.maximum(
        jnp.dot(h, w2_ref[...], preferred_element_type=jnp.float32) + b2_ref[...],
        0.0)

    # ---- EdgeConv(aggr='add') x NITERS  (Dropout = identity in eval mode)
    gsrc_p = gsrc_p_ref[...].astype(jnp.float32)   # bf16 in HBM (exact 0/1)
    gdst_p = gdst_p_ref[...].astype(jnp.float32)
    cw1 = cw1_ref[...]
    cw2 = cw2_ref[...]
    ep = gsrc_p.shape[0]
    # hoisted bias broadcasts (not re-emitted per unrolled iteration)
    cb1_b = jnp.broadcast_to(cb1_ref[...], (ep, cw1.shape[1]))
    cb2_b = jnp.broadcast_to(cb2_ref[...], (ep, cw2.shape[1]))

    for _ in range(NITERS):                          # static unroll (4 iters)
        x_j = jnp.dot(gsrc_p, h, preferred_element_type=jnp.float32)   # gather src
        x_i = jnp.dot(gdst_p, h, preferred_element_type=jnp.float32)   # gather dst
        cat = jnp.concatenate([x_i, x_j - x_i], axis=-1)                # K = 128
        m = jnp.maximum(
            jnp.dot(cat, cw1, preferred_element_type=jnp.float32) + cb1_b, 0.0)
        m = jnp.maximum(
            jnp.dot(m, cw2, preferred_element_type=jnp.float32) + cb2_b, 0.0)
        # scatter-add messages to their target node: gdst_p.T @ m via a
        # transposed contraction (no separately materialized scatter matrix)
        h = jax.lax.dot_general(gdst_p, m, (((0,), (0,)), ((), ())),
                                preferred_element_type=jnp.float32)

    # ---- edge network on the ORIGINAL edge_index
    gsrc0 = gsrc0_ref[...].astype(jnp.float32)
    gdst0 = gdst0_ref[...].astype(jnp.float32)
    hs = jnp.dot(gsrc0, h, preferred_element_type=jnp.float32)
    hd = jnp.dot(gdst0, h, preferred_element_type=jnp.float32)
    z = jnp.concatenate([hs, hd], axis=-1)                              # K = 128
    z = jnp.maximum(
        jnp.dot(z, ew1_ref[...], preferred_element_type=jnp.float32) + eb1_ref[...],
        0.0)
    z = jnp.maximum(
        jnp.dot(z, ew2_ref[...], preferred_element_type=jnp.float32) + eb2_ref[...],
        0.0)
    # final Linear(H,1) against a zero-padded (H,128) weight -> lane-dense store;
    # the wrapper slices column 0.
    z = jnp.dot(z, ew3_ref[...], preferred_element_type=jnp.float32) + eb3_ref[...]
    o_ref[...] = jax.nn.sigmoid(z)


# --------------------------------------------------------------------------
# Graph utilities (static graph structure -> plain numpy glue)
# --------------------------------------------------------------------------

def add_self_loops(edge_index, num_nodes):
    loops = np.arange(num_nodes, dtype=edge_index.dtype)
    return np.concatenate([edge_index, np.stack([loops, loops])], axis=1)


def to_undirected(edge_index):
    both = np.concatenate([edge_index, edge_index[::-1]], axis=1)
    return np.unique(both, axis=1)          # coalesce: sort + dedupe columns


def one_hot_padded(idx, n_cols, n_rows):
    """[n_rows, n_cols] one-hot; rows past len(idx) are all-zero (inert)."""
    oh = np.zeros((n_rows, n_cols), np.float32)
    oh[np.arange(len(idx)), np.asarray(idx)] = 1.0
    return oh


# --------------------------------------------------------------------------
# Parameter init (deterministic, mimics nn.Linear fan-in uniform init)
# --------------------------------------------------------------------------

def linear_params(key, fan_in, fan_out):
    k1, k2 = jax.random.split(key)
    bound = 1.0 / np.sqrt(fan_in)
    w = jax.random.uniform(k1, (fan_in, fan_out), jnp.float32, -bound, bound)
    b = jax.random.uniform(k2, (1, fan_out), jnp.float32, -bound, bound)
    return w, b


def make_params(key):
    keys = jax.random.split(key, 8)
    # input network
    w1, b1 = linear_params(keys[0], INPUT_DIM, HIDDEN)
    gamma = jnp.ones((1, HIDDEN), jnp.float32)
    beta = jnp.zeros((1, HIDDEN), jnp.float32)
    rmean = jnp.zeros((1, HIDDEN), jnp.float32)
    rvar = jnp.ones((1, HIDDEN), jnp.float32)
    w2, b2 = linear_params(keys[1], HIDDEN, HIDDEN)
    inp = (w1, b1, gamma, beta, rmean, rvar, w2, b2)
    # EdgeConv nn: Linear(2H,2H) -> ReLU -> Dropout -> Linear(2H,H) -> ReLU
    cw1, cb1 = linear_params(keys[2], 2 * HIDDEN, 2 * HIDDEN)
    cw2, cb2 = linear_params(keys[3], 2 * HIDDEN, HIDDEN)
    conv = (cw1, cb1, cw2, cb2)
    # edge network: Linear(2H,H)->ReLU->Linear(H,H)->ReLU->Linear(H,1)->Sigmoid
    ew1, eb1 = linear_params(keys[4], 2 * HIDDEN, HIDDEN)
    ew2, eb2 = linear_params(keys[5], HIDDEN, HIDDEN)
    ew3, eb3 = linear_params(keys[6], HIDDEN, OUTPUT_DIM)
    edge = (ew1, eb1, ew2, eb2, ew3, eb3)
    return {"input": inp, "conv": conv, "edge": edge}


# --------------------------------------------------------------------------
# Forward pass: single fused Pallas call
# --------------------------------------------------------------------------

def graphnet_forward_pallas(x, edge_index, params):
    N = x.shape[0]
    edge_index = np.asarray(edge_index)

    # prepared (self-loops + undirected) edges — identical across iterations
    prepared = to_undirected(add_self_loops(edge_index, N))
    src_p, dst_p = prepared
    src0, dst0 = edge_index
    E0 = int(src0.shape[0])

    Ep_pad = _round_up(len(src_p), 16)         # sublane-friendly (bf16 packs pairs)
    E0_pad = _round_up(E0, 16)

    # bf16 one-hots: exact for 0/1, halves HBM/DMA traffic of the largest arrays
    gsrc_p = jnp.asarray(one_hot_padded(src_p, N, Ep_pad), jnp.bfloat16)  # [Ep, N]
    gdst_p = jnp.asarray(one_hot_padded(dst_p, N, Ep_pad), jnp.bfloat16)  # [Ep, N]
    gsrc0 = jnp.asarray(one_hot_padded(src0, N, E0_pad), jnp.bfloat16)    # [E0p, N]
    gdst0 = jnp.asarray(one_hot_padded(dst0, N, E0_pad), jnp.bfloat16)    # [E0p, N]

    w1, b1, gamma, beta, rmean, rvar, w2, b2 = params["input"]
    # fold eval-mode BatchNorm into an affine scale/shift
    bn_scale = gamma * jax.lax.rsqrt(rvar + BN_EPS)
    bn_shift = beta - rmean * bn_scale

    cw1, cb1, cw2, cb2 = params["conv"]
    ew1, eb1, ew2, eb2, ew3, eb3 = params["edge"]
    # lane-dense final layer: zero-pad (H,1)->(H,128) and (1,1)->(1,128)
    ew3_p = jnp.zeros((HIDDEN, LANES), jnp.float32).at[:, :OUTPUT_DIM].set(ew3)
    eb3_p = jnp.zeros((1, LANES), jnp.float32).at[:, :OUTPUT_DIM].set(eb3)

    args = (x, gsrc_p, gdst_p, gsrc0, gdst0,
            w1, b1, bn_scale, bn_shift, w2, b2,
            cw1, cb1, cw2, cb2,
            ew1, eb1, ew2, eb2, ew3_p, eb3_p)

    out = pl.pallas_call(
        graphnet_kernel,
        out_shape=jax.ShapeDtypeStruct((E0_pad, LANES), jnp.float32),
        in_specs=_vmem(len(args)),
        out_specs=pl.BlockSpec(memory_space=pltpu.MemorySpace.VMEM),
        compiler_params=pltpu.CompilerParams(vmem_limit_bytes=32 * 1024 * 1024),
    )(*args)

    return out[:E0, 0]                          # .squeeze(-1) on the real edges


# --------------------------------------------------------------------------
# Pure-JAX reference (same eval-mode semantics) for correctness check
# --------------------------------------------------------------------------

def graphnet_forward_ref(x, edge_index, params):
    N = x.shape[0]
    edge_index = np.asarray(edge_index)
    w1, b1, gamma, beta, rmean, rvar, w2, b2 = params["input"]
    h = x @ w1 + b1
    h = (h - rmean) / jnp.sqrt(rvar + BN_EPS) * gamma + beta
    h = jnp.where(h > 0.0, h, jnp.exp(h) - 1.0)
    h = jnp.maximum(h @ w2 + b2, 0.0)

    prepared = to_undirected(add_self_loops(edge_index, N))
    src_p, dst_p = prepared
    cw1, cb1, cw2, cb2 = params["conv"]
    for _ in range(NITERS):
        x_i = h[dst_p]
        x_j = h[src_p]
        m = jnp.maximum(jnp.concatenate([x_i, x_j - x_i], axis=-1) @ cw1 + cb1, 0.0)
        m = jnp.maximum(m @ cw2 + cb2, 0.0)
        h = jax.ops.segment_sum(m, jnp.asarray(dst_p), num_segments=N)

    src0, dst0 = edge_index
    ew1, eb1, ew2, eb2, ew3, eb3 = params["edge"]
    z = jnp.maximum(jnp.concatenate([h[src0], h[dst0]], axis=-1) @ ew1 + eb1, 0.0)
    z = jnp.maximum(z @ ew2 + eb2, 0.0)
    z = jax.nn.sigmoid(z @ ew3 + eb3)
    return z[:, 0]


if __name__ == "__main__":
    key = jax.random.PRNGKey(0)
    k_x, k_src, k_dst, k_p = jax.random.split(key, 4)

    N_NODES = 32
    N_EDGES = 64
    x = jax.random.normal(k_x, (N_NODES, INPUT_DIM), jnp.float32)
    src = np.asarray(jax.random.randint(k_src, (N_EDGES,), 0, N_NODES), np.int32)
    dst = np.asarray(jax.random.randint(k_dst, (N_EDGES,), 0, N_NODES), np.int32)
    edge_index = np.stack([src, dst])                 # [2, E0]

    params = make_params(k_p)

    out = graphnet_forward_pallas(x, edge_index, params)
    out = jax.block_until_ready(out)

    ref = graphnet_forward_ref(x, edge_index, params)
    np.testing.assert_allclose(np.asarray(out), np.asarray(ref),
                               rtol=1e-3, atol=1e-3)

    assert out.shape == (N_EDGES,)
    print("KERNEL_OK")
</pallas_src>

<mosaic_0001>
module attributes {stable_mosaic.version = 11 : i64} {
  func.func @graphnet_kernel(%arg0: memref<32x12xf32, #tpu.memory_space<vmem>>, %arg1: memref<160x32xbf16, #tpu.memory_space<vmem>>, %arg2: memref<160x32xbf16, #tpu.memory_space<vmem>>, %arg3: memref<64x32xbf16, #tpu.memory_space<vmem>>, %arg4: memref<64x32xbf16, #tpu.memory_space<vmem>>, %arg5: memref<12x64xf32, #tpu.memory_space<vmem>>, %arg6: memref<1x64xf32, #tpu.memory_space<vmem>>, %arg7: memref<1x64xf32, #tpu.memory_space<vmem>>, %arg8: memref<1x64xf32, #tpu.memory_space<vmem>>, %arg9: memref<64x64xf32, #tpu.memory_space<vmem>>, %arg10: memref<1x64xf32, #tpu.memory_space<vmem>>, %arg11: memref<128x128xf32, #tpu.memory_space<vmem>>, %arg12: memref<1x128xf32, #tpu.memory_space<vmem>>, %arg13: memref<128x64xf32, #tpu.memory_space<vmem>>, %arg14: memref<1x64xf32, #tpu.memory_space<vmem>>, %arg15: memref<128x64xf32, #tpu.memory_space<vmem>>, %arg16: memref<1x64xf32, #tpu.memory_space<vmem>>, %arg17: memref<64x64xf32, #tpu.memory_space<vmem>>, %arg18: memref<1x64xf32, #tpu.memory_space<vmem>>, %arg19: memref<64x128xf32, #tpu.memory_space<vmem>>, %arg20: memref<1x128xf32, #tpu.memory_space<vmem>>, %arg21: memref<64x128xf32, #tpu.memory_space<vmem>>) attributes {dimension_semantics = [], scalar_prefetch = 0 : i64, scratch_operands = 0 : i64, tpu.core_type = #tpu.core_type<tc>} {
    %c0 = arith.constant 0 : index
    %c0_0 = arith.constant 0 : index
    %0 = vector.load %arg0[%c0, %c0_0] : memref<32x12xf32, #tpu.memory_space<vmem>>, vector<32x12xf32>
    %c0_1 = arith.constant 0 : index
    %c0_2 = arith.constant 0 : index
    %1 = vector.load %arg5[%c0_1, %c0_2] : memref<12x64xf32, #tpu.memory_space<vmem>>, vector<12x64xf32>
    %cst = arith.constant dense<0.000000e+00> : vector<32x64xf32>
    %2 = tpu.matmul %0, %1, %cst {dimension_numbers = #tpu.dot_dimension_numbers<[1], [0], [0], [1], [0, 0, 1, 1], [], []>} : vector<32x12xf32>, vector<12x64xf32>, vector<32x64xf32> -> vector<32x64xf32>
    %c0_3 = arith.constant 0 : index
    %c0_4 = arith.constant 0 : index
    %3 = vector.load %arg6[%c0_3, %c0_4] : memref<1x64xf32, #tpu.memory_space<vmem>>, vector<1x64xf32>
    %4 = vector.broadcast %3 : vector<1x64xf32> to vector<32x64xf32>
    %5 = arith.addf %2, %4 : vector<32x64xf32>
    %c0_5 = arith.constant 0 : index
    %c0_6 = arith.constant 0 : index
    %6 = vector.load %arg7[%c0_5, %c0_6] : memref<1x64xf32, #tpu.memory_space<vmem>>, vector<1x64xf32>
    %7 = vector.broadcast %6 : vector<1x64xf32> to vector<32x64xf32>
    %8 = arith.mulf %5, %7 : vector<32x64xf32>
    %c0_7 = arith.constant 0 : index
    %c0_8 = arith.constant 0 : index
    %9 = vector.load %arg8[%c0_7, %c0_8] : memref<1x64xf32, #tpu.memory_space<vmem>>, vector<1x64xf32>
    %10 = vector.broadcast %9 : vector<1x64xf32> to vector<32x64xf32>
    %11 = arith.addf %8, %10 : vector<32x64xf32>
    %cst_9 = arith.constant 0.000000e+00 : f32
    %12 = vector.broadcast %cst_9 : f32 to vector<32x64xf32>
    %13 = arith.cmpf ogt, %11, %12 : vector<32x64xf32>
    %14 = math.exp %11 : vector<32x64xf32>
    %cst_10 = arith.constant 1.000000e+00 : f32
    %15 = vector.broadcast %cst_10 : f32 to vector<32x64xf32>
    %16 = arith.subf %14, %15 : vector<32x64xf32>
    %17 = arith.select %13, %11, %16 : vector<32x64xi1>, vector<32x64xf32>
    %c0_11 = arith.constant 0 : index
    %c0_12 = arith.constant 0 : index
    %18 = vector.load %arg9[%c0_11, %c0_12] : memref<64x64xf32, #tpu.memory_space<vmem>>, vector<64x64xf32>
    %cst_13 = arith.constant dense<0.000000e+00> : vector<32x64xf32>
    %19 = tpu.matmul %17, %18, %cst_13 {dimension_numbers = #tpu.dot_dimension_numbers<[1], [0], [0], [1], [0, 0, 1, 1], [], []>} : vector<32x64xf32>, vector<64x64xf32>, vector<32x64xf32> -> vector<32x64xf32>
    %c0_14 = arith.constant 0 : index
    %c0_15 = arith.constant 0 : index
    %20 = vector.load %arg10[%c0_14, %c0_15] : memref<1x64xf32, #tpu.memory_space<vmem>>, vector<1x64xf32>
    %21 = vector.broadcast %20 : vector<1x64xf32> to vector<32x64xf32>
    %22 = arith.addf %19, %21 : vector<32x64xf32>
    %cst_16 = arith.constant 0.000000e+00 : f32
    %23 = vector.broadcast %cst_16 : f32 to vector<32x64xf32>
    %24 = arith.maximumf %22, %23 : vector<32x64xf32>
    %c0_17 = arith.constant 0 : index
    %c0_18 = arith.constant 0 : index
    %25 = vector.load %arg1[%c0_17, %c0_18] : memref<160x32xbf16, #tpu.memory_space<vmem>>, vector<160x32xbf16>
    %26 = arith.extf %25 : vector<160x32xbf16> to vector<160x32xf32>
    %c0_19 = arith.constant 0 : index
    %c0_20 = arith.constant 0 : index
    %27 = vector.load %arg2[%c0_19, %c0_20] : memref<160x32xbf16, #tpu.memory_space<vmem>>, vector<160x32xbf16>
    %28 = arith.extf %27 : vector<160x32xbf16> to vector<160x32xf32>
    %c0_21 = arith.constant 0 : index
    %c0_22 = arith.constant 0 : index
    %29 = vector.load %arg11[%c0_21, %c0_22] : memref<128x128xf32, #tpu.memory_space<vmem>>, vector<128x128xf32>
    %c0_23 = arith.constant 0 : index
    %c0_24 = arith.constant 0 : index
    %30 = vector.load %arg13[%c0_23, %c0_24] : memref<128x64xf32, #tpu.memory_space<vmem>>, vector<128x64xf32>
    %c0_25 = arith.constant 0 : index
    %c0_26 = arith.constant 0 : index
    %31 = vector.load %arg12[%c0_25, %c0_26] : memref<1x128xf32, #tpu.memory_space<vmem>>, vector<1x128xf32>
    %32 = vector.shape_cast %31 : vector<1x128xf32> to vector<1x128xf32>
    %33 = vector.broadcast %32 : vector<1x128xf32> to vector<160x128xf32>
    %c0_27 = arith.constant 0 : index
    %c0_28 = arith.constant 0 : index
    %34 = vector.load %arg14[%c0_27, %c0_28] : memref<1x64xf32, #tpu.memory_space<vmem>>, vector<1x64xf32>
    %35 = vector.shape_cast %34 : vector<1x64xf32> to vector<1x64xf32>
    %36 = vector.broadcast %35 : vector<1x64xf32> to vector<160x64xf32>
    %cst_29 = arith.constant dense<0.000000e+00> : vector<160x64xf32>
    %37 = tpu.matmul %26, %24, %cst_29 {dimension_numbers = #tpu.dot_dimension_numbers<[1], [0], [0], [1], [0, 0, 1, 1], [], []>} : vector<160x32xf32>, vector<32x64xf32>, vector<160x64xf32> -> vector<160x64xf32>
    %cst_30 = arith.constant dense<0.000000e+00> : vector<160x64xf32>
    %38 = tpu.matmul %28, %24, %cst_30 {dimension_numbers = #tpu.dot_dimension_numbers<[1], [0], [0], [1], [0, 0, 1, 1], [], []>} : vector<160x32xf32>, vector<32x64xf32>, vector<160x64xf32> -> vector<160x64xf32>
    %39 = arith.subf %37, %38 : vector<160x64xf32>
    %40 = tpu.concatenate %38, %39 in 1 : vector<160x64xf32>, vector<160x64xf32> -> vector<160x128xf32>
    %cst_31 = arith.constant dense<0.000000e+00> : vector<160x128xf32>
    %41 = tpu.matmul %40, %29, %cst_31 {dimension_numbers = #tpu.dot_dimension_numbers<[1], [0], [0], [1], [0, 0, 1, 1], [], []>} : vector<160x128xf32>, vector<128x128xf32>, vector<160x128xf32> -> vector<160x128xf32>
    %42 = arith.addf %41, %33 : vector<160x128xf32>
    %cst_32 = arith.constant 0.000000e+00 : f32
    %43 = vector.broadcast %cst_32 : f32 to vector<160x128xf32>
    %44 = arith.maximumf %42, %43 : vector<160x128xf32>
    %cst_33 = arith.constant dense<0.000000e+00> : vector<160x64xf32>
    %45 = tpu.matmul %44, %30, %cst_33 {dimension_numbers = #tpu.dot_dimension_numbers<[1], [0], [0], [1], [0, 0, 1, 1], [], []>} : vector<160x128xf32>, vector<128x64xf32>, vector<160x64xf32> -> vector<160x64xf32>
    %46 = arith.addf %45, %36 : vector<160x64xf32>
    %cst_34 = arith.constant 0.000000e+00 : f32
    %47 = vector.broadcast %cst_34 : f32 to vector<160x64xf32>
    %48 = arith.maximumf %46, %47 : vector<160x64xf32>
    %cst_35 = arith.constant dense<0.000000e+00> : vector<32x64xf32>
    %49 = tpu.matmul %28, %48, %cst_35 {dimension_numbers = #tpu.dot_dimension_numbers<[0], [0], [1], [1], [0, 1, 1, 1], [], []>} : vector<160x32xf32>, vector<160x64xf32>, vector<32x64xf32> -> vector<32x64xf32>
    %cst_36 = arith.constant dense<0.000000e+00> : vector<160x64xf32>
    %50 = tpu.matmul %26, %49, %cst_36 {dimension_numbers = #tpu.dot_dimension_numbers<[1], [0], [0], [1], [0, 0, 1, 1], [], []>} : vector<160x32xf32>, vector<32x64xf32>, vector<160x64xf32> -> vector<160x64xf32>
    %cst_37 = arith.constant dense<0.000000e+00> : vector<160x64xf32>
    %51 = tpu.matmul %28, %49, %cst_37 {dimension_numbers = #tpu.dot_dimension_numbers<[1], [0], [0], [1], [0, 0, 1, 1], [], []>} : vector<160x32xf32>, vector<32x64xf32>, vector<160x64xf32> -> vector<160x64xf32>
    %52 = arith.subf %50, %51 : vector<160x64xf32>
    %53 = tpu.concatenate %51, %52 in 1 : vector<160x64xf32>, vector<160x64xf32> -> vector<160x128xf32>
    %cst_38 = arith.constant dense<0.000000e+00> : vector<160x128xf32>
    %54 = tpu.matmul %53, %29, %cst_38 {dimension_numbers = #tpu.dot_dimension_numbers<[1], [0], [0], [1], [0, 0, 1, 1], [], []>} : vector<160x128xf32>, vector<128x128xf32>, vector<160x128xf32> -> vector<160x128xf32>
    %55 = arith.addf %54, %33 : vector<160x128xf32>
    %cst_39 = arith.constant 0.000000e+00 : f32
    %56 = vector.broadcast %cst_39 : f32 to vector<160x128xf32>
    %57 = arith.maximumf %55, %56 : vector<160x128xf32>
    %cst_40 = arith.constant dense<0.000000e+00> : vector<160x64xf32>
    %58 = tpu.matmul %57, %30, %cst_40 {dimension_numbers = #tpu.dot_dimension_numbers<[1], [0], [0], [1], [0, 0, 1, 1], [], []>} : vector<160x128xf32>, vector<128x64xf32>, vector<160x64xf32> -> vector<160x64xf32>
    %59 = arith.addf %58, %36 : vector<160x64xf32>
    %cst_41 = arith.constant 0.000000e+00 : f32
    %60 = vector.broadcast %cst_41 : f32 to vector<160x64xf32>
    %61 = arith.maximumf %59, %60 : vector<160x64xf32>
    %cst_42 = arith.constant dense<0.000000e+00> : vector<32x64xf32>
    %62 = tpu.matmul %28, %61, %cst_42 {dimension_numbers = #tpu.dot_dimension_numbers<[0], [0], [1], [1], [0, 1, 1, 1], [], []>} : vector<160x32xf32>, vector<160x64xf32>, vector<32x64xf32> -> vector<32x64xf32>
    %cst_43 = arith.constant dense<0.000000e+00> : vector<160x64xf32>
    %63 = tpu.matmul %26, %62, %cst_43 {dimension_numbers = #tpu.dot_dimension_numbers<[1], [0], [0], [1], [0, 0, 1, 1], [], []>} : vector<160x32xf32>, vector<32x64xf32>, vector<160x64xf32> -> vector<160x64xf32>
    %cst_44 = arith.constant dense<0.000000e+00> : vector<160x64xf32>
    %64 = tpu.matmul %28, %62, %cst_44 {dimension_numbers = #tpu.dot_dimension_numbers<[1], [0], [0], [1], [0, 0, 1, 1], [], []>} : vector<160x32xf32>, vector<32x64xf32>, vector<160x64xf32> -> vector<160x64xf32>
    %65 = arith.subf %63, %64 : vector<160x64xf32>
    %66 = tpu.concatenate %64, %65 in 1 : vector<160x64xf32>, vector<160x64xf32> -> vector<160x128xf32>
    %cst_45 = arith.constant dense<0.000000e+00> : vector<160x128xf32>
    %67 = tpu.matmul %66, %29, %cst_45 {dimension_numbers = #tpu.dot_dimension_numbers<[1], [0], [0], [1], [0, 0, 1, 1], [], []>} : vector<160x128xf32>, vector<128x128xf32>, vector<160x128xf32> -> vector<160x128xf32>
    %68 = arith.addf %67, %33 : vector<160x128xf32>
    %cst_46 = arith.constant 0.000000e+00 : f32
    %69 = vector.broadcast %cst_46 : f32 to vector<160x128xf32>
    %70 = arith.maximumf %68, %69 : vector<160x128xf32>
    %cst_47 = arith.constant dense<0.000000e+00> : vector<160x64xf32>
    %71 = tpu.matmul %70, %30, %cst_47 {dimension_numbers = #tpu.dot_dimension_numbers<[1], [0], [0], [1], [0, 0, 1, 1], [], []>} : vector<160x128xf32>, vector<128x64xf32>, vector<160x64xf32> -> vector<160x64xf32>
    %72 = arith.addf %71, %36 : vector<160x64xf32>
    %cst_48 = arith.constant 0.000000e+00 : f32
    %73 = vector.broadcast %cst_48 : f32 to vector<160x64xf32>
    %74 = arith.maximumf %72, %73 : vector<160x64xf32>
    %cst_49 = arith.constant dense<0.000000e+00> : vector<32x64xf32>
    %75 = tpu.matmul %28, %74, %cst_49 {dimension_numbers = #tpu.dot_dimension_numbers<[0], [0], [1], [1], [0, 1, 1, 1], [], []>} : vector<160x32xf32>, vector<160x64xf32>, vector<32x64xf32> -> vector<32x64xf32>
    %cst_50 = arith.constant dense<0.000000e+00> : vector<160x64xf32>
    %76 = tpu.matmul %26, %75, %cst_50 {dimension_numbers = #tpu.dot_dimension_numbers<[1], [0], [0], [1], [0, 0, 1, 1], [], []>} : vector<160x32xf32>, vector<32x64xf32>, vector<160x64xf32> -> vector<160x64xf32>
    %cst_51 = arith.constant dense<0.000000e+00> : vector<160x64xf32>
    %77 = tpu.matmul %28, %75, %cst_51 {dimension_numbers = #tpu.dot_dimension_numbers<[1], [0], [0], [1], [0, 0, 1, 1], [], []>} : vector<160x32xf32>, vector<32x64xf32>, vector<160x64xf32> -> vector<160x64xf32>
    %78 = arith.subf %76, %77 : vector<160x64xf32>
    %79 = tpu.concatenate %77, %78 in 1 : vector<160x64xf32>, vector<160x64xf32> -> vector<160x128xf32>
    %cst_52 = arith.constant dense<0.000000e+00> : vector<160x128xf32>
    %80 = tpu.matmul %79, %29, %cst_52 {dimension_numbers = #tpu.dot_dimension_numbers<[1], [0], [0], [1], [0, 0, 1, 1], [], []>} : vector<160x128xf32>, vector<128x128xf32>, vector<160x128xf32> -> vector<160x128xf32>
    %81 = arith.addf %80, %33 : vector<160x128xf32>
    %cst_53 = arith.constant 0.000000e+00 : f32
    %82 = vector.broadcast %cst_53 : f32 to vector<160x128xf32>
    %83 = arith.maximumf %81, %82 : vector<160x128xf32>
    %cst_54 = arith.constant dense<0.000000e+00> : vector<160x64xf32>
    %84 = tpu.matmul %83, %30, %cst_54 {dimension_numbers = #tpu.dot_dimension_numbers<[1], [0], [0], [1], [0, 0, 1, 1], [], []>} : vector<160x128xf32>, vector<128x64xf32>, vector<160x64xf32> -> vector<160x64xf32>
    %85 = arith.addf %84, %36 : vector<160x64xf32>
    %cst_55 = arith.constant 0.000000e+00 : f32
    %86 = vector.broadcast %cst_55 : f32 to vector<160x64xf32>
    %87 = arith.maximumf %85, %86 : vector<160x64xf32>
    %cst_56 = arith.constant dense<0.000000e+00> : vector<32x64xf32>
    %88 = tpu.matmul %28, %87, %cst_56 {dimension_numbers = #tpu.dot_dimension_numbers<[0], [0], [1], [1], [0, 1, 1, 1], [], []>} : vector<160x32xf32>, vector<160x64xf32>, vector<32x64xf32> -> vector<32x64xf32>
    %c0_57 = arith.constant 0 : index
    %c0_58 = arith.constant 0 : index
    %89 = vector.load %arg3[%c0_57, %c0_58] : memref<64x32xbf16, #tpu.memory_space<vmem>>, vector<64x32xbf16>
    %90 = arith.extf %89 : vector<64x32xbf16> to vector<64x32xf32>
    %c0_59 = arith.constant 0 : index
    %c0_60 = arith.constant 0 : index
    %91 = vector.load %arg4[%c0_59, %c0_60] : memref<64x32xbf16, #tpu.memory_space<vmem>>, vector<64x32xbf16>
    %92 = arith.extf %91 : vector<64x32xbf16> to vector<64x32xf32>
    %cst_61 = arith.constant dense<0.000000e+00> : vector<64x64xf32>
    %93 = tpu.matmul %90, %88, %cst_61 {dimension_numbers = #tpu.dot_dimension_numbers<[1], [0], [0], [1], [0, 0, 1, 1], [], []>} : vector<64x32xf32>, vector<32x64xf32>, vector<64x64xf32> -> vector<64x64xf32>
    %cst_62 = arith.constant dense<0.000000e+00> : vector<64x64xf32>
    %94 = tpu.matmul %92, %88, %cst_62 {dimension_numbers = #tpu.dot_dimension_numbers<[1], [0], [0], [1], [0, 0, 1, 1], [], []>} : vector<64x32xf32>, vector<32x64xf32>, vector<64x64xf32> -> vector<64x64xf32>
    %95 = tpu.concatenate %93, %94 in 1 : vector<64x64xf32>, vector<64x64xf32> -> vector<64x128xf32>
    %c0_63 = arith.constant 0 : index
    %c0_64 = arith.constant 0 : index
    %96 = vector.load %arg15[%c0_63, %c0_64] : memref<128x64xf32, #tpu.memory_space<vmem>>, vector<128x64xf32>
    %cst_65 = arith.constant dense<0.000000e+00> : vector<64x64xf32>
    %97 = tpu.matmul %95, %96, %cst_65 {dimension_numbers = #tpu.dot_dimension_numbers<[1], [0], [0], [1], [0, 0, 1, 1], [], []>} : vector<64x128xf32>, vector<128x64xf32>, vector<64x64xf32> -> vector<64x64xf32>
    %c0_66 = arith.constant 0 : index
    %c0_67 = arith.constant 0 : index
    %98 = vector.load %arg16[%c0_66, %c0_67] : memref<1x64xf32, #tpu.memory_space<vmem>>, vector<1x64xf32>
    %99 = vector.broadcast %98 : vector<1x64xf32> to vector<64x64xf32>
    %100 = arith.addf %97, %99 : vector<64x64xf32>
    %cst_68 = arith.constant 0.000000e+00 : f32
    %101 = vector.broadcast %cst_68 : f32 to vector<64x64xf32>
    %102 = arith.maximumf %100, %101 : vector<64x64xf32>
    %c0_69 = arith.constant 0 : index
    %c0_70 = arith.constant 0 : index
    %103 = vector.load %arg17[%c0_69, %c0_70] : memref<64x64xf32, #tpu.memory_space<vmem>>, vector<64x64xf32>
    %cst_71 = arith.constant dense<0.000000e+00> : vector<64x64xf32>
    %104 = tpu.matmul %102, %103, %cst_71 {dimension_numbers = #tpu.dot_dimension_numbers<[1], [0], [0], [1], [0, 0, 1, 1], [], []>} : vector<64x64xf32>, vector<64x64xf32>, vector<64x64xf32> -> vector<64x64xf32>
    %c0_72 = arith.constant 0 : index
    %c0_73 = arith.constant 0 : index
    %105 = vector.load %arg18[%c0_72, %c0_73] : memref<1x64xf32, #tpu.memory_space<vmem>>, vector<1x64xf32>
    %106 = vector.broadcast %105 : vector<1x64xf32> to vector<64x64xf32>
    %107 = arith.addf %104, %106 : vector<64x64xf32>
    %cst_74 = arith.constant 0.000000e+00 : f32
    %108 = vector.broadcast %cst_74 : f32 to vector<64x64xf32>
    %109 = arith.maximumf %107, %108 : vector<64x64xf32>
    %c0_75 = arith.constant 0 : index
    %c0_76 = arith.constant 0 : index
    %110 = vector.load %arg19[%c0_75, %c0_76] : memref<64x128xf32, #tpu.memory_space<vmem>>, vector<64x128xf32>
    %cst_77 = arith.constant dense<0.000000e+00> : vector<64x128xf32>
    %111 = tpu.matmul %109, %110, %cst_77 {dimension_numbers = #tpu.dot_dimension_numbers<[1], [0], [0], [1], [0, 0, 1, 1], [], []>} : vector<64x64xf32>, vector<64x128xf32>, vector<64x128xf32> -> vector<64x128xf32>
    %c0_78 = arith.constant 0 : index
    %c0_79 = arith.constant 0 : index
    %112 = vector.load %arg20[%c0_78, %c0_79] : memref<1x128xf32, #tpu.memory_space<vmem>>, vector<1x128xf32>
    %113 = vector.broadcast %112 : vector<1x128xf32> to vector<64x128xf32>
    %114 = arith.addf %111, %113 : vector<64x128xf32>
    %115 = arith.negf %114 : vector<64x128xf32>
    %116 = math.exp %115 : vector<64x128xf32>
    %cst_80 = arith.constant 1.000000e+00 : f32
    %117 = vector.broadcast %cst_80 : f32 to vector<64x128xf32>
    %118 = arith.addf %117, %116 : vector<64x128xf32>
    %119 = arith.divf %117, %118 : vector<64x128xf32>
    %c0_81 = arith.constant 0 : index
    %c0_82 = arith.constant 0 : index
    %120 = vector.load %arg21[%c0_81, %c0_82] : memref<64x128xf32, #tpu.memory_space<vmem>>, vector<64x128xf32>
    tpu.vector_store %arg21[%c0_81, %c0_82], %119 {strides = array<i32>} : memref<64x128xf32, #tpu.memory_space<vmem>>, vector<64x128xf32>,
    return
  }
}

</mosaic_0001>

<bundles_post_ra>
// kernel: tpu_custom_call.1
= control target key start
LH: loop header
LB: loop body
LE: loop exit
PB: predicated region body
PF: predicated region fallthrough
CT: control target
= control target key end

     0   :  { %s9708_s0 = inlined_call_operand.vmem [shape: f32[32,12], index: 0, kind: input, shape index: {}]   ;;  %s9709_s1 = inlined_call_operand.vmem [shape: bf16[160,32], index: 1, kind: input, shape index: {}]   ;;  %s9710_s2 = inlined_call_operand.vmem [shape: bf16[160,32], index: 2, kind: input, shape index: {}]   ;;  %s9711_s3 = inlined_call_operand.vmem [shape: bf16[64,32], index: 3, kind: input, shape index: {}]   ;;  %s9712_s4 = inlined_call_operand.vmem [shape: bf16[64,32], index: 4, kind: input, shape index: {}]   ;;  %s9713_s5 = inlined_call_operand.vmem [shape: f32[12,64], index: 5, kind: input, shape index: {}]   ;;  %s9714_s6 = inlined_call_operand.vmem [shape: f32[1,64], index: 6, kind: input, shape index: {}]   ;;  %s9715_s7 = inlined_call_operand.vmem [shape: f32[1,64], index: 7, kind: input, shape index: {}]   ;;  %s9716_s8 = inlined_call_operand.vmem [shape: f32[1,64], index: 8, kind: input, shape index: {}]   ;;  %s9717_s9 = inlined_call_operand.vmem [shape: f32[64,64], index: 9, kind: input, shape index: {}]   ;;  %s9718_s10 = inlined_call_operand.vmem [shape: f32[1,64], index: 10, kind: input, shape index: {}]   ;;  %s9719_s11 = inlined_call_operand.vmem [shape: f32[128,128], index: 11, kind: input, shape index: {}]   ;;  %s9720_s12 = inlined_call_operand.vmem [shape: f32[1,128], index: 12, kind: input, shape index: {}]   ;;  %s9721_s13 = inlined_call_operand.vmem [shape: f32[128,64], index: 13, kind: input, shape index: {}]   ;;  %s9722_s14 = inlined_call_operand.vmem [shape: f32[1,64], index: 14, kind: input, shape index: {}]   ;;  %s9723_s15 = inlined_call_operand.vmem [shape: f32[128,64], index: 15, kind: input, shape index: {}]   ;;  %s9724_s16 = inlined_call_operand.vmem [shape: f32[1,64], index: 16, kind: input, shape index: {}]   ;;  %s9725_s17 = inlined_call_operand.vmem [shape: f32[64,64], index: 17, kind: input, shape index: {}]   ;;  %s9726_s18 = inlined_call_operand.vmem [shape: f32[1,64], index: 18, kind: input, shape index: {}]   ;;  %s9727_s19 = inlined_call_operand.vmem [shape: f32[64,128], index: 19, kind: input, shape index: {}]   ;;  %s9728_s20 = inlined_call_operand.vmem [shape: f32[1,128], index: 20, kind: input, shape index: {}]   ;;  %s9729_s21 = inlined_call_operand.hbm [shape: f32[64,128], index: 21, kind: output, shape index: {}]  }
   0x1   :  { %9826 = sst [smem:[#allocation42_spill]] %s9708_s0 }
   0x2   :  { %9827 = sst [smem:[#allocation43_spill]] %s9709_s1 }
   0x3   :  { %9828 = sst [smem:[#allocation44_spill]] %s9710_s2 }
   0x4   :  { %9829 = sst [smem:[#allocation45_spill]] %s9711_s3 }
   0x5   :  { %9830 = sst [smem:[#allocation46_spill]] %s9712_s4 }
   0x6   :  { %9831 = sst [smem:[#allocation47_spill]] %s9713_s5 }
   0x7   :  { %s9832_s26 = sld [smem:[#allocation47_spill]]  ;;  %vm95_vm0 = vcmask 1043456   ;;  %s9833_s0 = sld [smem:[#allocation42_spill]]  ;;  %vm7884_vm1 = vmmov 1   ;;  %vm82_vm3 = vcmask 97280  }
   0x8   :  { %vm7045_vm2 = vmpackc.low %vm95_vm0, %vm7884_vm1 }
   0xd   :  { %v73_v0 = vld [vmem:[%s9832_s26] sm:$0xff]  ;;  %v74_v1 = vld [vmem:[%s9832_s26 + $0x8] sm:$0xf] }
   0xe   :  { %v69_v2 = vld [vmem:[%s9833_s0] sm:$0xff]  ;;  %v7044_v3 = vpack.c.bf16 %v74_v1, %v73_v0 }
   0xf   :  { %6076 = vmatprep.mubr.msk.f32.mxu0 %vm82_vm3, %v69_v2 }
  0x10   :  { %26 = vsyncpa [#allocation3], 0  ;;  %7046 = vmatprep.subr.msk.bf16.mxu0 %vm7045_vm2, %v7044_v3  ;;  %v70_v4 = vld [vmem:[%s9833_s0 + $0x8] sm:$0xff]  ;;  %v71_v5 = vld [vmem:[%s9833_s0 + $0x10] sm:$0xff]  ;;  %vm241_vm4 = vcmask 523264   ;;  %vm469_vm9 = vcmask 261120  }
  0x11   :  { %7049 = vmatpush3.bf16.msk.msra.mxu0 %vm7045_vm2, %v7044_v3  ;;  %v72_v6 = vld [vmem:[%s9833_s0 + $0x18] sm:$0xff]  ;;  %v226_v7 = vld [vmem:[%s9717_s9] sm:$0xff]  ;;  %v227_v8 = vld [vmem:[%s9717_s9 + $0x8] sm:$0xff]  ;;  %s9835_s0 = sld [smem:[#allocation44_spill]]  ;;  %s9965_s28 = sld [smem:[#allocation46_spill]] }
  0x12   :  { %v7050_v9 = vpack.c.bf16 %v227_v8, %v226_v7  ;;  %v228_v10 = vld [vmem:[%s9717_s9 + $0x10] sm:$0xff]  ;;  %v229_v11 = vld [vmem:[%s9717_s9 + $0x18] sm:$0xff]  ;;  %v230_v13 = vld [vmem:[%s9717_s9 + $0x20] sm:$0xff] }
  0x13   :  { %v7054_v12 = vpack.c.bf16 %v229_v11, %v228_v10  ;;  %v231_v14 = vld [vmem:[%s9717_s9 + $0x28] sm:$0xff]  ;;  %v232_v15 = vld [vmem:[%s9717_s9 + $0x30] sm:$0xff]  ;;  %v233_v17 = vld [vmem:[%s9717_s9 + $0x38] sm:$0xff]  ;;  %s9966_s9 = sld [smem:[#allocation45_spill]] }
  0x14   :  { %6077 = vmatmul.mubr.msk.f32.vlgmr.msra.gmra.mrb[0].mxu0 %vm82_vm3, %v70_v4  ;;  %7051 = vmatprep.subr.bf16.mxu1 %v7050_v9  ;;  %v7058_v16 = vpack.c.bf16 %v231_v14, %v230_v13  ;;  %v7062_v18 = vpack.c.bf16 %v233_v17, %v232_v15  ;;  %v5120_v19 = vld [vmem:[%s9714_s6] ss:$0 sm:$0xff] }
  0x15   :  { %6079 = vmatprep.mubr.msk.f32.mxu0 %vm82_vm3, %v71_v5  ;;  %7053 = vmatpush3.bf16.msra.mxu1 %v7050_v9  ;;  %v5126_v21 = vld [vmem:[%s9715_s7] ss:$0 sm:$0xff] }
  0x16   :  { %7055 = vmatprep.subr.bf16.mxu1 %v7054_v12  ;;  %v5127_v24 = vld [vmem:[%s9716_s8] ss:$0 sm:$0xff]  ;;  %s9834_s8 = sld [smem:[#allocation43_spill]] }
  0x17   :  { %v5399_v55 = vld [vmem:[%s9835_s0] sm:$0xff]   ;;  %v5479_v10 = vld [vmem:[%s9835_s0 + $0x8] sm:$0xff]  }
  0x18   :  { %6080 = vmatmul.mubr.msk.f32.gmra.mrb[2].mxu0 %vm82_vm3, %v72_v6  ;;  %v8063_v57 = vunpack.c.l.bf16 %v5399_v55  ;;  %v5132_v58 = vld [vmem:[%s9718_s10] ss:$0 sm:$0xff]  ;;  %v8084_v14 = vunpack.c.l.bf16 %v5479_v10 }
  0x19   :  { %7057 = vmatpush3.bf16.msra.mxu1 %v7054_v12  ;;  %v8080_v12 = vunpack.c.h.bf16 %v5399_v55 }
  0x1a   :  { %7059 = vmatprep.subr.bf16.mxu1 %v7058_v16 }
  0x1c   :  { %v5359_v54 = vld [vmem:[%s9834_s8] sm:$0xff]   ;;  %v5470_v9 = vld [vmem:[%s9834_s8 + $0x8] sm:$0xff]   ;;  %v5471_v15 = vld [vmem:[%s9834_s8 + $0x10] sm:$0xff]  }
  0x1d   :  { %7061 = vmatpush3.bf16.msra.mxu1 %v7058_v16  ;;  %v8061_v56 = vunpack.c.l.bf16 %v5359_v54  ;;  %v8078_v11 = vunpack.c.h.bf16 %v5359_v54  ;;  %v8082_v13 = vunpack.c.l.bf16 %v5470_v9  ;;  %v5480_v16 = vld [vmem:[%s9835_s0 + $0x10] sm:$0xff]   ;;  %v8096_v17 = vunpack.c.h.bf16 %v5470_v9  ;;  %v427_v9 = vld [vmem:[%s9719_s11 + $0x20] sm:$0xff] }
  0x1e   :  { %7063 = vmatprep.subr.bf16.mxu1 %v7062_v18 }
  0x1f   :  { %6112 = vmatprep.mubr.msk.f32.mxu0 %vm469_vm9, %v8061_v56 }
  0x21   :  { %7065 = vmatpush3.bf16.msra.mxu1 %v7062_v18  ;;  %v8098_v18 = vunpack.c.h.bf16 %v5479_v10  ;;  %v428_v10 = vld [vmem:[%s9719_s11 + $0x28] sm:$0xff] }
  0xe7   :  { %v6078_v20 = vpop.f32.mrb[0].mxu0 }
  0xe8   :  { %v171_v22 = vadd.f32 %v6078_v20, %v5120_v19  ;;  %v165_v23 = vpop.f32.mrb[1].mxu0  ;;  %v8106_v20 = vunpack.c.l.bf16 %v5480_v16 }
  0xe9   :  { %v166_v25 = vadd.f32 %v5120_v19, %v165_v23  ;;  %v8118_v23 = vunpack.c.h.bf16 %v5471_v15 }
  0xea   :  { %v192_v26 = vmul.f32 %v5126_v21, %v171_v22  ;;  %v5481_v22 = vld [vmem:[%s9835_s0 + $0x18] sm:$0xff]  }
  0xeb   :  { %v191_v27 = vmul.f32 %v5126_v21, %v166_v25  ;;  %v6081_v28 = vpop.f32.mrb[2].mxu0 }
  0xec   :  { %v203_v29 = vadd.f32 %v5127_v24, %v192_v26  ;;  %v181_v30 = vadd.f32 %v6081_v28, %v5120_v19  ;;  %v175_v31 = vpop.f32.mrb[3].mxu0  ;;  %v8128_v26 = vunpack.c.l.bf16 %v5481_v22  ;;  %v5482_v28 = vld [vmem:[%s9835_s0 + $0x20] sm:$0xff]  }
  0xed   :  { %v202_v32 = vadd.f32 %v5127_v24, %v191_v27  ;;  %v176_v33 = vadd.f32 %v5120_v19, %v175_v31  ;;  %v8104_v19 = vunpack.c.l.bf16 %v5471_v15  ;;  %v5473_v27 = vld [vmem:[%s9834_s8 + $0x20] sm:$0xff]   ;;  %v8303_v15 = vpack.c.bf16 %v428_v10, %v427_v9 }
  0xee   :  { %v212_v34 = vmul.f32 1.442695, %v203_v29  ;;  %v194_v35 = vmul.f32 %v5126_v21, %v181_v30  ;;  %vm207_vm6 = vcmp.gt.f32.partialorder %v203_v29, 0.0  ;;  %v8142_v30 = vunpack.c.h.bf16 %v5481_v22 }
  0xef   :  { %v193_v36 = vmul.f32 %v5126_v21, %v176_v33  ;;  %v210_v37 = vmul.f32 1.442695, %v202_v32  ;;  %vm206_vm5 = vcmp.gt.f32.partialorder %v202_v32, 0.0  ;;  %v5472_v21 = vld [vmem:[%s9834_s8 + $0x18] sm:$0xff]   ;;  %v8148_v31 = vunpack.c.l.bf16 %v5473_v27  ;;  %v5474_v33 = vld [vmem:[%s9834_s8 + $0x28] sm:$0xff]   ;;  %9862 = vst [vmem:[#allocation31_spill] sm:$0xff] %v8303_v15 }
  0xf0   :  { %7817 = vpow2.f32 %v212_v34  ;;  %v205_v38 = vadd.f32 %v5127_v24, %v194_v35  ;;  %v8126_v25 = vunpack.c.l.bf16 %v5472_v21  ;;  %9837 = vst [vmem:[#allocation6_spill] sm:$0xff] %v8142_v30  ;;  %v5483_v34 = vld [vmem:[%s9835_s0 + $0x28] sm:$0xff]   ;;  %v8162_v35 = vunpack.c.h.bf16 %v5473_v27  ;;  %v431_v27 = vld [vmem:[%s9719_s11 + $0x40] sm:$0xff] }
  0xf1   :  { %v204_v39 = vadd.f32 %v5127_v24, %v193_v36  ;;  %7819 = vpow2.f32 %v210_v37  ;;  %v8120_v24 = vunpack.c.h.bf16 %v5480_v16  ;;  %9838 = vst [vmem:[#allocation7_spill] sm:$0xff] %v8148_v31  ;;  %v8164_v36 = vunpack.c.h.bf16 %v5482_v28  ;;  %v429_v16 = vld [vmem:[%s9719_s11 + $0x30] sm:$0xff] }
  0xf2   :  { %v216_v40 = vmul.f32 1.442695, %v205_v38  ;;  %vm209_vm8 = vcmp.gt.f32.partialorder %v205_v38, 0.0  ;;  %9840 = vst [vmem:[#allocation9_spill] sm:$0xff] %v8162_v35  ;;  %v8170_v37 = vunpack.c.l.bf16 %v5474_v33 }
  0xf3   :  { %v214_v41 = vmul.f32 1.442695, %v204_v39  ;;  %vm208_vm7 = vcmp.gt.f32.partialorder %v204_v39, 0.0  ;;  %9841 = vst [vmem:[#allocation10_spill] sm:$0xff] %v8164_v36 }
  0xf4   :  { %7821 = vpow2.f32 %v216_v40  ;;  %9842 = vst [vmem:[#allocation11_spill] sm:$0xff] %v8170_v37  ;;  %v5484_v40 = vld [vmem:[%s9835_s0 + $0x30] sm:$0xff]  }
  0xf5   :  { %7823 = vpow2.f32 %v214_v41  ;;  %v8184_v41 = vunpack.c.h.bf16 %v5474_v33 }
  0xf7   :  { %9844 = vst [vmem:[#allocation13_spill] sm:$0xff] %v8184_v41 }
  0xfa   :  { %v7818_v42 = vpop.eup %7817 }
  0xfb   :  { %v7820_v43 = vpop.eup %7819  ;;  %v5129_v44 = vadd.f32 -1.0, %v7818_v42  ;;  %v8186_v42 = vunpack.c.h.bf16 %v5483_v34 }
  0xfc   :  { %v5128_v45 = vadd.f32 -1.0, %v7820_v43 }
  0xfd   :  { %v223_v49 = vsel %vm207_vm6, %v203_v29, %v5129_v44  ;;  %v8140_v29 = vunpack.c.h.bf16 %v5472_v21  ;;  %9845 = vst [vmem:[#allocation14_spill] sm:$0xff] %v8186_v42  ;;  %v8194_v44 = vunpack.c.l.bf16 %v5484_v40  ;;  %v430_v21 = vld [vmem:[%s9719_s11 + $0x38] sm:$0xff] }
  0xfe   :  { %v7822_v46 = vpop.eup %7821  ;;  %v222_v47 = vsel %vm206_vm5, %v202_v32, %v5128_v45  ;;  %v8150_v32 = vunpack.c.l.bf16 %v5482_v28  ;;  %v5476_v45 = vld [vmem:[%s9834_s8 + $0x38] sm:$0xff]   ;;  %v8313_v22 = vpack.c.bf16 %v430_v21, %v429_v16  ;;  %v432_v28 = vld [vmem:[%s9719_s11 + $0x48] sm:$0xff] }
  0xff   :  { %v7824_v48 = vpop.eup %7823  ;;  %6098 = vmatprep.mubr.msk.f32.mxu1 %vm241_vm4, %v222_v47  ;;  %v5131_v50 = vadd.f32 -1.0, %v7822_v46  ;;  %9836 = vst [vmem:[#allocation5_spill] sm:$0xff] %v8140_v29  ;;  %9847 = vst [vmem:[#allocation16_spill] sm:$0xff] %v8194_v44  ;;  %v5485_v46 = vld [vmem:[%s9835_s0 + $0x38] sm:$0xff]   ;;  %v8323_v33 = vpack.c.bf16 %v432_v28, %v431_v27 }
 0x100   :  { %6099 = vmatmul.mubr.msk.f32.vlgmr.msra.gmra.mrb[0].mxu1 %vm241_vm4, %v223_v49  ;;  %v5130_v51 = vadd.f32 -1.0, %v7824_v48  ;;  %9839 = vst [vmem:[#allocation8_spill] sm:$0xff] %v8150_v32  ;;  %v8208_v48 = vunpack.c.h.bf16 %v5484_v40  ;;  %v8214_v49 = vunpack.c.l.bf16 %v5476_v45  ;;  %v8230_v54 = vunpack.c.h.bf16 %v5485_v46  ;;  %9863 = vst [vmem:[#allocation32_spill] sm:$0xff] %v8313_v22 }
 0x101   :  { %v225_v53 = vsel %vm209_vm8, %v205_v38, %v5131_v50  ;;  %v8172_v38 = vunpack.c.l.bf16 %v5483_v34  ;;  %v8216_v50 = vunpack.c.l.bf16 %v5485_v46  ;;  %9864 = vst [vmem:[#allocation33_spill] sm:$0xff] %v8323_v33  ;;  %v433_v34 = vld [vmem:[%s9719_s11 + $0x50] sm:$0xff]  ;;  %v436_v46 = vld [vmem:[%s9719_s11 + $0x68] sm:$0xff] }
 0x102   :  { %v224_v52 = vsel %vm208_vm7, %v204_v39, %v5130_v51  ;;  %v5475_v39 = vld [vmem:[%s9834_s8 + $0x30] sm:$0xff]   ;;  %9849 = vst [vmem:[#allocation18_spill] sm:$0xff] %v8208_v48  ;;  %9850 = vst [vmem:[#allocation19_spill] sm:$0xff] %v8214_v49  ;;  %v5477_v51 = vld [vmem:[%s9834_s8 + $0x40] sm:$0xff]  }
 0x103   :  { %6101 = vmatprep.mubr.msk.f32.mxu1 %vm241_vm4, %v224_v52  ;;  %9843 = vst [vmem:[#allocation12_spill] sm:$0xff] %v8172_v38  ;;  %v8192_v43 = vunpack.c.l.bf16 %v5475_v39  ;;  %v8206_v47 = vunpack.c.h.bf16 %v5475_v39  ;;  %9851 = vst [vmem:[#allocation20_spill] sm:$0xff] %v8216_v50  ;;  %v5486_v52 = vld [vmem:[%s9835_s0 + $0x40] sm:$0xff]   ;;  %v8236_v55 = vunpack.c.l.bf16 %v5477_v51  ;;  %v434_v39 = vld [vmem:[%s9719_s11 + $0x58] sm:$0xff] }
 0x104   :  { %6102 = vmatmul.mubr.msk.f32.gmra.mrb[2].mxu1 %vm241_vm4, %v225_v53  ;;  %v8228_v53 = vunpack.c.h.bf16 %v5476_v45  ;;  %9853 = vst [vmem:[#allocation22_spill] sm:$0xff] %v8230_v54  ;;  %v8333_v40 = vpack.c.bf16 %v434_v39, %v433_v34  ;;  %v435_v45 = vld [vmem:[%s9719_s11 + $0x60] sm:$0xff] }
 0x105   :  { %6150 = vmatprep.mubr.msk.f32.mxu1 %vm469_vm9, %v8063_v57  ;;  %9846 = vst [vmem:[#allocation15_spill] sm:$0xff] %v8192_v43  ;;  %9848 = vst [vmem:[#allocation17_spill] sm:$0xff] %v8206_v47 }
 0x106   :  { %9852 = vst [vmem:[#allocation21_spill] sm:$0xff] %v8228_v53  ;;  %9854 = vst [vmem:[#allocation23_spill] sm:$0xff] %v8236_v55 }
 0x107   :  { %9865 = vst [vmem:[#allocation34_spill] sm:$0xff] %v8333_v40 }
 0x1d3   :  { %v6100_v59 = vpop.f32.mrb[0].mxu1 }
 0x1d4   :  { %v326_v60 = vadd.f32 %v6100_v59, %v5132_v58  ;;  %v320_v61 = vpop.f32.mrb[1].mxu1  ;;  %v5478_v59 = vld [vmem:[%s9834_s8 + $0x48] sm:$0xff]  }
 0x1d5   :  { %v321_v62 = vadd.f32 %v5132_v58, %v320_v61  ;;  %v8250_v61 = vunpack.c.h.bf16 %v5477_v51  ;;  %v8343_v51 = vpack.c.bf16 %v436_v46, %v435_v45 }
 0x1d6   :  { %v340_v63 = vmax.f32 %v326_v60, 0.0  ;;  %v5487_v60 = vld [vmem:[%s9835_s0 + $0x48] sm:$0xff]  }
 0x1d7   :  { %v339_v0 = vmax.f32 %v321_v62, 0.0  ;;  %v6103_v1 = vpop.f32.mrb[2].mxu1  ;;  %9856 = vst [vmem:[#allocation25_spill] sm:$0xff] %v8250_v61  ;;  %v8252_v62 = vunpack.c.h.bf16 %v5486_v52  ;;  %9866 = vst [vmem:[#allocation35_spill] sm:$0xff] %v8343_v51 }
 0x1d8   :  { %v336_v2 = vadd.f32 %v6103_v1, %v5132_v58  ;;  %v330_v3 = vpop.f32.mrb[3].mxu1  ;;  %v8266_v1 = vunpack.c.h.bf16 %v5478_v59 }
 0x1d9   :  { %v7066_v4 = vpack.c.bf16 %v340_v63, %v339_v0  ;;  %v331_v5 = vadd.f32 %v5132_v58, %v330_v3  ;;  %v8238_v58 = vunpack.c.l.bf16 %v5486_v52  ;;  %9857 = vst [vmem:[#allocation26_spill] sm:$0xff] %v8252_v62  ;;  %v8258_v63 = vunpack.c.l.bf16 %v5478_v59  ;;  %v423_v3 = vld [vmem:[%s9719_s11] sm:$0xff]  ;;  %v437_v52 = vld [vmem:[%s9719_s11 + $0x70] sm:$0xff]  ;;  %v438_v59 = vld [vmem:[%s9719_s11 + $0x78] sm:$0xff] }
 0x1da   :  { %v342_v6 = vmax.f32 %v336_v2, 0.0  ;;  %v8260_v0 = vunpack.c.l.bf16 %v5487_v60  ;;  %9860 = vst [vmem:[#allocation29_spill] sm:$0xff] %v8266_v1  ;;  %v8268_v2 = vunpack.c.h.bf16 %v5487_v60  ;;  %v8354_v60 = vpack.c.bf16 %v438_v59, %v437_v52 }
 0x1db   :  { %v341_v7 = vmax.f32 %v331_v5, 0.0  ;;  %7067 = vmatprep.subr.bf16.mxu0 %v7066_v4  ;;  %7075 = vmatprep.subr.bf16.mxu1 %v7066_v4  ;;  %9855 = vst [vmem:[#allocation24_spill] sm:$0xff] %v8238_v58  ;;  %9858 = vst [vmem:[#allocation27_spill] sm:$0xff] %v8258_v63  ;;  %v425_v5 = vld [vmem:[%s9719_s11 + $0x10] sm:$0xff] }
 0x1dc   :  { %7069 = vmatpush3.bf16.msra.mxu0 %v7066_v4  ;;  %7077 = vmatpush3.bf16.msra.mxu1 %v7066_v4  ;;  %9859 = vst [vmem:[#allocation28_spill] sm:$0xff] %v8260_v0  ;;  %9861 = vst [vmem:[#allocation30_spill] sm:$0xff] %v8268_v2  ;;  %v424_v4 = vld [vmem:[%s9719_s11 + $0x8] sm:$0xff] }
 0x1dd   :  { %v7070_v8 = vpack.c.bf16 %v342_v6, %v341_v7  ;;  %v8287_v6 = vpack.c.bf16 %v424_v4, %v423_v3  ;;  %v426_v7 = vld [vmem:[%s9719_s11 + $0x18] sm:$0xff]  ;;  %9867 = vst [vmem:[#allocation36_spill] sm:$0xff] %v8354_v60  ;;  %s7885_s11 = smov 64  }
 0x1df   :  { %7071 = vmatprep.subr.bf16.mxu0 %v7070_v8  ;;  %7079 = vmatprep.subr.bf16.mxu1 %v7070_v8 }
 0x1e0   :  { %7073 = vmatpush3.bf16.msra.mxu0 %v7070_v8  ;;  %7081 = vmatpush3.bf16.msra.mxu1 %v7070_v8  ;;  %v8292_v8 = vpack.c.bf16 %v426_v7, %v425_v5 }
 0x1e1   :  { %7083 = vmatprep.subr.bf16.mxu0 %v8287_v6 }
 0x1e3   :  { %6113 = vmatmul.mubr.msk.f32.vlgmr.msra.gmra.mrb[4].mxu0 %vm469_vm9, %v8078_v11  ;;  %6151 = vmatmul.mubr.msk.f32.vlgmr.msra.gmra.mrb[4].mxu1 %vm469_vm9, %v8080_v12 }
 0x1e4   :  { %6115 = vmatprep.mubr.msk.f32.mxu0 %vm469_vm9, %v8082_v13  ;;  %6153 = vmatprep.mubr.msk.f32.mxu1 %vm469_vm9, %v8084_v14 }
 0x1e5   :  { %7085 = vmatpush3.bf16.msra.mxu0 %v8287_v6 }
 0x1e6   :  { %7087 = vmatprep.subr.bf16.mxu0 %v8292_v8 }
 0x1e7   :  { %6116 = vmatmul.mubr.msk.f32.gmra.mrb[6].mxu0 %vm469_vm9, %v8096_v17  ;;  %6154 = vmatmul.mubr.msk.f32.gmra.mrb[6].mxu1 %vm469_vm9, %v8098_v18 }
 0x1e8   :  { %6118 = vmatprep.mubr.msk.f32.mxu0 %vm469_vm9, %v8104_v19  ;;  %6156 = vmatprep.mubr.msk.f32.mxu1 %vm469_vm9, %v8106_v20 }
 0x1e9   :  { %7089 = vmatpush3.bf16.msra.mxu0 %v8292_v8 }
 0x1ea   :  { %7091 = vmatprep.subr.bf16.mxu0 %v8303_v15 }
 0x1eb   :  { %6119 = vmatmul.mubr.msk.f32.gmra.mrb[8].mxu0 %vm469_vm9, %v8118_v23  ;;  %6157 = vmatmul.mubr.msk.f32.gmra.mrb[8].mxu1 %vm469_vm9, %v8120_v24 }
 0x1ec   :  { %6121 = vmatprep.mubr.msk.f32.mxu0 %vm469_vm9, %v8126_v25  ;;  %6159 = vmatprep.mubr.msk.f32.mxu1 %vm469_vm9, %v8128_v26 }
 0x1ed   :  { %7093 = vmatpush3.bf16.msra.mxu0 %v8303_v15 }
 0x1ee   :  { %7095 = vmatprep.subr.bf16.mxu0 %v8313_v22 }
 0x1ef   :  { %6122 = vmatmul.mubr.msk.f32.gmra.mrb[10].mxu0 %vm469_vm9, %v8140_v29  ;;  %6160 = vmatmul.mubr.msk.f32.gmra.mrb[10].mxu1 %vm469_vm9, %v8142_v30 }
 0x1f0   :  { %6124 = vmatprep.mubr.msk.f32.mxu0 %vm469_vm9, %v8148_v31  ;;  %6162 = vmatprep.mubr.msk.f32.mxu1 %vm469_vm9, %v8150_v32 }
 0x1f1   :  { %7097 = vmatpush3.bf16.msra.mxu0 %v8313_v22 }
 0x1f2   :  { %7099 = vmatprep.subr.bf16.mxu0 %v8323_v33 }
 0x1f3   :  { %6125 = vmatmul.mubr.msk.f32.gmra.mrb[12].mxu0 %vm469_vm9, %v8162_v35  ;;  %6163 = vmatmul.mubr.msk.f32.gmra.mrb[12].mxu1 %vm469_vm9, %v8164_v36 }
 0x1f4   :  { %6127 = vmatprep.mubr.msk.f32.mxu0 %vm469_vm9, %v8170_v37  ;;  %6165 = vmatprep.mubr.msk.f32.mxu1 %vm469_vm9, %v8172_v38 }
 0x1f5   :  { %7101 = vmatpush3.bf16.msra.mxu0 %v8323_v33 }
 0x1f6   :  { %7103 = vmatprep.subr.bf16.mxu0 %v8333_v40 }
 0x1f7   :  { %6128 = vmatmul.mubr.msk.f32.gmra.mrb[14].mxu0 %vm469_vm9, %v8184_v41  ;;  %6166 = vmatmul.mubr.msk.f32.gmra.mrb[14].mxu1 %vm469_vm9, %v8186_v42  ;;  %v444_v41 = vld [vmem:[%s9721_s13 + $0x28] sm:$0xff] }
 0x1f8   :  { %6130 = vmatprep.mubr.msk.f32.mxu0 %vm469_vm9, %v8192_v43  ;;  %6168 = vmatprep.mubr.msk.f32.mxu1 %vm469_vm9, %v8194_v44  ;;  %v443_v43 = vld [vmem:[%s9721_s13 + $0x20] sm:$0xff] }
 0x1f9   :  { %7105 = vmatpush3.bf16.msra.mxu0 %v8333_v40 }
 0x1fa   :  { %7107 = vmatprep.subr.bf16.mxu0 %v8343_v51 }
 0x1fb   :  { %6131 = vmatmul.mubr.msk.f32.gmra.mrb[16].mxu0 %vm469_vm9, %v8206_v47  ;;  %6169 = vmatmul.mubr.msk.f32.gmra.mrb[16].mxu1 %vm469_vm9, %v8208_v48 }
 0x1fc   :  { %6133 = vmatprep.mubr.msk.f32.mxu0 %vm469_vm9, %v8214_v49  ;;  %6171 = vmatprep.mubr.msk.f32.mxu1 %vm469_vm9, %v8216_v50 }
 0x1fd   :  { %7109 = vmatpush3.bf16.msra.mxu0 %v8343_v51 }
 0x1fe   :  { %7111 = vmatprep.subr.bf16.mxu0 %v8354_v60 }
 0x1ff   :  { %6134 = vmatmul.mubr.msk.f32.gmra.mrb[18].mxu0 %vm469_vm9, %v8228_v53  ;;  %6172 = vmatmul.mubr.msk.f32.gmra.mrb[18].mxu1 %vm469_vm9, %v8230_v54 }
 0x200   :  { %6136 = vmatprep.mubr.msk.f32.mxu0 %vm469_vm9, %v8236_v55  ;;  %6174 = vmatprep.mubr.msk.f32.mxu1 %vm469_vm9, %v8238_v58 }
 0x201   :  { %7113 = vmatpush3.bf16.msra.mxu0 %v8354_v60 }
 0x203   :  { %6137 = vmatmul.mubr.msk.f32.gmra.mrb[20].mxu0 %vm469_vm9, %v8250_v61  ;;  %6175 = vmatmul.mubr.msk.f32.gmra.mrb[20].mxu1 %vm469_vm9, %v8252_v62 }
 0x204   :  { %6139 = vmatprep.mubr.msk.f32.mxu0 %vm469_vm9, %v8258_v63  ;;  %6177 = vmatprep.mubr.msk.f32.mxu1 %vm469_vm9, %v8260_v0 }
 0x207   :  { %6140 = vmatmul.mubr.msk.f32.gmra.mrb[22].mxu0 %vm469_vm9, %v8266_v1  ;;  %6178 = vmatmul.mubr.msk.f32.gmra.mrb[22].mxu1 %vm469_vm9, %v8268_v2 }
 0x2b6   :  { %v6114_v3 = vpop.f32.mrb[4].mxu0  ;;  %v8358_v4 = vpop.f32.mrb[4].mxu1 }
 0x2b7   :  { %v921_v5 = vsub.f32 %v6114_v3, %v8358_v4  ;;  %v596_v7 = vpop.f32.mrb[5].mxu0  ;;  %v8361_v9 = vpop.f32.mrb[5].mxu1 }
 0x2b8   :  { %v920_v10 = vsub.f32 %v596_v7, %v8361_v9 }
 0x2ba   :  { %v6117_v16 = vpop.f32.mrb[6].mxu0  ;;  %v8364_v21 = vpop.f32.mrb[6].mxu1  ;;  %v7597_v27 = vpack.i.bf16 %v921_v5, %v920_v10 }
 0x2bb   :  { %v923_v28 = vsub.f32 %v6117_v16, %v8364_v21  ;;  %v606_v34 = vpop.f32.mrb[7].mxu0  ;;  %v8367_v39 = vpop.f32.mrb[7].mxu1 }
 0x2bc   :  { %v922_v45 = vsub.f32 %v606_v34, %v8367_v39  ;;  %7598 = vrot.lane.b32.xlu0 %v7597_v27, %s7885_s11 }
 0x2be   :  { %v7602_v46 = vpack.i.bf16 %v923_v28, %v922_v45  ;;  %v6120_v52 = vpop.f32.mrb[8].mxu0  ;;  %v8371_v59 = vpop.f32.mrb[8].mxu1 }
 0x2bf   :  { %v925_v3 = vsub.f32 %v6120_v52, %v8371_v59  ;;  %v616_v7 = vpop.f32.mrb[9].mxu0  ;;  %v8374_v60 = vpop.f32.mrb[9].mxu1 }
 0x2c0   :  { %v924_v5 = vsub.f32 %v616_v7, %v8374_v60  ;;  %7603 = vrot.lane.b32.xlu0 %v7602_v46, %s7885_s11 }
 0x2c2   :  { %v6123_v10 = vpop.f32.mrb[10].mxu0  ;;  %v8378_v16 = vpop.f32.mrb[10].mxu1  ;;  %v7607_v34 = vpack.i.bf16 %v925_v3, %v924_v5 }
 0x2c3   :  { %v927_v1 = vsub.f32 %v6123_v10, %v8378_v16  ;;  %v626_v27 = vpop.f32.mrb[11].mxu0  ;;  %v8381_v28 = vpop.f32.mrb[11].mxu1 }
 0x2c4   :  { %v926_v45 = vsub.f32 %v626_v27, %v8381_v28  ;;  %7608 = vrot.lane.b32.xlu1 %v7607_v34, %s7885_s11 }
 0x2c6   :  { %v7612_v52 = vpack.i.bf16 %v927_v1, %v926_v45  ;;  %v6126_v51 = vpop.f32.mrb[12].mxu0  ;;  %v8385_v63 = vpop.f32.mrb[12].mxu1 }
 0x2c7   :  { %v929_v7 = vsub.f32 %v6126_v51, %v8385_v63  ;;  %v636_v46 = vpop.f32.mrb[13].mxu0  ;;  %v8388_v61 = vpop.f32.mrb[13].mxu1 }
 0x2c8   :  { %v928_v3 = vsub.f32 %v636_v46, %v8388_v61  ;;  %7613 = vrot.lane.b32.xlu1 %v7612_v52, %s7885_s11 }
 0x2ca   :  { %v7617_v5 = vpack.i.bf16 %v929_v7, %v928_v3  ;;  %v6129_v10 = vpop.f32.mrb[14].mxu0  ;;  %v8392_v40 = vpop.f32.mrb[14].mxu1 }
 0x2cb   :  { %v931_v27 = vsub.f32 %v6129_v10, %v8392_v40  ;;  %v646_v34 = vpop.f32.mrb[15].mxu0  ;;  %v8395_v1 = vpop.f32.mrb[15].mxu1 }
 0x2cc   :  { %v930_v45 = vsub.f32 %v646_v34, %v8395_v1  ;;  %7618 = vrot.lane.b32.xlu0 %v7617_v5, %s7885_s11 }
 0x2ce   :  { %v7622_v51 = vpack.i.bf16 %v931_v27, %v930_v45  ;;  %v6132_v55 = vpop.f32.mrb[16].mxu0  ;;  %v8399_v53 = vpop.f32.mrb[16].mxu1 }
 0x2cf   :  { %v933_v46 = vsub.f32 %v6132_v55, %v8399_v53  ;;  %v656_v52 = vpop.f32.mrb[17].mxu0  ;;  %v8402_v7 = vpop.f32.mrb[17].mxu1 }
 0x2d0   :  { %v932_v3 = vsub.f32 %v656_v52, %v8402_v7  ;;  %7623 = vrot.lane.b32.xlu1 %v7622_v51, %s7885_s11 }
 0x2d2   :  { %v7627_v10 = vpack.i.bf16 %v933_v46, %v932_v3  ;;  %v6135_v33 = vpop.f32.mrb[18].mxu0  ;;  %v8406_v49 = vpop.f32.mrb[18].mxu1  ;;  %v440_v3 = vld [vmem:[%s9721_s13 + $0x8] sm:$0xff] }
 0x2d3   :  { %v935_v34 = vsub.f32 %v6135_v33, %v8406_v49  ;;  %v666_v5 = vpop.f32.mrb[19].mxu0  ;;  %v8409_v27 = vpop.f32.mrb[19].mxu1  ;;  %v439_v33 = vld [vmem:[%s9721_s13] sm:$0xff] }
 0x2d4   :  { %v934_v45 = vsub.f32 %v666_v5, %v8409_v27  ;;  %7628 = vrot.lane.b32.xlu0 %v7627_v10, %s7885_s11  ;;  %v441_v10 = vld [vmem:[%s9721_s13 + $0x10] sm:$0xff]  ;;  %v442_v5 = vld [vmem:[%s9721_s13 + $0x18] sm:$0xff] }
 0x2d6   :  { %v7632_v55 = vpack.i.bf16 %v935_v34, %v934_v45  ;;  %v6138_v47 = vpop.f32.mrb[20].mxu0  ;;  %v8413_v22 = vpop.f32.mrb[20].mxu1  ;;  %v8434_v45 = vpack.c.bf16 %v442_v5, %v441_v10  ;;  %v8452_v5 = vpack.c.bf16 %v444_v41, %v443_v43  ;;  %v447_v41 = vld [vmem:[%s9721_s13 + $0x40] sm:$0xff]  ;;  %v448_v43 = vld [vmem:[%s9721_s13 + $0x48] sm:$0xff] }
 0x2d7   :  { %v937_v52 = vsub.f32 %v6138_v47, %v8413_v22  ;;  %v676_v51 = vpop.f32.mrb[21].mxu0  ;;  %v8416_v46 = vpop.f32.mrb[21].mxu1  ;;  %v8429_v47 = vpack.c.bf16 %v440_v3, %v439_v33 }
 0x2d8   :  { %v936_v34 = vsub.f32 %v676_v51, %v8416_v46  ;;  %7633 = vrot.lane.b32.xlu1 %v7632_v55, %s7885_s11 }
 0x2d9   :  { %7115 = vmatprep.subr.bf16.mxu1 %v8429_v47 }
 0x2da   :  { %v7637_v15 = vpack.i.bf16 %v937_v52, %v936_v34  ;;  %v6141_v51 = vpop.f32.mrb[22].mxu0  ;;  %v8442_v37 = vpop.f32.mrb[22].mxu1  ;;  %7117 = vmatpush3.bf16.msra.mxu1 %v8429_v47  ;;  %v445_v52 = vld [vmem:[%s9721_s13 + $0x30] sm:$0xff]  ;;  %v446_v34 = vld [vmem:[%s9721_s13 + $0x38] sm:$0xff] }
 0x2db   :  { %v939_v55 = vsub.f32 %v6141_v51, %v8442_v37  ;;  %v686_v33 = vpop.f32.mrb[23].mxu0  ;;  %v8446_v3 = vpop.f32.mrb[23].mxu1  ;;  %7119 = vmatprep.subr.bf16.mxu1 %v8434_v45 }
 0x2dc   :  { %v938_v10 = vsub.f32 %v686_v33, %v8446_v3  ;;  %7638 = vrot.lane.b32.xlu0 %v7637_v15, %s7885_s11  ;;  %v8463_v15 = vpack.c.bf16 %v446_v34, %v445_v52  ;;  %v449_v33 = vld [vmem:[%s9721_s13 + $0x50] sm:$0xff]  ;;  %v451_v34 = vld [vmem:[%s9721_s13 + $0x60] sm:$0xff] }
 0x2de   :  { %v7642_v51 = vpack.i.bf16 %v939_v55, %v938_v10  ;;  %7121 = vmatpush3.bf16.msra.mxu1 %v8434_v45  ;;  %9868 = vst [vmem:[#allocation37_spill] sm:$0xff] %v8463_v15  ;;  %v8473_v55 = vpack.c.bf16 %v448_v43, %v447_v41  ;;  %v450_v10 = vld [vmem:[%s9721_s13 + $0x58] sm:$0xff] }
 0x2df   :  { %7123 = vmatprep.subr.bf16.mxu1 %v8452_v5  ;;  %v8483_v52 = vpack.c.bf16 %v450_v10, %v449_v33 }
 0x2e0   :  { %7643 = vrot.lane.b32.xlu1 %v7642_v51, %s7885_s11  ;;  %9869 = vst [vmem:[#allocation38_spill] sm:$0xff] %v8473_v55  ;;  %v452_v51 = vld [vmem:[%s9721_s13 + $0x68] sm:$0xff] }
 0x2e1   :  { %9870 = vst [vmem:[#allocation39_spill] sm:$0xff] %v8483_v52  ;;  %v8493_v41 = vpack.c.bf16 %v452_v51, %v451_v34 }
 0x2e2   :  { %7125 = vmatpush3.bf16.msra.mxu1 %v8452_v5 }
 0x2e3   :  { %7127 = vmatprep.subr.bf16.mxu1 %v8463_v15  ;;  %9871 = vst [vmem:[#allocation40_spill] sm:$0xff] %v8493_v41 }
 0x2e6   :  { %7129 = vmatpush3.bf16.msra.mxu1 %v8463_v15 }
 0x2e7   :  { %7131 = vmatprep.subr.bf16.mxu1 %v8473_v55 }
 0x2ea   :  { %7133 = vmatpush3.bf16.msra.mxu1 %v8473_v55 }
 0x2eb   :  { %7135 = vmatprep.subr.bf16.mxu1 %v8483_v52 }
 0x2ee   :  { %7137 = vmatpush3.bf16.msra.mxu1 %v8483_v52 }
 0x2ef   :  { %7139 = vmatprep.subr.bf16.mxu1 %v8493_v41 }
 0x2f2   :  { %7141 = vmatpush3.bf16.msra.mxu1 %v8493_v41 }
 0x2fa   :  { %1442 = vxpose.xlu0.b32.start [1/4] (short) (narrow) %v8238_v58, 32 }
 0x2fe   :  { %1443 = vxpose.xlu0.b32.cont [2/4] (short) (narrow) %v8252_v62, 32 }
 0x302   :  { %1444 = vxpose.xlu0.b32.cont [3/4] (short) (narrow) %v8260_v0, 32 }
 0x306   :  { %1445 = vxpose.xlu0.b32.end [4/4] (short) (narrow) %v8268_v2, 32 }
 0x309   :  { %1410 = vxpose.xlu1.b32.start [1/16] (narrow) %v8063_v57, 32 }
 0x30d   :  { %1411 = vxpose.xlu1.b32.cont [2/16] (narrow) %v8080_v12, 32 }
 0x311   :  { %1412 = vxpose.xlu1.b32.cont [3/16] (narrow) %v8084_v14, 32 }
 0x315   :  { %1413 = vxpose.xlu1.b32.cont [4/16] (narrow) %v8098_v18, 32 }
 0x319   :  { %1414 = vxpose.xlu1.b32.cont [5/16] (narrow) %v8106_v20, 32 }
 0x31d   :  { %1415 = vxpose.xlu1.b32.cont [6/16] (narrow) %v8120_v24, 32 }
 0x321   :  { %1416 = vxpose.xlu1.b32.cont [7/16] (narrow) %v8128_v26, 32 }
 0x325   :  { %1417 = vxpose.xlu1.b32.cont [8/16] (narrow) %v8142_v30, 32 }
 0x329   :  { %1418 = vxpose.xlu1.b32.cont [9/16] (narrow) %v8150_v32, 32 }
 0x32d   :  { %1419 = vxpose.xlu1.b32.cont [10/16] (narrow) %v8164_v36, 32 }
 0x32e   :  { %v7599_v43 = vpop.permute.xlu0 %7598 }
 0x32f   :  { %v7601_v33 = vunpack.i.h.bf16 %v7599_v43  ;;  %v7600_v10 = vunpack.i.l.bf16 %v7599_v43 }
 0x331   :  { %v1020_v34 = vsel %vm241_vm4, %v8361_v9, %v7600_v10  ;;  %v1021_v51 = vsel %vm241_vm4, %v8358_v4, %v7601_v33  ;;  %1420 = vxpose.xlu1.b32.cont [11/16] (narrow) %v8172_v38, 32 }
 0x332   :  { %6212 = vmatprep.mubr.f32.mxu0 %v1020_v34  ;;  %v7604_v2 = vpop.permute.xlu0 %7603 }
 0x333   :  { %v7606_v0 = vunpack.i.h.bf16 %v7604_v2  ;;  %v7605_v62 = vunpack.i.l.bf16 %v7604_v2  ;;  %6213 = vmatmul.mubr.f32.vlgmr.msra.gmra.mrb[24].mxu0 %v1021_v51 }
 0x335   :  { %v1022_v58 = vsel %vm241_vm4, %v8367_v39, %v7605_v62  ;;  %v1023_v41 = vsel %vm241_vm4, %v8364_v21, %v7606_v0  ;;  %1421 = vxpose.xlu1.b32.cont [12/16] (narrow) %v8186_v42, 32 }
 0x336   :  { %6215 = vmatprep.mubr.f32.mxu0 %v1022_v58  ;;  %v7609_v9 = vpop.permute.xlu1 %7608 }
 0x337   :  { %v7611_v43 = vunpack.i.h.bf16 %v7609_v9  ;;  %v7610_v10 = vunpack.i.l.bf16 %v7609_v9  ;;  %6216 = vmatmul.mubr.f32.gmra.mrb[26].mxu0 %v1023_v41 }
 0x339   :  { %v1024_v4 = vsel %vm241_vm4, %v8374_v60, %v7610_v10  ;;  %v1025_v2 = vsel %vm241_vm4, %v8371_v59, %v7611_v43  ;;  %1422 = vxpose.xlu1.b32.cont [13/16] (narrow) %v8194_v44, 32 }
 0x33a   :  { %6218 = vmatprep.mubr.f32.mxu0 %v1024_v4  ;;  %v7614_v62 = vpop.permute.xlu1 %7613 }
 0x33b   :  { %v7616_v39 = vunpack.i.h.bf16 %v7614_v62  ;;  %v7615_v33 = vunpack.i.l.bf16 %v7614_v62  ;;  %6219 = vmatmul.mubr.f32.gmra.mrb[28].mxu0 %v1025_v2 }
 0x33d   :  { %v1026_v58 = vsel %vm241_vm4, %v8381_v28, %v7615_v33  ;;  %v1027_v0 = vsel %vm241_vm4, %v8378_v16, %v7616_v39  ;;  %1423 = vxpose.xlu1.b32.cont [14/16] (narrow) %v8208_v48, 32 }
 0x33e   :  { %6221 = vmatprep.mubr.f32.mxu0 %v1026_v58  ;;  %v7619_v60 = vpop.permute.xlu0 %7618 }
 0x33f   :  { %v7621_v21 = vunpack.i.h.bf16 %v7619_v60  ;;  %v7620_v41 = vunpack.i.l.bf16 %v7619_v60  ;;  %6222 = vmatmul.mubr.f32.gmra.mrb[30].mxu0 %v1027_v0 }
 0x341   :  { %v1028_v59 = vsel %vm241_vm4, %v8388_v61, %v7620_v41  ;;  %v1029_v34 = vsel %vm241_vm4, %v8385_v63, %v7621_v21  ;;  %1424 = vxpose.xlu1.b32.cont [15/16] (narrow) %v8216_v50, 32 }
 0x342   :  { %6224 = vmatprep.mubr.f32.mxu0 %v1028_v59  ;;  %v7624_v28 = vpop.permute.xlu1 %7623 }
 0x343   :  { %v7626_v51 = vunpack.i.h.bf16 %v7624_v28  ;;  %v7625_v9 = vunpack.i.l.bf16 %v7624_v28  ;;  %6225 = vmatmul.mubr.f32.gmra.mrb[32].mxu0 %v1029_v34 }
 0x345   :  { %v1030_v16 = vsel %vm241_vm4, %v8395_v1, %v7625_v9  ;;  %v1031_v43 = vsel %vm241_vm4, %v8392_v40, %v7626_v51  ;;  %1425 = vxpose.xlu1.b32.end [16/16] (narrow) %v8230_v54, 32 }
 0x346   :  { %6227 = vmatprep.mubr.f32.mxu0 %v1030_v16  ;;  %v7629_v61 = vpop.permute.xlu0 %7628 }
 0x347   :  { %v7631_v10 = vunpack.i.h.bf16 %v7629_v61  ;;  %v7630_v4 = vunpack.i.l.bf16 %v7629_v61  ;;  %6228 = vmatmul.mubr.f32.gmra.mrb[34].mxu0 %v1031_v43 }
 0x349   :  { %v1032_v63 = vsel %vm241_vm4, %v8402_v7, %v7630_v4  ;;  %v1033_v2 = vsel %vm241_vm4, %v8399_v53, %v7631_v10 }
 0x34a   :  { %6230 = vmatprep.mubr.f32.mxu0 %v1032_v63  ;;  %v7634_v62 = vpop.permute.xlu1 %7633 }
 0x34b   :  { %v7636_v39 = vunpack.i.h.bf16 %v7634_v62  ;;  %v7635_v1 = vunpack.i.l.bf16 %v7634_v62  ;;  %6231 = vmatmul.mubr.f32.gmra.mrb[36].mxu0 %v1033_v2 }
 0x34d   :  { %v1034_v40 = vsel %vm241_vm4, %v8409_v27, %v7635_v1  ;;  %v1035_v33 = vsel %vm241_vm4, %v8406_v49, %v7636_v39 }
 0x34e   :  { %6233 = vmatprep.mubr.f32.mxu0 %v1034_v40  ;;  %v7639_v58 = vpop.permute.xlu0 %7638 }
 0x34f   :  { %v7641_v0 = vunpack.i.h.bf16 %v7639_v58  ;;  %v7640_v60 = vunpack.i.l.bf16 %v7639_v58  ;;  %6234 = vmatmul.mubr.f32.gmra.mrb[38].mxu0 %v1035_v33 }
 0x351   :  { %v1036_v7 = vsel %vm241_vm4, %v8416_v46, %v7640_v60  ;;  %v1037_v53 = vsel %vm241_vm4, %v8413_v22, %v7641_v0  ;;  %v453_v46 = vld [vmem:[%s9721_s13 + $0x70] sm:$0xff]  ;;  %v454_v22 = vld [vmem:[%s9721_s13 + $0x78] sm:$0xff] }
 0x352   :  { %6236 = vmatprep.mubr.f32.mxu0 %v1036_v7  ;;  %v7644_v21 = vpop.permute.xlu1 %7643  ;;  %v8564_v34 = vpack.c.bf16 %v454_v22, %v453_v46 }
 0x353   :  { %v7646_v41 = vunpack.i.h.bf16 %v7644_v21  ;;  %v7645_v59 = vunpack.i.l.bf16 %v7644_v21  ;;  %6237 = vmatmul.mubr.f32.gmra.mrb[40].mxu0 %v1037_v53 }
 0x354   :  { %9872 = vst [vmem:[#allocation41_spill] sm:$0xff] %v8564_v34  ;;  %7143 = vmatprep.subr.bf16.mxu1 %v8564_v34 }
 0x355   :  { %v1038_v27 = vsel %vm241_vm4, %v8446_v3, %v7645_v59  ;;  %v1039_v49 = vsel %vm241_vm4, %v8442_v37, %v7646_v41  ;;  %7145 = vmatpush3.bf16.msra.mxu1 %v8564_v34  ;;  %v8571_v37 = vld [vmem:[%s9720_s12] ss:$0 sm:$0xff] }
 0x356   :  { %6239 = vmatprep.mubr.f32.mxu0 %v1038_v27 }
 0x357   :  { %6240 = vmatmul.mubr.f32.gmra.mrb[42].mxu0 %v1039_v49 }
 0x406   :  { %v6214_v3 = vpop.f32.mrb[24].mxu0 }
 0x407   :  { %v1112_v28 = vadd.f32 %v6214_v3, %v8571_v37  ;;  %v1106_v51 = vpop.f32.mrb[25].mxu0 }
 0x408   :  { %v1107_v9 = vadd.f32 %v8571_v37, %v1106_v51 }
 0x409   :  { %v1206_v61 = vmax.f32 %v1112_v28, 0.0 }
 0x40a   :  { %v1205_v16 = vmax.f32 %v1107_v9, 0.0  ;;  %v6217_v43 = vpop.f32.mrb[26].mxu0 }
 0x40b   :  { %v1122_v10 = vadd.f32 %v6217_v43, %v8571_v37  ;;  %v1116_v4 = vpop.f32.mrb[27].mxu0 }
 0x40c   :  { %v1117_v63 = vadd.f32 %v8571_v37, %v1116_v4  ;;  %6274 = vmatprep.mubr.f32.mxu1 %v1205_v16 }
 0x40d   :  { %6275 = vmatmul.mubr.f32.vlgmr.msra.gmra.mrb[24].mxu1 %v1206_v61  ;;  %v1208_v39 = vmax.f32 %v1122_v10, 0.0 }
 0x40e   :  { %v1207_v2 = vmax.f32 %v1117_v63, 0.0  ;;  %v6220_v62 = vpop.f32.mrb[28].mxu0 }
 0x40f   :  { %v1132_v1 = vadd.f32 %v6220_v62, %v8571_v37  ;;  %v1126_v40 = vpop.f32.mrb[29].mxu0 }
 0x410   :  { %v1127_v33 = vadd.f32 %v8571_v37, %v1126_v40  ;;  %6277 = vmatprep.mubr.f32.mxu1 %v1207_v2 }
 0x411   :  { %6278 = vmatmul.mubr.f32.gmra.mrb[26].mxu1 %v1208_v39  ;;  %v1210_v60 = vmax.f32 %v1132_v1, 0.0 }
 0x412   :  { %v1209_v58 = vmax.f32 %v1127_v33, 0.0  ;;  %v6223_v0 = vpop.f32.mrb[30].mxu0 }
 0x413   :  { %v1142_v7 = vadd.f32 %v6223_v0, %v8571_v37  ;;  %v1136_v53 = vpop.f32.mrb[31].mxu0 }
 0x414   :  { %v1137_v21 = vadd.f32 %v8571_v37, %v1136_v53  ;;  %6280 = vmatprep.mubr.f32.mxu1 %v1209_v58 }
 0x415   :  { %6281 = vmatmul.mubr.f32.gmra.mrb[28].mxu1 %v1210_v60  ;;  %v1212_v27 = vmax.f32 %v1142_v7, 0.0 }
 0x416   :  { %v1211_v41 = vmax.f32 %v1137_v21, 0.0  ;;  %v6226_v59 = vpop.f32.mrb[32].mxu0 }
 0x417   :  { %v1152_v49 = vadd.f32 %v6226_v59, %v8571_v37  ;;  %v1146_v46 = vpop.f32.mrb[33].mxu0 }
 0x418   :  { %v1147_v22 = vadd.f32 %v8571_v37, %v1146_v46  ;;  %6283 = vmatprep.mubr.f32.mxu1 %v1211_v41 }
 0x419   :  { %6284 = vmatmul.mubr.f32.gmra.mrb[30].mxu1 %v1212_v27  ;;  %v1214_v51 = vmax.f32 %v1152_v49, 0.0 }
 0x41a   :  { %v1213_v3 = vmax.f32 %v1147_v22, 0.0  ;;  %v6229_v28 = vpop.f32.mrb[34].mxu0 }
 0x41b   :  { %v1162_v9 = vadd.f32 %v6229_v28, %v8571_v37  ;;  %v1156_v16 = vpop.f32.mrb[35].mxu0 }
 0x41c   :  { %v1157_v43 = vadd.f32 %v8571_v37, %v1156_v16  ;;  %6286 = vmatprep.mubr.f32.mxu1 %v1213_v3  ;;  %v9778_v16 = vmov 0.0|0.0  }
 0x41d   :  { %6287 = vmatmul.mubr.f32.gmra.mrb[32].mxu1 %v1214_v51  ;;  %v1216_v4 = vmax.f32 %v1162_v9, 0.0  ;;  %7146 = vmatprep.subr.bf16.mxu0 %v9778_v16 }
 0x41e   :  { %v1215_v61 = vmax.f32 %v1157_v43, 0.0  ;;  %v6232_v10 = vpop.f32.mrb[36].mxu0  ;;  %v8596_v43 = vpop.trf.xlu0 }
 0x41f   :  { %v1172_v63 = vadd.f32 %v6232_v10, %v8571_v37  ;;  %v1166_v2 = vpop.f32.mrb[37].mxu0  ;;  %5179 = vmatprep.mubr.msk.f32.mxu0 %vm469_vm9, %v8596_v43 }
 0x420   :  { %v1167_v62 = vadd.f32 %v8571_v37, %v1166_v2  ;;  %6289 = vmatprep.mubr.f32.mxu1 %v1215_v61  ;;  %v8603_v61 = vld [vmem:[%s9722_s14] ss:$0 sm:$0xff] }
 0x421   :  { %6290 = vmatmul.mubr.f32.gmra.mrb[34].mxu1 %v1216_v4  ;;  %v1218_v40 = vmax.f32 %v1172_v63, 0.0 }
 0x422   :  { %v1217_v39 = vmax.f32 %v1167_v62, 0.0  ;;  %v6235_v1 = vpop.f32.mrb[38].mxu0 }
 0x423   :  { %v1182_v33 = vadd.f32 %v6235_v1, %v8571_v37  ;;  %v1176_v58 = vpop.f32.mrb[39].mxu0 }
 0x424   :  { %v1177_v0 = vadd.f32 %v8571_v37, %v1176_v58  ;;  %6292 = vmatprep.mubr.f32.mxu1 %v1217_v39 }
 0x425   :  { %6293 = vmatmul.mubr.f32.gmra.mrb[36].mxu1 %v1218_v40  ;;  %v1220_v53 = vmax.f32 %v1182_v33, 0.0 }
 0x426   :  { %v1219_v60 = vmax.f32 %v1177_v0, 0.0  ;;  %v6238_v7 = vpop.f32.mrb[40].mxu0 }
 0x427   :  { %v1192_v21 = vadd.f32 %v6238_v7, %v8571_v37  ;;  %v1186_v41 = vpop.f32.mrb[41].mxu0 }
 0x428   :  { %v1187_v59 = vadd.f32 %v8571_v37, %v1186_v41  ;;  %6295 = vmatprep.mubr.f32.mxu1 %v1219_v60 }
 0x429   :  { %6296 = vmatmul.mubr.f32.gmra.mrb[38].mxu1 %v1220_v53  ;;  %v1222_v46 = vmax.f32 %v1192_v21, 0.0 }
 0x42a   :  { %v1221_v27 = vmax.f32 %v1187_v59, 0.0  ;;  %v6241_v49 = vpop.f32.mrb[42].mxu0 }
 0x42b   :  { %v1202_v22 = vadd.f32 %v6241_v49, %v8571_v37  ;;  %v1196_v3 = vpop.f32.mrb[43].mxu0 }
 0x42c   :  { %v1197_v28 = vadd.f32 %v8571_v37, %v1196_v3  ;;  %6298 = vmatprep.mubr.f32.mxu1 %v1221_v27 }
 0x42d   :  { %6299 = vmatmul.mubr.f32.gmra.mrb[40].mxu1 %v1222_v46  ;;  %v1224_v9 = vmax.f32 %v1202_v22, 0.0 }
 0x42e   :  { %v1223_v51 = vmax.f32 %v1197_v28, 0.0 }
 0x430   :  { %6301 = vmatprep.mubr.f32.mxu1 %v1223_v51 }
 0x431   :  { %6302 = vmatmul.mubr.f32.gmra.mrb[42].mxu1 %v1224_v9 }
 0x432   :  { %6318 = vmatprep.mubr.msk.f32.mxu1 %vm469_vm9, %v8104_v19 }
 0x4e0   :  { %v6276_v10 = vpop.f32.mrb[24].mxu1 }
 0x4e1   :  { %v1297_v4 = vadd.f32 %v6276_v10, %v8603_v61  ;;  %v1291_v63 = vpop.f32.mrb[25].mxu1 }
 0x4e2   :  { %v1292_v2 = vadd.f32 %v8603_v61, %v1291_v63 }
 0x4e3   :  { %v1391_v62 = vmax.f32 %v1297_v4, 0.0 }
 0x4e4   :  { %v1390_v39 = vmax.f32 %v1292_v2, 0.0  ;;  %v6279_v1 = vpop.f32.mrb[26].mxu1 }
 0x4e5   :  { %v1307_v40 = vadd.f32 %v6279_v1, %v8603_v61  ;;  %v1301_v33 = vpop.f32.mrb[27].mxu1 }
 0x4e6   :  { %v7147_v58 = vpack.c.bf16 %v1391_v62, %v1390_v39  ;;  %v1302_v0 = vadd.f32 %v8603_v61, %v1301_v33 }
 0x4e7   :  { %v1393_v60 = vmax.f32 %v1307_v40, 0.0 }
 0x4e8   :  { %v1392_v7 = vmax.f32 %v1302_v0, 0.0  ;;  %v6282_v53 = vpop.f32.mrb[28].mxu1  ;;  %7148 = vmatpush1.bf16.msra.mxu0 %v7147_v58 }
 0x4e9   :  { %v1317_v21 = vadd.f32 %v6282_v53, %v8603_v61  ;;  %v1311_v41 = vpop.f32.mrb[29].mxu1  ;;  %7149 = vmatprep.subr.bf16.mxu0 %v9778_v16 }
 0x4ea   :  { %v7150_v59 = vpack.c.bf16 %v1393_v60, %v1392_v7  ;;  %v1312_v27 = vadd.f32 %v8603_v61, %v1311_v41 }
 0x4eb   :  { %v1395_v49 = vmax.f32 %v1317_v21, 0.0 }
 0x4ec   :  { %v1394_v46 = vmax.f32 %v1312_v27, 0.0  ;;  %v6285_v22 = vpop.f32.mrb[30].mxu1  ;;  %7151 = vmatpush1.bf16.msra.mxu0 %v7150_v59 }
 0x4ed   :  { %v1327_v3 = vadd.f32 %v6285_v22, %v8603_v61  ;;  %v1321_v28 = vpop.f32.mrb[31].mxu1  ;;  %7152 = vmatprep.subr.bf16.mxu0 %v9778_v16 }
 0x4ee   :  { %v7153_v51 = vpack.c.bf16 %v1395_v49, %v1394_v46  ;;  %v1322_v9 = vadd.f32 %v8603_v61, %v1321_v28 }
 0x4ef   :  { %v1397_v10 = vmax.f32 %v1327_v3, 0.0 }
 0x4f0   :  { %v1396_v4 = vmax.f32 %v1322_v9, 0.0  ;;  %v6288_v63 = vpop.f32.mrb[32].mxu1  ;;  %7154 = vmatpush1.bf16.msra.mxu0 %v7153_v51 }
 0x4f1   :  { %v1337_v2 = vadd.f32 %v6288_v63, %v8603_v61  ;;  %v1331_v62 = vpop.f32.mrb[33].mxu1  ;;  %7155 = vmatprep.subr.bf16.mxu0 %v9778_v16 }
 0x4f2   :  { %v7156_v39 = vpack.c.bf16 %v1397_v10, %v1396_v4  ;;  %v1332_v1 = vadd.f32 %v8603_v61, %v1331_v62 }
 0x4f3   :  { %v1399_v40 = vmax.f32 %v1337_v2, 0.0 }
 0x4f4   :  { %v1398_v33 = vmax.f32 %v1332_v1, 0.0  ;;  %v6291_v58 = vpop.f32.mrb[34].mxu1  ;;  %7157 = vmatpush1.bf16.msra.mxu0 %v7156_v39 }
 0x4f5   :  { %v1347_v0 = vadd.f32 %v6291_v58, %v8603_v61  ;;  %v1341_v60 = vpop.f32.mrb[35].mxu1  ;;  %7158 = vmatprep.subr.bf16.mxu0 %v9778_v16 }
 0x4f6   :  { %v7159_v7 = vpack.c.bf16 %v1399_v40, %v1398_v33  ;;  %v1342_v53 = vadd.f32 %v8603_v61, %v1341_v60 }
 0x4f7   :  { %v1401_v21 = vmax.f32 %v1347_v0, 0.0 }
 0x4f8   :  { %v1400_v41 = vmax.f32 %v1342_v53, 0.0  ;;  %v6294_v59 = vpop.f32.mrb[36].mxu1  ;;  %7160 = vmatpush1.bf16.msra.mxu0 %v7159_v7 }
 0x4f9   :  { %v1357_v27 = vadd.f32 %v6294_v59, %v8603_v61  ;;  %v1351_v49 = vpop.f32.mrb[37].mxu1  ;;  %7161 = vmatprep.subr.bf16.mxu0 %v9778_v16 }
 0x4fa   :  { %v7162_v46 = vpack.c.bf16 %v1401_v21, %v1400_v41  ;;  %v1352_v22 = vadd.f32 %v8603_v61, %v1351_v49 }
 0x4fb   :  { %v1403_v3 = vmax.f32 %v1357_v27, 0.0  ;;  %v8633_v27 = vpop.trf.xlu1 }
 0x4fc   :  { %v1402_v28 = vmax.f32 %v1352_v22, 0.0  ;;  %v6297_v51 = vpop.f32.mrb[38].mxu1  ;;  %7163 = vmatpush1.bf16.msra.mxu0 %v7162_v46  ;;  %v8636_v22 = vpop.trf.xlu0 }
 0x4fd   :  { %v1367_v9 = vadd.f32 %v6297_v51, %v8603_v61  ;;  %v1361_v10 = vpop.f32.mrb[39].mxu1  ;;  %7164 = vmatprep.subr.bf16.mxu0 %v9778_v16 }
 0x4fe   :  { %v7165_v4 = vpack.c.bf16 %v1403_v3, %v1402_v28  ;;  %v1362_v63 = vadd.f32 %v8603_v61, %v1361_v10 }
 0x4ff   :  { %v1405_v2 = vmax.f32 %v1367_v9, 0.0  ;;  %v8638_v28 = vpop.trf.xlu1 }
 0x500   :  { %v1404_v62 = vmax.f32 %v1362_v63, 0.0  ;;  %v6300_v39 = vpop.f32.mrb[40].mxu1  ;;  %7166 = vmatpush1.bf16.msra.mxu0 %v7165_v4  ;;  %v8641_v51 = vpop.trf.xlu0 }
 0x501   :  { %v1377_v1 = vadd.f32 %v6300_v39, %v8603_v61  ;;  %v1371_v40 = vpop.f32.mrb[41].mxu1  ;;  %7167 = vmatprep.subr.bf16.mxu0 %v9778_v16 }
 0x502   :  { %v7168_v33 = vpack.c.bf16 %v1405_v2, %v1404_v62  ;;  %v1372_v58 = vadd.f32 %v8603_v61, %v1371_v40 }
 0x503   :  { %v1407_v0 = vmax.f32 %v1377_v1, 0.0  ;;  %v8645_v9 = vpop.trf.xlu1 }
 0x504   :  { %v1406_v60 = vmax.f32 %v1372_v58, 0.0  ;;  %v6303_v7 = vpop.f32.mrb[42].mxu1  ;;  %7169 = vmatpush1.bf16.msra.mxu0 %v7168_v33  ;;  %v8650_v10 = vpop.trf.xlu0 }
 0x505   :  { %v1387_v53 = vadd.f32 %v6303_v7, %v8603_v61  ;;  %v1381_v21 = vpop.f32.mrb[43].mxu1  ;;  %7170 = vmatprep.subr.bf16.mxu0 %v9778_v16  ;;  %v9873_v7 = vld [vmem:[#allocation11_spill] sm:$0xff] }
 0x506   :  { %v7171_v41 = vpack.c.bf16 %v1407_v0, %v1406_v60  ;;  %v1382_v59 = vadd.f32 %v8603_v61, %v1381_v21  ;;  %v9875_v21 = vld [vmem:[#allocation13_spill] sm:$0xff] }
 0x507   :  { %v1409_v49 = vmax.f32 %v1387_v53, 0.0  ;;  %v8653_v4 = vpop.trf.xlu1  ;;  %v9874_v53 = vld [vmem:[#allocation31_spill] sm:$0xff] }
 0x508   :  { %v1408_v46 = vmax.f32 %v1382_v59, 0.0  ;;  %7172 = vmatpush1.bf16.msra.mxu0 %v7171_v41  ;;  %v9876_v41 = vld [vmem:[#allocation15_spill] sm:$0xff]  ;;  %v9877_v59 = vld [vmem:[#allocation32_spill] sm:$0xff] }
 0x509   :  { %7173 = vmatprep.subr.bf16.mxu0 %v9778_v16 }
 0x50a   :  { %v7174_v3 = vpack.c.bf16 %v1409_v49, %v1408_v46  ;;  %v9878_v49 = vld [vmem:[#allocation17_spill] sm:$0xff]  ;;  %v9879_v46 = vld [vmem:[#allocation19_spill] sm:$0xff] }
 0x50c   :  { %7175 = vmatpush1.bf16.msra.mxu0 %v7174_v3  ;;  %v9880_v3 = vld [vmem:[#allocation33_spill] sm:$0xff] }
 0x50f   :  { %1551 = vmatmul.mubr.f32.vlgmr.msra.gmra.mrb[44].mxu0 %v8633_v27 }
 0x510   :  { %5180 = vmatprep.mubr.msk.f32.mxu0 %vm469_vm9, %v8636_v22 }
 0x513   :  { %1556 = vmatmul.mubr.f32.gmra.mrb[46].mxu0 %v8638_v28 }
 0x514   :  { %5181 = vmatprep.mubr.msk.f32.mxu0 %vm469_vm9, %v8641_v51 }
 0x517   :  { %1561 = vmatmul.mubr.f32.gmra.mrb[48].mxu0 %v8645_v9 }
 0x518   :  { %5182 = vmatprep.mubr.msk.f32.mxu0 %vm469_vm9, %v8650_v10 }
 0x51b   :  { %1566 = vmatmul.mubr.f32.gmra.mrb[50].mxu0 %v8653_v4 }
 0x51c   :  { %6312 = vmatprep.mubr.msk.f32.mxu0 %vm469_vm9, %v8061_v56 }
 0x5e2   :  { %v1552_v63 = vpop.f32.mrb[44].mxu0 }
 0x5e3   :  { %v1554_v2 = vpop.f32.mrb[45].mxu0 }
 0x5e4   :  { %v9882_v2 = vld [vmem:[#allocation23_spill] sm:$0xff] }
 0x5e6   :  { %v1557_v62 = vpop.f32.mrb[46].mxu0 }
 0x5e7   :  { %v7176_v39 = vpack.c.bf16 %v1557_v62, %v1552_v63  ;;  %v1559_v1 = vpop.f32.mrb[47].mxu0  ;;  %v9881_v63 = vld [vmem:[#allocation21_spill] sm:$0xff]  ;;  %v9883_v62 = vld [vmem:[#allocation34_spill] sm:$0xff] }
 0x5e8   :  { %v9885_v1 = vld [vmem:[#allocation27_spill] sm:$0xff] }
 0x5e9   :  { %7177 = vmatprep.subr.bf16.mxu0 %v7176_v39  ;;  %7586 = vmatprep.subr.bf16.mxu1 %v7176_v39 }
 0x5ea   :  { %v1562_v40 = vpop.f32.mrb[48].mxu0  ;;  %7179 = vmatpush3.bf16.msra.mxu0 %v7176_v39  ;;  %7588 = vmatpush3.bf16.msra.mxu1 %v7176_v39 }
 0x5eb   :  { %v1564_v33 = vpop.f32.mrb[49].mxu0 }
 0x5ec   :  { %v9887_v33 = vld [vmem:[#allocation29_spill] sm:$0xff] }
 0x5ee   :  { %v1567_v58 = vpop.f32.mrb[50].mxu0 }
 0x5ef   :  { %v7180_v0 = vpack.c.bf16 %v1567_v58, %v1562_v40  ;;  %v1569_v60 = vpop.f32.mrb[51].mxu0  ;;  %v9886_v40 = vld [vmem:[#allocation35_spill] sm:$0xff]  ;;  %v9888_v58 = vld [vmem:[#allocation36_spill] sm:$0xff] }
 0x5f0   :  { %v9890_v60 = vld [vmem:[#allocation24_spill] sm:$0xff] }
 0x5f1   :  { %7181 = vmatprep.subr.bf16.mxu0 %v7180_v0  ;;  %7587 = vmatprep.subr.bf16.mxu1 %v7180_v0 }
 0x5f2   :  { %7183 = vmatpush3.bf16.msra.mxu0 %v7180_v0  ;;  %7589 = vmatpush3.bf16.msra.mxu1 %v7180_v0 }
 0x5f3   :  { %7185 = vmatprep.subr.bf16.mxu0 %v7176_v39  ;;  %7193 = vmatprep.subr.bf16.mxu1 %v8287_v6 }
 0x5f5   :  { %6313 = vmatmul.mubr.msk.f32.vlgmr.msra.gmra.mrb[52].mxu0 %vm469_vm9, %v8078_v11  ;;  %6319 = vmatmul.mubr.msk.f32.vlgmr.msra.gmra.mrb[44].mxu1 %vm469_vm9, %v8118_v23 }
 0x5f6   :  { %7187 = vmatpush3.bf16.msra.mxu0 %v7176_v39  ;;  %6315 = vmatprep.mubr.msk.f32.mxu0 %vm469_vm9, %v8082_v13  ;;  %v9884_v39 = vld [vmem:[#allocation25_spill] sm:$0xff] }
 0x5f7   :  { %7189 = vmatprep.subr.bf16.mxu0 %v7180_v0  ;;  %6321 = vmatprep.mubr.msk.f32.mxu1 %vm469_vm9, %v8126_v25 }
 0x5f8   :  { %7195 = vmatpush3.bf16.msra.mxu1 %v8287_v6 }
 0x5f9   :  { %6316 = vmatmul.mubr.msk.f32.gmra.mrb[54].mxu0 %vm469_vm9, %v8096_v17  ;;  %6322 = vmatmul.mubr.msk.f32.gmra.mrb[46].mxu1 %vm469_vm9, %v8140_v29 }
 0x5fa   :  { %7191 = vmatpush3.bf16.msra.mxu0 %v7180_v0  ;;  %6350 = vmatprep.mubr.msk.f32.mxu0 %vm469_vm9, %v8063_v57  ;;  %v9889_v0 = vld [vmem:[#allocation40_spill] sm:$0xff] }
 0x5fb   :  { %6324 = vmatprep.mubr.msk.f32.mxu1 %vm469_vm9, %v8148_v31  ;;  %7197 = vmatprep.subr.bf16.mxu1 %v8292_v8 }
 0x5fc   :  { %7199 = vmatpush3.bf16.msra.mxu1 %v8292_v8  ;;  %7225 = vmatprep.subr.bf16.mxu0 %v8429_v47 }
 0x5fd   :  { %6351 = vmatmul.mubr.msk.f32.vlgmr.msra.gmra.mrb[56].mxu0 %vm469_vm9, %v8080_v12  ;;  %6325 = vmatmul.mubr.msk.f32.gmra.mrb[48].mxu1 %vm469_vm9, %v8162_v35 }
 0x5fe   :  { %6353 = vmatprep.mubr.msk.f32.mxu0 %vm469_vm9, %v8084_v14  ;;  %6327 = vmatprep.mubr.msk.f32.mxu1 %vm469_vm9, %v9873_v7 }
 0x5ff   :  { %7201 = vmatprep.subr.bf16.mxu1 %v9874_v53  ;;  %7227 = vmatpush3.bf16.msra.mxu0 %v8429_v47 }
 0x600   :  { %7203 = vmatpush3.bf16.msra.mxu1 %v9874_v53  ;;  %7229 = vmatprep.subr.bf16.mxu0 %v8434_v45 }
 0x601   :  { %6354 = vmatmul.mubr.msk.f32.gmra.mrb[58].mxu0 %vm469_vm9, %v8098_v18  ;;  %6328 = vmatmul.mubr.msk.f32.gmra.mrb[50].mxu1 %vm469_vm9, %v9875_v21 }
 0x602   :  { %6356 = vmatprep.mubr.msk.f32.mxu0 %vm469_vm9, %v8106_v20  ;;  %6330 = vmatprep.mubr.msk.f32.mxu1 %vm469_vm9, %v9876_v41 }
 0x603   :  { %7205 = vmatprep.subr.bf16.mxu1 %v9877_v59  ;;  %7231 = vmatpush3.bf16.msra.mxu0 %v8434_v45 }
 0x604   :  { %7207 = vmatpush3.bf16.msra.mxu1 %v9877_v59  ;;  %7233 = vmatprep.subr.bf16.mxu0 %v8452_v5 }
 0x605   :  { %6357 = vmatmul.mubr.msk.f32.gmra.mrb[60].mxu0 %vm469_vm9, %v8120_v24  ;;  %6331 = vmatmul.mubr.msk.f32.gmra.mrb[52].mxu1 %vm469_vm9, %v9878_v49 }
 0x606   :  { %6359 = vmatprep.mubr.msk.f32.mxu0 %vm469_vm9, %v8128_v26  ;;  %6333 = vmatprep.mubr.msk.f32.mxu1 %vm469_vm9, %v9879_v46 }
 0x607   :  { %7209 = vmatprep.subr.bf16.mxu1 %v9880_v3  ;;  %7235 = vmatpush3.bf16.msra.mxu0 %v8452_v5 }
 0x608   :  { %7211 = vmatpush3.bf16.msra.mxu1 %v9880_v3  ;;  %7237 = vmatprep.subr.bf16.mxu0 %v8463_v15 }
 0x609   :  { %6360 = vmatmul.mubr.msk.f32.gmra.mrb[62].mxu0 %vm469_vm9, %v8142_v30  ;;  %6334 = vmatmul.mubr.msk.f32.gmra.mrb[54].mxu1 %vm469_vm9, %v9881_v63 }
 0x60a   :  { %6362 = vmatprep.mubr.msk.f32.mxu0 %vm469_vm9, %v8150_v32  ;;  %6336 = vmatprep.mubr.msk.f32.mxu1 %vm469_vm9, %v9882_v2 }
 0x60b   :  { %7213 = vmatprep.subr.bf16.mxu1 %v9883_v62  ;;  %7239 = vmatpush3.bf16.msra.mxu0 %v8463_v15 }
 0x60c   :  { %7215 = vmatpush3.bf16.msra.mxu1 %v9883_v62  ;;  %7241 = vmatprep.subr.bf16.mxu0 %v8473_v55 }
 0x60d   :  { %6363 = vmatmul.mubr.msk.f32.gmra.mrb[64].mxu0 %vm469_vm9, %v8164_v36  ;;  %6337 = vmatmul.mubr.msk.f32.gmra.mrb[56].mxu1 %vm469_vm9, %v9884_v39 }
 0x60e   :  { %6365 = vmatprep.mubr.msk.f32.mxu0 %vm469_vm9, %v8172_v38  ;;  %6339 = vmatprep.mubr.msk.f32.mxu1 %vm469_vm9, %v9885_v1  ;;  %v9892_v1 = vld [vmem:[#allocation28_spill] sm:$0xff] }
 0x60f   :  { %7217 = vmatprep.subr.bf16.mxu1 %v9886_v40  ;;  %7243 = vmatpush3.bf16.msra.mxu0 %v8473_v55 }
 0x610   :  { %7219 = vmatpush3.bf16.msra.mxu1 %v9886_v40  ;;  %7245 = vmatprep.subr.bf16.mxu0 %v8483_v52 }
 0x611   :  { %6366 = vmatmul.mubr.msk.f32.gmra.mrb[66].mxu0 %vm469_vm9, %v8186_v42  ;;  %6340 = vmatmul.mubr.msk.f32.gmra.mrb[58].mxu1 %vm469_vm9, %v9887_v33  ;;  %v9891_v33 = vld [vmem:[#allocation26_spill] sm:$0xff] }
 0x612   :  { %6368 = vmatprep.mubr.msk.f32.mxu0 %vm469_vm9, %v8194_v44  ;;  %7221 = vmatprep.subr.bf16.mxu1 %v9888_v58 }
 0x613   :  { %7247 = vmatpush3.bf16.msra.mxu0 %v8483_v52 }
 0x614   :  { %7223 = vmatpush3.bf16.msra.mxu1 %v9888_v58  ;;  %7249 = vmatprep.subr.bf16.mxu0 %v9889_v0 }
 0x615   :  { %6369 = vmatmul.mubr.msk.f32.gmra.mrb[68].mxu0 %vm469_vm9, %v8208_v48  ;;  %7256 = vmatprep.subr.bf16.mxu1 %v9778_v16  ;;  %v9893_v16 = vld [vmem:[#allocation30_spill] sm:$0xff] }
 0x616   :  { %6371 = vmatprep.mubr.msk.f32.mxu0 %vm469_vm9, %v8216_v50 }
 0x617   :  { %7251 = vmatpush3.bf16.msra.mxu0 %v9889_v0 }
 0x618   :  { %7253 = vmatprep.subr.bf16.mxu0 %v8564_v34 }
 0x619   :  { %6372 = vmatmul.mubr.msk.f32.gmra.mrb[70].mxu0 %vm469_vm9, %v8230_v54 }
 0x61a   :  { %6374 = vmatprep.mubr.msk.f32.mxu0 %vm469_vm9, %v9890_v60 }
 0x61b   :  { %7255 = vmatpush3.bf16.msra.mxu0 %v8564_v34 }
 0x61d   :  { %6375 = vmatmul.mubr.msk.f32.gmra.mrb[72].mxu0 %vm469_vm9, %v9891_v33 }
 0x61e   :  { %6377 = vmatprep.mubr.msk.f32.mxu0 %vm469_vm9, %v9892_v1 }
 0x621   :  { %6378 = vmatmul.mubr.msk.f32.gmra.mrb[74].mxu0 %vm469_vm9, %v9893_v16 }
 0x6c8   :  { %v6314_v39 = vpop.f32.mrb[52].mxu0  ;;  %v6320_v2 = vpop.f32.mrb[44].mxu1 }
 0x6c9   :  { %v1637_v63 = vpop.f32.mrb[53].mxu0  ;;  %v1657_v58 = vpop.f32.mrb[45].mxu1 }
 0x6cc   :  { %v6317_v50 = vpop.f32.mrb[54].mxu0  ;;  %v6323_v54 = vpop.f32.mrb[46].mxu1 }
 0x6cd   :  { %v1647_v46 = vpop.f32.mrb[55].mxu0  ;;  %v1667_v48 = vpop.f32.mrb[47].mxu1 }
 0x6d0   :  { %v8769_v60 = vpop.f32.mrb[56].mxu0  ;;  %v6326_v34 = vpop.f32.mrb[48].mxu1 }
 0x6d1   :  { %v1902_v49 = vsub.f32 %v6314_v39, %v8769_v60  ;;  %v8772_v33 = vpop.f32.mrb[57].mxu0  ;;  %v1677_v0 = vpop.f32.mrb[49].mxu1 }
 0x6d2   :  { %v1901_v1 = vsub.f32 %v1637_v63, %v8772_v33 }
 0x6d4   :  { %v7647_v40 = vpack.i.bf16 %v1902_v49, %v1901_v1  ;;  %v8775_v16 = vpop.f32.mrb[58].mxu0  ;;  %v6329_v44 = vpop.f32.mrb[50].mxu1 }
 0x6d5   :  { %v1904_v41 = vsub.f32 %v6317_v50, %v8775_v16  ;;  %v8778_v42 = vpop.f32.mrb[59].mxu0  ;;  %v1687_v21 = vpop.f32.mrb[51].mxu1 }
 0x6d6   :  { %v1903_v52 = vsub.f32 %v1647_v46, %v8778_v42  ;;  %7648 = vrot.lane.b32.xlu0 %v7647_v40, %s7885_s11 }
 0x6d8   :  { %v7652_v62 = vpack.i.bf16 %v1904_v41, %v1903_v52  ;;  %v8782_v39 = vpop.f32.mrb[60].mxu0  ;;  %v6332_v38 = vpop.f32.mrb[52].mxu1 }
 0x6d9   :  { %v1906_v7 = vsub.f32 %v6320_v2, %v8782_v39  ;;  %v8785_v63 = vpop.f32.mrb[61].mxu0  ;;  %v1697_v49 = vpop.f32.mrb[53].mxu1 }
 0x6da   :  { %v1905_v1 = vsub.f32 %v1657_v58, %v8785_v63  ;;  %7653 = vrot.lane.b32.xlu0 %v7652_v62, %s7885_s11 }
 0x6dc   :  { %v7657_v50 = vpack.i.bf16 %v1906_v7, %v1905_v1  ;;  %v8789_v36 = vpop.f32.mrb[62].mxu0  ;;  %v6335_v35 = vpop.f32.mrb[54].mxu1 }
 0x6dd   :  { %v1908_v46 = vsub.f32 %v6323_v54, %v8789_v36  ;;  %v8792_v40 = vpop.f32.mrb[63].mxu0  ;;  %v1707_v52 = vpop.f32.mrb[55].mxu1 }
 0x6de   :  { %v1907_v41 = vsub.f32 %v1667_v48, %v8792_v40  ;;  %7658 = vrot.lane.b32.xlu0 %v7657_v50, %s7885_s11 }
 0x6e0   :  { %v7662_v2 = vpack.i.bf16 %v1908_v46, %v1907_v41  ;;  %v8796_v55 = vpop.f32.mrb[64].mxu0  ;;  %v6338_v3 = vpop.f32.mrb[56].mxu1 }
 0x6e1   :  { %v1910_v58 = vsub.f32 %v6326_v34, %v8796_v55  ;;  %v8799_v62 = vpop.f32.mrb[65].mxu0  ;;  %v1717_v7 = vpop.f32.mrb[57].mxu1 }
 0x6e2   :  { %v1909_v1 = vsub.f32 %v1677_v0, %v8799_v62  ;;  %7663 = vrot.lane.b32.xlu0 %v7662_v2, %s7885_s11 }
 0x6e4   :  { %v7667_v54 = vpack.i.bf16 %v1910_v58, %v1909_v1  ;;  %v8803_v32 = vpop.f32.mrb[66].mxu0  ;;  %v6341_v31 = vpop.f32.mrb[58].mxu1 }
 0x6e5   :  { %v1912_v48 = vsub.f32 %v6329_v44, %v8803_v32  ;;  %v8806_v50 = vpop.f32.mrb[67].mxu0  ;;  %v1727_v46 = vpop.f32.mrb[59].mxu1 }
 0x6e6   :  { %v1911_v41 = vsub.f32 %v1687_v21, %v8806_v50  ;;  %7668 = vrot.lane.b32.xlu0 %v7667_v54, %s7885_s11 }
 0x6e8   :  { %v7672_v34 = vpack.i.bf16 %v1912_v48, %v1911_v41  ;;  %v8810_v30 = vpop.f32.mrb[68].mxu0 }
 0x6e9   :  { %v1914_v0 = vsub.f32 %v6332_v38, %v8810_v30  ;;  %v8813_v29 = vpop.f32.mrb[69].mxu0 }
 0x6ea   :  { %v1913_v2 = vsub.f32 %v1697_v49, %v8813_v29  ;;  %7673 = vrot.lane.b32.xlu0 %v7672_v34, %s7885_s11 }
 0x6ec   :  { %v7677_v58 = vpack.i.bf16 %v1914_v0, %v1913_v2  ;;  %v8817_v44 = vpop.f32.mrb[70].mxu0 }
 0x6ed   :  { %v1916_v1 = vsub.f32 %v6335_v35, %v8817_v44  ;;  %v8820_v15 = vpop.f32.mrb[71].mxu0 }
 0x6ee   :  { %v1915_v21 = vsub.f32 %v1707_v52, %v8820_v15  ;;  %7678 = vrot.lane.b32.xlu1 %v7677_v58, %s7885_s11 }
 0x6f0   :  { %v7682_v54 = vpack.i.bf16 %v1916_v1, %v1915_v21  ;;  %v8824_v48 = vpop.f32.mrb[72].mxu0 }
 0x6f1   :  { %v1918_v38 = vsub.f32 %v6338_v3, %v8824_v48  ;;  %v8827_v41 = vpop.f32.mrb[73].mxu0 }
 0x6f2   :  { %v1917_v49 = vsub.f32 %v1717_v7, %v8827_v41  ;;  %7683 = vrot.lane.b32.xlu0 %v7682_v54, %s7885_s11 }
 0x6f4   :  { %v7687_v34 = vpack.i.bf16 %v1918_v38, %v1917_v49  ;;  %v8831_v0 = vpop.f32.mrb[74].mxu0 }
 0x6f5   :  { %v1920_v35 = vsub.f32 %v6341_v31, %v8831_v0  ;;  %v8834_v2 = vpop.f32.mrb[75].mxu0 }
 0x6f6   :  { %v1919_v52 = vsub.f32 %v1727_v46, %v8834_v2  ;;  %7688 = vrot.lane.b32.xlu0 %v7687_v34, %s7885_s11 }
 0x6f8   :  { %v7692_v58 = vpack.i.bf16 %v1920_v35, %v1919_v52 }
 0x6fa   :  { %7693 = vrot.lane.b32.xlu0 %v7692_v58, %s7885_s11 }
 0x748   :  { %v7649_v3 = vpop.permute.xlu0 %7648 }
 0x749   :  { %v7651_v1 = vunpack.i.h.bf16 %v7649_v3  ;;  %v7650_v21 = vunpack.i.l.bf16 %v7649_v3 }
 0x74b   :  { %v2001_v7 = vsel %vm241_vm4, %v8772_v33, %v7650_v21  ;;  %v2002_v54 = vsel %vm241_vm4, %v8769_v60, %v7651_v1 }
 0x74c   :  { %6412 = vmatprep.mubr.f32.mxu1 %v2001_v7  ;;  %v7654_v31 = vpop.permute.xlu0 %7653 }
 0x74d   :  { %v7656_v38 = vunpack.i.h.bf16 %v7654_v31  ;;  %v7655_v49 = vunpack.i.l.bf16 %v7654_v31  ;;  %6413 = vmatmul.mubr.f32.vlgmr.msra.gmra.mrb[60].mxu1 %v2002_v54 }
 0x74f   :  { %v2003_v46 = vsel %vm241_vm4, %v8778_v42, %v7655_v49  ;;  %v2004_v34 = vsel %vm241_vm4, %v8775_v16, %v7656_v38 }
 0x750   :  { %6415 = vmatprep.mubr.f32.mxu1 %v2003_v46  ;;  %v7659_v35 = vpop.permute.xlu0 %7658 }
 0x751   :  { %v7661_v52 = vunpack.i.h.bf16 %v7659_v35  ;;  %v7660_v58 = vunpack.i.l.bf16 %v7659_v35  ;;  %6416 = vmatmul.mubr.f32.gmra.mrb[62].mxu1 %v2004_v34 }
 0x753   :  { %v2005_v33 = vsel %vm241_vm4, %v8785_v63, %v7660_v58  ;;  %v2006_v60 = vsel %vm241_vm4, %v8782_v39, %v7661_v52 }
 0x754   :  { %6418 = vmatprep.mubr.f32.mxu1 %v2005_v33  ;;  %v7664_v3 = vpop.permute.xlu0 %7663 }
 0x755   :  { %v7666_v1 = vunpack.i.h.bf16 %v7664_v3  ;;  %v7665_v21 = vunpack.i.l.bf16 %v7664_v3  ;;  %6419 = vmatmul.mubr.f32.gmra.mrb[64].mxu1 %v2006_v60 }
 0x757   :  { %v2007_v42 = vsel %vm241_vm4, %v8792_v40, %v7665_v21  ;;  %v2008_v16 = vsel %vm241_vm4, %v8789_v36, %v7666_v1 }
 0x758   :  { %6421 = vmatprep.mubr.f32.mxu1 %v2007_v42  ;;  %v7669_v7 = vpop.permute.xlu0 %7668 }
 0x759   :  { %v7671_v54 = vunpack.i.h.bf16 %v7669_v7  ;;  %v7670_v31 = vunpack.i.l.bf16 %v7669_v7  ;;  %6422 = vmatmul.mubr.f32.gmra.mrb[66].mxu1 %v2008_v16 }
 0x75b   :  { %v2009_v63 = vsel %vm241_vm4, %v8799_v62, %v7670_v31  ;;  %v2010_v39 = vsel %vm241_vm4, %v8796_v55, %v7671_v54 }
 0x75c   :  { %6424 = vmatprep.mubr.f32.mxu1 %v2009_v63  ;;  %v7674_v38 = vpop.permute.xlu0 %7673 }
 0x75d   :  { %v7676_v49 = vunpack.i.h.bf16 %v7674_v38  ;;  %v7675_v46 = vunpack.i.l.bf16 %v7674_v38  ;;  %6425 = vmatmul.mubr.f32.gmra.mrb[68].mxu1 %v2010_v39 }
 0x75f   :  { %v2011_v40 = vsel %vm241_vm4, %v8806_v50, %v7675_v46  ;;  %v2012_v36 = vsel %vm241_vm4, %v8803_v32, %v7676_v49 }
 0x760   :  { %6427 = vmatprep.mubr.f32.mxu1 %v2011_v40  ;;  %v7679_v34 = vpop.permute.xlu1 %7678 }
 0x761   :  { %v7681_v35 = vunpack.i.h.bf16 %v7679_v34  ;;  %v7680_v52 = vunpack.i.l.bf16 %v7679_v34  ;;  %6428 = vmatmul.mubr.f32.gmra.mrb[70].mxu1 %v2012_v36 }
 0x763   :  { %v2013_v62 = vsel %vm241_vm4, %v8813_v29, %v7680_v52  ;;  %v2014_v55 = vsel %vm241_vm4, %v8810_v30, %v7681_v35 }
 0x764   :  { %6430 = vmatprep.mubr.f32.mxu1 %v2013_v62  ;;  %v7684_v58 = vpop.permute.xlu0 %7683 }
 0x765   :  { %v7686_v33 = vunpack.i.h.bf16 %v7684_v58  ;;  %v7685_v60 = vunpack.i.l.bf16 %v7684_v58  ;;  %6431 = vmatmul.mubr.f32.gmra.mrb[72].mxu1 %v2014_v55 }
 0x767   :  { %v2015_v50 = vsel %vm241_vm4, %v8820_v15, %v7685_v60  ;;  %v2016_v32 = vsel %vm241_vm4, %v8817_v44, %v7686_v33 }
 0x768   :  { %6433 = vmatprep.mubr.f32.mxu1 %v2015_v50  ;;  %v7689_v3 = vpop.permute.xlu0 %7688 }
 0x769   :  { %v7691_v1 = vunpack.i.h.bf16 %v7689_v3  ;;  %v7690_v21 = vunpack.i.l.bf16 %v7689_v3  ;;  %6434 = vmatmul.mubr.f32.gmra.mrb[74].mxu1 %v2016_v32 }
 0x76b   :  { %v2017_v29 = vsel %vm241_vm4, %v8827_v41, %v7690_v21  ;;  %v2018_v30 = vsel %vm241_vm4, %v8824_v48, %v7691_v1 }
 0x76c   :  { %6436 = vmatprep.mubr.f32.mxu1 %v2017_v29  ;;  %v7694_v42 = vpop.permute.xlu0 %7693 }
 0x76d   :  { %v7696_v16 = vunpack.i.h.bf16 %v7694_v42  ;;  %v7695_v7 = vunpack.i.l.bf16 %v7694_v42  ;;  %6437 = vmatmul.mubr.f32.gmra.mrb[76].mxu1 %v2018_v30 }
 0x76f   :  { %v2019_v15 = vsel %vm241_vm4, %v8834_v2, %v7695_v7  ;;  %v2020_v44 = vsel %vm241_vm4, %v8831_v0, %v7696_v16 }
 0x770   :  { %6439 = vmatprep.mubr.f32.mxu1 %v2019_v15 }
 0x771   :  { %6440 = vmatmul.mubr.f32.gmra.mrb[78].mxu1 %v2020_v44 }
 0x772   :  { %5223 = vmatprep.mubr.msk.f32.mxu1 %vm469_vm9, %v8596_v43 }
 0x820   :  { %v6414_v41 = vpop.f32.mrb[60].mxu1 }
 0x821   :  { %v2093_v54 = vadd.f32 %v6414_v41, %v8571_v37  ;;  %v2087_v48 = vpop.f32.mrb[61].mxu1 }
 0x822   :  { %v2088_v31 = vadd.f32 %v8571_v37, %v2087_v48 }
 0x823   :  { %v2187_v38 = vmax.f32 %v2093_v54, 0.0 }
 0x824   :  { %v2186_v63 = vmax.f32 %v2088_v31, 0.0  ;;  %v6417_v39 = vpop.f32.mrb[62].mxu1 }
 0x825   :  { %v2103_v49 = vadd.f32 %v6417_v39, %v8571_v37  ;;  %v2097_v2 = vpop.f32.mrb[63].mxu1 }
 0x826   :  { %v2098_v46 = vadd.f32 %v8571_v37, %v2097_v2  ;;  %6474 = vmatprep.mubr.f32.mxu0 %v2186_v63 }
 0x827   :  { %6475 = vmatmul.mubr.f32.vlgmr.msra.gmra.mrb[76].mxu0 %v2187_v38  ;;  %v2189_v36 = vmax.f32 %v2103_v49, 0.0 }
 0x828   :  { %v2188_v0 = vmax.f32 %v2098_v46, 0.0  ;;  %v6420_v40 = vpop.f32.mrb[64].mxu1 }
 0x829   :  { %v2113_v34 = vadd.f32 %v6420_v40, %v8571_v37  ;;  %v2107_v35 = vpop.f32.mrb[65].mxu1 }
 0x82a   :  { %v2108_v52 = vadd.f32 %v8571_v37, %v2107_v35  ;;  %6477 = vmatprep.mubr.f32.mxu0 %v2188_v0 }
 0x82b   :  { %6478 = vmatmul.mubr.f32.gmra.mrb[78].mxu0 %v2189_v36  ;;  %v2191_v58 = vmax.f32 %v2113_v34, 0.0 }
 0x82c   :  { %v2190_v62 = vmax.f32 %v2108_v52, 0.0  ;;  %v6423_v55 = vpop.f32.mrb[66].mxu1 }
 0x82d   :  { %v2123_v33 = vadd.f32 %v6423_v55, %v8571_v37  ;;  %v2117_v60 = vpop.f32.mrb[67].mxu1 }
 0x82e   :  { %v2118_v50 = vadd.f32 %v8571_v37, %v2117_v60  ;;  %6480 = vmatprep.mubr.f32.mxu0 %v2190_v62 }
 0x82f   :  { %6481 = vmatmul.mubr.f32.gmra.mrb[80].mxu0 %v2191_v58  ;;  %v2193_v1 = vmax.f32 %v2123_v33, 0.0 }
 0x830   :  { %v2192_v32 = vmax.f32 %v2118_v50, 0.0  ;;  %v6426_v3 = vpop.f32.mrb[68].mxu1 }
 0x831   :  { %v2133_v21 = vadd.f32 %v6426_v3, %v8571_v37  ;;  %v2127_v29 = vpop.f32.mrb[69].mxu1 }
 0x832   :  { %v2128_v30 = vadd.f32 %v8571_v37, %v2127_v29  ;;  %6483 = vmatprep.mubr.f32.mxu0 %v2192_v32 }
 0x833   :  { %6484 = vmatmul.mubr.f32.gmra.mrb[82].mxu0 %v2193_v1  ;;  %v2195_v7 = vmax.f32 %v2133_v21, 0.0 }
 0x834   :  { %v2194_v42 = vmax.f32 %v2128_v30, 0.0  ;;  %v6429_v16 = vpop.f32.mrb[70].mxu1 }
 0x835   :  { %v2143_v15 = vadd.f32 %v6429_v16, %v8571_v37  ;;  %v2137_v44 = vpop.f32.mrb[71].mxu1 }
 0x836   :  { %v2138_v41 = vadd.f32 %v8571_v37, %v2137_v44  ;;  %6486 = vmatprep.mubr.f32.mxu0 %v2194_v42 }
 0x837   :  { %6487 = vmatmul.mubr.f32.gmra.mrb[84].mxu0 %v2195_v7  ;;  %v2197_v31 = vmax.f32 %v2143_v15, 0.0 }
 0x838   :  { %v2196_v54 = vmax.f32 %v2138_v41, 0.0  ;;  %v6432_v48 = vpop.f32.mrb[72].mxu1 }
 0x839   :  { %v2153_v63 = vadd.f32 %v6432_v48, %v8571_v37  ;;  %v2147_v39 = vpop.f32.mrb[73].mxu1 }
 0x83a   :  { %v2148_v38 = vadd.f32 %v8571_v37, %v2147_v39  ;;  %6489 = vmatprep.mubr.f32.mxu0 %v2196_v54 }
 0x83b   :  { %6490 = vmatmul.mubr.f32.gmra.mrb[86].mxu0 %v2197_v31  ;;  %v2199_v46 = vmax.f32 %v2153_v63, 0.0 }
 0x83c   :  { %v2198_v49 = vmax.f32 %v2148_v38, 0.0  ;;  %v6435_v2 = vpop.f32.mrb[74].mxu1 }
 0x83d   :  { %v2163_v0 = vadd.f32 %v6435_v2, %v8571_v37  ;;  %v2157_v40 = vpop.f32.mrb[75].mxu1 }
 0x83e   :  { %v2158_v36 = vadd.f32 %v8571_v37, %v2157_v40  ;;  %6492 = vmatprep.mubr.f32.mxu0 %v2198_v49 }
 0x83f   :  { %6493 = vmatmul.mubr.f32.gmra.mrb[88].mxu0 %v2199_v46  ;;  %v2201_v52 = vmax.f32 %v2163_v0, 0.0  ;;  %v9894_v46 = vmov 0.0|0.0  }
 0x840   :  { %v2200_v34 = vmax.f32 %v2158_v36, 0.0  ;;  %v6438_v35 = vpop.f32.mrb[76].mxu1 }
 0x841   :  { %v2173_v62 = vadd.f32 %v6438_v35, %v8571_v37  ;;  %v2167_v55 = vpop.f32.mrb[77].mxu1 }
 0x842   :  { %v2168_v58 = vadd.f32 %v8571_v37, %v2167_v55  ;;  %6495 = vmatprep.mubr.f32.mxu0 %v2200_v34 }
 0x843   :  { %6496 = vmatmul.mubr.f32.gmra.mrb[90].mxu0 %v2201_v52  ;;  %v2203_v50 = vmax.f32 %v2173_v62, 0.0 }
 0x844   :  { %v2202_v33 = vmax.f32 %v2168_v58, 0.0  ;;  %v6441_v60 = vpop.f32.mrb[78].mxu1 }
 0x845   :  { %v2183_v32 = vadd.f32 %v6441_v60, %v8571_v37  ;;  %v2177_v3 = vpop.f32.mrb[79].mxu1 }
 0x846   :  { %v2178_v1 = vadd.f32 %v8571_v37, %v2177_v3  ;;  %6498 = vmatprep.mubr.f32.mxu0 %v2202_v33 }
 0x847   :  { %6499 = vmatmul.mubr.f32.gmra.mrb[92].mxu0 %v2203_v50  ;;  %v2205_v29 = vmax.f32 %v2183_v32, 0.0 }
 0x848   :  { %v2204_v21 = vmax.f32 %v2178_v1, 0.0 }
 0x84a   :  { %6501 = vmatprep.mubr.f32.mxu0 %v2204_v21 }
 0x84b   :  { %6502 = vmatmul.mubr.f32.gmra.mrb[94].mxu0 %v2205_v29 }
 0x84c   :  { %6512 = vmatprep.mubr.msk.f32.mxu0 %vm469_vm9, %v8061_v56 }
 0x8fa   :  { %v6476_v30 = vpop.f32.mrb[76].mxu0 }
 0x8fb   :  { %v2278_v42 = vadd.f32 %v6476_v30, %v8603_v61  ;;  %v2272_v16 = vpop.f32.mrb[77].mxu0 }
 0x8fc   :  { %v2273_v7 = vadd.f32 %v8603_v61, %v2272_v16 }
 0x8fd   :  { %v2372_v15 = vmax.f32 %v2278_v42, 0.0 }
 0x8fe   :  { %v2371_v44 = vmax.f32 %v2273_v7, 0.0  ;;  %v6479_v41 = vpop.f32.mrb[78].mxu0 }
 0x8ff   :  { %v2288_v37 = vadd.f32 %v6479_v41, %v8603_v61  ;;  %v2282_v54 = vpop.f32.mrb[79].mxu0 }
 0x900   :  { %v7257_v48 = vpack.c.bf16 %v2372_v15, %v2371_v44  ;;  %v2283_v31 = vadd.f32 %v8603_v61, %v2282_v54 }
 0x901   :  { %v2374_v63 = vmax.f32 %v2288_v37, 0.0 }
 0x902   :  { %v2373_v39 = vmax.f32 %v2283_v31, 0.0  ;;  %v6482_v38 = vpop.f32.mrb[80].mxu0  ;;  %7258 = vmatpush1.bf16.msra.mxu1 %v7257_v48 }
 0x903   :  { %v2298_v49 = vadd.f32 %v6482_v38, %v8603_v61  ;;  %v2292_v2 = vpop.f32.mrb[81].mxu0  ;;  %7259 = vmatprep.subr.bf16.mxu1 %v9894_v46 }
 0x904   :  { %v7260_v0 = vpack.c.bf16 %v2374_v63, %v2373_v39  ;;  %v2293_v40 = vadd.f32 %v8603_v61, %v2292_v2 }
 0x905   :  { %v2376_v36 = vmax.f32 %v2298_v49, 0.0 }
 0x906   :  { %v2375_v34 = vmax.f32 %v2293_v40, 0.0  ;;  %v6485_v35 = vpop.f32.mrb[82].mxu0  ;;  %7261 = vmatpush1.bf16.msra.mxu1 %v7260_v0 }
 0x907   :  { %v2308_v52 = vadd.f32 %v6485_v35, %v8603_v61  ;;  %v2302_v62 = vpop.f32.mrb[83].mxu0  ;;  %7262 = vmatprep.subr.bf16.mxu1 %v9894_v46 }
 0x908   :  { %v7263_v55 = vpack.c.bf16 %v2376_v36, %v2375_v34  ;;  %v2303_v58 = vadd.f32 %v8603_v61, %v2302_v62 }
 0x909   :  { %v2378_v33 = vmax.f32 %v2308_v52, 0.0 }
 0x90a   :  { %v2377_v60 = vmax.f32 %v2303_v58, 0.0  ;;  %v6488_v50 = vpop.f32.mrb[84].mxu0  ;;  %7264 = vmatpush1.bf16.msra.mxu1 %v7263_v55 }
 0x90b   :  { %v2318_v32 = vadd.f32 %v6488_v50, %v8603_v61  ;;  %v2312_v3 = vpop.f32.mrb[85].mxu0  ;;  %7265 = vmatprep.subr.bf16.mxu1 %v9894_v46 }
 0x90c   :  { %v7266_v1 = vpack.c.bf16 %v2378_v33, %v2377_v60  ;;  %v2313_v21 = vadd.f32 %v8603_v61, %v2312_v3 }
 0x90d   :  { %v2380_v29 = vmax.f32 %v2318_v32, 0.0 }
 0x90e   :  { %v2379_v30 = vmax.f32 %v2313_v21, 0.0  ;;  %v6491_v42 = vpop.f32.mrb[86].mxu0  ;;  %7267 = vmatpush1.bf16.msra.mxu1 %v7266_v1 }
 0x90f   :  { %v2328_v16 = vadd.f32 %v6491_v42, %v8603_v61  ;;  %v2322_v7 = vpop.f32.mrb[87].mxu0  ;;  %7268 = vmatprep.subr.bf16.mxu1 %v9894_v46 }
 0x910   :  { %v7269_v15 = vpack.c.bf16 %v2380_v29, %v2379_v30  ;;  %v2323_v44 = vadd.f32 %v8603_v61, %v2322_v7  ;;  %v8933_v30 = vld [vmem:[%s9722_s14] ss:$0 sm:$0xff] }
 0x911   :  { %v2382_v41 = vmax.f32 %v2328_v16, 0.0 }
 0x912   :  { %v2381_v37 = vmax.f32 %v2323_v44, 0.0  ;;  %v6494_v54 = vpop.f32.mrb[88].mxu0  ;;  %7270 = vmatpush1.bf16.msra.mxu1 %v7269_v15 }
 0x913   :  { %v2338_v48 = vadd.f32 %v6494_v54, %v8603_v61  ;;  %v2332_v31 = vpop.f32.mrb[89].mxu0  ;;  %7271 = vmatprep.subr.bf16.mxu1 %v9894_v46 }
 0x914   :  { %v7272_v63 = vpack.c.bf16 %v2382_v41, %v2381_v37  ;;  %v2333_v39 = vadd.f32 %v8603_v61, %v2332_v31 }
 0x915   :  { %v2384_v38 = vmax.f32 %v2338_v48, 0.0 }
 0x916   :  { %v2383_v49 = vmax.f32 %v2333_v39, 0.0  ;;  %v6497_v2 = vpop.f32.mrb[90].mxu0  ;;  %7273 = vmatpush1.bf16.msra.mxu1 %v7272_v63 }
 0x917   :  { %v2348_v0 = vadd.f32 %v6497_v2, %v8603_v61  ;;  %v2342_v40 = vpop.f32.mrb[91].mxu0  ;;  %7274 = vmatprep.subr.bf16.mxu1 %v9894_v46  ;;  %v9896_v2 = vld [vmem:[#allocation5_spill] sm:$0xff] }
 0x918   :  { %v7275_v36 = vpack.c.bf16 %v2384_v38, %v2383_v49  ;;  %v2343_v34 = vadd.f32 %v8603_v61, %v2342_v40  ;;  %v9895_v49 = vld [vmem:[#allocation37_spill] sm:$0xff]  ;;  %v9898_v40 = vld [vmem:[#allocation7_spill] sm:$0xff] }
 0x919   :  { %v2386_v35 = vmax.f32 %v2348_v0, 0.0  ;;  %v9897_v0 = vld [vmem:[#allocation6_spill] sm:$0xff] }
 0x91a   :  { %v2385_v52 = vmax.f32 %v2343_v34, 0.0  ;;  %v6500_v62 = vpop.f32.mrb[92].mxu0  ;;  %7276 = vmatpush1.bf16.msra.mxu1 %v7275_v36  ;;  %v9899_v36 = vld [vmem:[#allocation8_spill] sm:$0xff]  ;;  %v9900_v34 = vld [vmem:[#allocation33_spill] sm:$0xff] }
 0x91b   :  { %v2358_v55 = vadd.f32 %v6500_v62, %v8603_v61  ;;  %v2352_v58 = vpop.f32.mrb[93].mxu0  ;;  %7277 = vmatprep.subr.bf16.mxu1 %v9894_v46  ;;  %v9903_v62 = vld [vmem:[#allocation10_spill] sm:$0xff] }
 0x91c   :  { %v7278_v33 = vpack.c.bf16 %v2386_v35, %v2385_v52  ;;  %v2353_v60 = vadd.f32 %v8603_v61, %v2352_v58  ;;  %v9901_v35 = vld [vmem:[#allocation38_spill] sm:$0xff]  ;;  %v9902_v52 = vld [vmem:[#allocation9_spill] sm:$0xff]  ;;  %v9905_v58 = vld [vmem:[#allocation12_spill] sm:$0xff] }
 0x91d   :  { %v2388_v50 = vmax.f32 %v2358_v55, 0.0  ;;  %v9904_v55 = vld [vmem:[#allocation11_spill] sm:$0xff] }
 0x91e   :  { %v2387_v32 = vmax.f32 %v2353_v60, 0.0  ;;  %v6503_v3 = vpop.f32.mrb[94].mxu0  ;;  %7279 = vmatpush1.bf16.msra.mxu1 %v7278_v33  ;;  %v9906_v33 = vld [vmem:[#allocation34_spill] sm:$0xff]  ;;  %v9907_v60 = vld [vmem:[#allocation39_spill] sm:$0xff] }
 0x91f   :  { %v2368_v1 = vadd.f32 %v6503_v3, %v8603_v61  ;;  %v2362_v21 = vpop.f32.mrb[95].mxu0  ;;  %7280 = vmatprep.subr.bf16.mxu1 %v9894_v46  ;;  %v9910_v3 = vld [vmem:[#allocation15_spill] sm:$0xff] }
 0x920   :  { %v7281_v29 = vpack.c.bf16 %v2388_v50, %v2387_v32  ;;  %v2363_v42 = vadd.f32 %v8933_v30, %v2362_v21  ;;  %v9908_v50 = vld [vmem:[#allocation13_spill] sm:$0xff]  ;;  %v9909_v32 = vld [vmem:[#allocation14_spill] sm:$0xff]  ;;  %v9912_v21 = vld [vmem:[#allocation35_spill] sm:$0xff] }
 0x921   :  { %v2390_v16 = vmax.f32 %v2368_v1, 0.0  ;;  %v9911_v1 = vld [vmem:[#allocation16_spill] sm:$0xff] }
 0x922   :  { %v2389_v7 = vmax.f32 %v2363_v42, 0.0  ;;  %7282 = vmatpush1.bf16.msra.mxu1 %v7281_v29  ;;  %v9913_v29 = vld [vmem:[#allocation40_spill] sm:$0xff]  ;;  %v9914_v42 = vld [vmem:[#allocation17_spill] sm:$0xff] }
 0x923   :  { %7283 = vmatprep.subr.bf16.mxu1 %v9894_v46 }
 0x924   :  { %v7284_v15 = vpack.c.bf16 %v2390_v16, %v2389_v7  ;;  %v9915_v16 = vld [vmem:[#allocation18_spill] sm:$0xff]  ;;  %v9916_v7 = vld [vmem:[#allocation19_spill] sm:$0xff] }
 0x926   :  { %7285 = vmatpush1.bf16.msra.mxu1 %v7284_v15  ;;  %v9917_v15 = vld [vmem:[#allocation20_spill] sm:$0xff] }
 0x929   :  { %2456 = vmatmul.mubr.f32.vlgmr.msra.gmra.mrb[80].mxu1 %v8633_v27 }
 0x92a   :  { %5224 = vmatprep.mubr.msk.f32.mxu1 %vm469_vm9, %v8636_v22 }
 0x92d   :  { %2461 = vmatmul.mubr.f32.gmra.mrb[82].mxu1 %v8638_v28 }
 0x92e   :  { %5225 = vmatprep.mubr.msk.f32.mxu1 %vm469_vm9, %v8641_v51 }
 0x931   :  { %2466 = vmatmul.mubr.f32.gmra.mrb[84].mxu1 %v8645_v9 }
 0x932   :  { %5226 = vmatprep.mubr.msk.f32.mxu1 %vm469_vm9, %v8650_v10 }
 0x935   :  { %2471 = vmatmul.mubr.f32.gmra.mrb[86].mxu1 %v8653_v4 }
 0x936   :  { %6550 = vmatprep.mubr.msk.f32.mxu1 %vm469_vm9, %v8063_v57 }
 0x9fc   :  { %v2457_v61 = vpop.f32.mrb[80].mxu1 }
 0x9fd   :  { %v2459_v44 = vpop.f32.mrb[81].mxu1 }
 0x9fe   :  { %v9919_v44 = vld [vmem:[#allocation41_spill] sm:$0xff] }
 0xa00   :  { %v2462_v41 = vpop.f32.mrb[82].mxu1 }
 0xa01   :  { %v7286_v37 = vpack.c.bf16 %v2462_v41, %v2457_v61  ;;  %v2464_v54 = vpop.f32.mrb[83].mxu1  ;;  %v9918_v61 = vld [vmem:[#allocation36_spill] sm:$0xff]  ;;  %v9920_v41 = vld [vmem:[#allocation21_spill] sm:$0xff] }
 0xa02   :  { %v9922_v54 = vld [vmem:[#allocation23_spill] sm:$0xff] }
 0xa03   :  { %7287 = vmatprep.subr.bf16.mxu0 %v7286_v37  ;;  %7295 = vmatprep.subr.bf16.mxu1 %v7286_v37 }
 0xa04   :  { %v2467_v48 = vpop.f32.mrb[84].mxu1  ;;  %7289 = vmatpush3.bf16.msra.mxu0 %v7286_v37  ;;  %7297 = vmatpush3.bf16.msra.mxu1 %v7286_v37  ;;  %v9921_v37 = vld [vmem:[#allocation22_spill] sm:$0xff] }
 0xa05   :  { %v2469_v31 = vpop.f32.mrb[85].mxu1 }
 0xa06   :  { %v9924_v31 = vld [vmem:[#allocation25_spill] sm:$0xff] }
 0xa08   :  { %v2472_v63 = vpop.f32.mrb[86].mxu1 }
 0xa09   :  { %v7290_v39 = vpack.c.bf16 %v2472_v63, %v2467_v48  ;;  %v2474_v38 = vpop.f32.mrb[87].mxu1  ;;  %v9923_v48 = vld [vmem:[#allocation24_spill] sm:$0xff]  ;;  %v9925_v63 = vld [vmem:[#allocation26_spill] sm:$0xff] }
 0xa0a   :  { %v9927_v38 = vld [vmem:[#allocation28_spill] sm:$0xff] }
 0xa0b   :  { %7291 = vmatprep.subr.bf16.mxu0 %v7290_v39  ;;  %7299 = vmatprep.subr.bf16.mxu1 %v7290_v39 }
 0xa0c   :  { %7293 = vmatpush3.bf16.msra.mxu0 %v7290_v39  ;;  %7301 = vmatpush3.bf16.msra.mxu1 %v7290_v39  ;;  %v9926_v39 = vld [vmem:[#allocation27_spill] sm:$0xff] }
 0xa0d   :  { %7303 = vmatprep.subr.bf16.mxu0 %v8287_v6  ;;  %7335 = vmatprep.subr.bf16.mxu1 %v8429_v47 }
 0xa0f   :  { %6513 = vmatmul.mubr.msk.f32.vlgmr.msra.gmra.mrb[96].mxu0 %vm469_vm9, %v8078_v11  ;;  %6551 = vmatmul.mubr.msk.f32.vlgmr.msra.gmra.mrb[88].mxu1 %vm469_vm9, %v8080_v12 }
 0xa10   :  { %6515 = vmatprep.mubr.msk.f32.mxu0 %vm469_vm9, %v8082_v13  ;;  %6553 = vmatprep.mubr.msk.f32.mxu1 %vm469_vm9, %v8084_v14 }
 0xa11   :  { %7305 = vmatpush3.bf16.msra.mxu0 %v8287_v6  ;;  %7337 = vmatpush3.bf16.msra.mxu1 %v8429_v47 }
 0xa12   :  { %7307 = vmatprep.subr.bf16.mxu0 %v8292_v8  ;;  %7339 = vmatprep.subr.bf16.mxu1 %v8434_v45 }
 0xa13   :  { %6516 = vmatmul.mubr.msk.f32.gmra.mrb[98].mxu0 %vm469_vm9, %v8096_v17  ;;  %6554 = vmatmul.mubr.msk.f32.gmra.mrb[90].mxu1 %vm469_vm9, %v8098_v18 }
 0xa14   :  { %6518 = vmatprep.mubr.msk.f32.mxu0 %vm469_vm9, %v8104_v19  ;;  %6556 = vmatprep.mubr.msk.f32.mxu1 %vm469_vm9, %v8106_v20 }
 0xa15   :  { %7309 = vmatpush3.bf16.msra.mxu0 %v8292_v8  ;;  %7341 = vmatpush3.bf16.msra.mxu1 %v8434_v45 }
 0xa16   :  { %7311 = vmatprep.subr.bf16.mxu0 %v9874_v53  ;;  %7343 = vmatprep.subr.bf16.mxu1 %v8452_v5 }
 0xa17   :  { %6519 = vmatmul.mubr.msk.f32.gmra.mrb[100].mxu0 %vm469_vm9, %v8118_v23  ;;  %6557 = vmatmul.mubr.msk.f32.gmra.mrb[92].mxu1 %vm469_vm9, %v8120_v24 }
 0xa18   :  { %6521 = vmatprep.mubr.msk.f32.mxu0 %vm469_vm9, %v8126_v25  ;;  %6559 = vmatprep.mubr.msk.f32.mxu1 %vm469_vm9, %v8128_v26 }
 0xa19   :  { %7313 = vmatpush3.bf16.msra.mxu0 %v9874_v53  ;;  %7345 = vmatpush3.bf16.msra.mxu1 %v8452_v5 }
 0xa1a   :  { %7315 = vmatprep.subr.bf16.mxu0 %v9877_v59  ;;  %7347 = vmatprep.subr.bf16.mxu1 %v9895_v49 }
 0xa1b   :  { %6522 = vmatmul.mubr.msk.f32.gmra.mrb[102].mxu0 %vm469_vm9, %v9896_v2  ;;  %6560 = vmatmul.mubr.msk.f32.gmra.mrb[94].mxu1 %vm469_vm9, %v9897_v0 }
 0xa1c   :  { %6524 = vmatprep.mubr.msk.f32.mxu0 %vm469_vm9, %v9898_v40  ;;  %6562 = vmatprep.mubr.msk.f32.mxu1 %vm469_vm9, %v9899_v36 }
 0xa1d   :  { %7317 = vmatpush3.bf16.msra.mxu0 %v9877_v59  ;;  %7349 = vmatpush3.bf16.msra.mxu1 %v9895_v49 }
 0xa1e   :  { %7319 = vmatprep.subr.bf16.mxu0 %v9900_v34  ;;  %7351 = vmatprep.subr.bf16.mxu1 %v9901_v35 }
 0xa1f   :  { %6525 = vmatmul.mubr.msk.f32.gmra.mrb[104].mxu0 %vm469_vm9, %v9902_v52  ;;  %6563 = vmatmul.mubr.msk.f32.gmra.mrb[96].mxu1 %vm469_vm9, %v9903_v62 }
 0xa20   :  { %6527 = vmatprep.mubr.msk.f32.mxu0 %vm469_vm9, %v9904_v55  ;;  %6565 = vmatprep.mubr.msk.f32.mxu1 %vm469_vm9, %v9905_v58 }
 0xa21   :  { %7321 = vmatpush3.bf16.msra.mxu0 %v9900_v34  ;;  %7353 = vmatpush3.bf16.msra.mxu1 %v9901_v35 }
 0xa22   :  { %7323 = vmatprep.subr.bf16.mxu0 %v9906_v33  ;;  %7355 = vmatprep.subr.bf16.mxu1 %v9907_v60 }
 0xa23   :  { %6528 = vmatmul.mubr.msk.f32.gmra.mrb[106].mxu0 %vm469_vm9, %v9908_v50  ;;  %6566 = vmatmul.mubr.msk.f32.gmra.mrb[98].mxu1 %vm469_vm9, %v9909_v32 }
 0xa24   :  { %6530 = vmatprep.mubr.msk.f32.mxu0 %vm469_vm9, %v9910_v3  ;;  %6568 = vmatprep.mubr.msk.f32.mxu1 %vm469_vm9, %v9911_v1 }
 0xa25   :  { %7325 = vmatpush3.bf16.msra.mxu0 %v9906_v33  ;;  %7357 = vmatpush3.bf16.msra.mxu1 %v9907_v60 }
 0xa26   :  { %7327 = vmatprep.subr.bf16.mxu0 %v9912_v21  ;;  %7359 = vmatprep.subr.bf16.mxu1 %v9913_v29 }
 0xa27   :  { %6531 = vmatmul.mubr.msk.f32.gmra.mrb[108].mxu0 %vm469_vm9, %v9914_v42  ;;  %6569 = vmatmul.mubr.msk.f32.gmra.mrb[100].mxu1 %vm469_vm9, %v9915_v16 }
 0xa28   :  { %6533 = vmatprep.mubr.msk.f32.mxu0 %vm469_vm9, %v9916_v7  ;;  %6571 = vmatprep.mubr.msk.f32.mxu1 %vm469_vm9, %v9917_v15 }
 0xa29   :  { %7329 = vmatpush3.bf16.msra.mxu0 %v9912_v21  ;;  %7361 = vmatpush3.bf16.msra.mxu1 %v9913_v29 }
 0xa2a   :  { %7331 = vmatprep.subr.bf16.mxu0 %v9918_v61  ;;  %7363 = vmatprep.subr.bf16.mxu1 %v9919_v44 }
 0xa2b   :  { %6534 = vmatmul.mubr.msk.f32.gmra.mrb[110].mxu0 %vm469_vm9, %v9920_v41  ;;  %6572 = vmatmul.mubr.msk.f32.gmra.mrb[102].mxu1 %vm469_vm9, %v9921_v37 }
 0xa2c   :  { %6536 = vmatprep.mubr.msk.f32.mxu0 %vm469_vm9, %v9922_v54  ;;  %6574 = vmatprep.mubr.msk.f32.mxu1 %vm469_vm9, %v9923_v48  ;;  %v9928_v54 = vld [vmem:[#allocation29_spill] sm:$0xff]  ;;  %v9929_v48 = vld [vmem:[#allocation30_spill] sm:$0xff] }
 0xa2d   :  { %7333 = vmatpush3.bf16.msra.mxu0 %v9918_v61  ;;  %7365 = vmatpush3.bf16.msra.mxu1 %v9919_v44 }
 0xa2e   :  { %7366 = vmatprep.subr.bf16.mxu0 %v9894_v46 }
 0xa2f   :  { %6537 = vmatmul.mubr.msk.f32.gmra.mrb[112].mxu0 %vm469_vm9, %v9924_v31  ;;  %6575 = vmatmul.mubr.msk.f32.gmra.mrb[104].mxu1 %vm469_vm9, %v9925_v63 }
 0xa30   :  { %6539 = vmatprep.mubr.msk.f32.mxu0 %vm469_vm9, %v9926_v39  ;;  %6577 = vmatprep.mubr.msk.f32.mxu1 %vm469_vm9, %v9927_v38 }
 0xa33   :  { %6540 = vmatmul.mubr.msk.f32.gmra.mrb[114].mxu0 %vm469_vm9, %v9928_v54  ;;  %6578 = vmatmul.mubr.msk.f32.gmra.mrb[106].mxu1 %vm469_vm9, %v9929_v48 }
 0xae2   :  { %v6514_v37 = vpop.f32.mrb[96].mxu0  ;;  %v9058_v41 = vpop.f32.mrb[88].mxu1 }
 0xae3   :  { %v2807_v31 = vsub.f32 %v6514_v37, %v9058_v41  ;;  %v2542_v44 = vpop.f32.mrb[97].mxu0  ;;  %v9061_v61 = vpop.f32.mrb[89].mxu1 }
 0xae4   :  { %v2806_v63 = vsub.f32 %v2542_v44, %v9061_v61 }
 0xae6   :  { %v7697_v39 = vpack.i.bf16 %v2807_v31, %v2806_v63  ;;  %v6517_v15 = vpop.f32.mrb[98].mxu0  ;;  %v9064_v7 = vpop.f32.mrb[90].mxu1 }
 0xae7   :  { %v2809_v38 = vsub.f32 %v6517_v15, %v9064_v7  ;;  %v2552_v54 = vpop.f32.mrb[99].mxu0  ;;  %v9067_v16 = vpop.f32.mrb[91].mxu1 }
 0xae8   :  { %v2808_v48 = vsub.f32 %v2552_v54, %v9067_v16  ;;  %7698 = vrot.lane.b32.xlu0 %v7697_v39, %s7885_s11 }
 0xaea   :  { %v7702_v42 = vpack.i.bf16 %v2809_v38, %v2808_v48  ;;  %v6520_v37 = vpop.f32.mrb[100].mxu0  ;;  %v9071_v29 = vpop.f32.mrb[92].mxu1 }
 0xaeb   :  { %v2811_v21 = vsub.f32 %v6520_v37, %v9071_v29  ;;  %v2562_v44 = vpop.f32.mrb[101].mxu0  ;;  %v9074_v31 = vpop.f32.mrb[93].mxu1 }
 0xaec   :  { %v2810_v63 = vsub.f32 %v2562_v44, %v9074_v31  ;;  %7703 = vrot.lane.b32.xlu0 %v7702_v42, %s7885_s11 }
 0xaee   :  { %v7707_v15 = vpack.i.bf16 %v2811_v21, %v2810_v63  ;;  %v6523_v1 = vpop.f32.mrb[102].mxu0  ;;  %v9078_v3 = vpop.f32.mrb[94].mxu1 }
 0xaef   :  { %v2813_v54 = vsub.f32 %v6523_v1, %v9078_v3  ;;  %v2572_v39 = vpop.f32.mrb[103].mxu0  ;;  %v9081_v48 = vpop.f32.mrb[95].mxu1 }
 0xaf0   :  { %v2812_v38 = vsub.f32 %v2572_v39, %v9081_v48  ;;  %7708 = vrot.lane.b32.xlu0 %v7707_v15, %s7885_s11 }
 0xaf2   :  { %v7712_v37 = vpack.i.bf16 %v2813_v54, %v2812_v38  ;;  %v6526_v32 = vpop.f32.mrb[104].mxu0  ;;  %v9085_v50 = vpop.f32.mrb[96].mxu1 }
 0xaf3   :  { %v2815_v44 = vsub.f32 %v6526_v32, %v9085_v50  ;;  %v2582_v42 = vpop.f32.mrb[105].mxu0  ;;  %v9088_v21 = vpop.f32.mrb[97].mxu1 }
 0xaf4   :  { %v2814_v63 = vsub.f32 %v2582_v42, %v9088_v21  ;;  %7713 = vrot.lane.b32.xlu0 %v7712_v37, %s7885_s11 }
 0xaf6   :  { %v7717_v1 = vpack.i.bf16 %v2815_v44, %v2814_v63  ;;  %v6529_v60 = vpop.f32.mrb[106].mxu0  ;;  %v9092_v33 = vpop.f32.mrb[98].mxu1 }
 0xaf7   :  { %v2817_v39 = vsub.f32 %v6529_v60, %v9092_v33  ;;  %v2592_v15 = vpop.f32.mrb[107].mxu0  ;;  %v9095_v54 = vpop.f32.mrb[99].mxu1 }
 0xaf8   :  { %v2816_v38 = vsub.f32 %v2592_v15, %v9095_v54  ;;  %7718 = vrot.lane.b32.xlu0 %v7717_v1, %s7885_s11 }
 0xafa   :  { %v7722_v32 = vpack.i.bf16 %v2817_v39, %v2816_v38  ;;  %v6532_v58 = vpop.f32.mrb[108].mxu0  ;;  %v9099_v55 = vpop.f32.mrb[100].mxu1 }
 0xafb   :  { %v2819_v42 = vsub.f32 %v6532_v58, %v9099_v55  ;;  %v2602_v37 = vpop.f32.mrb[109].mxu0  ;;  %v9102_v44 = vpop.f32.mrb[101].mxu1 }
 0xafc   :  { %v2818_v63 = vsub.f32 %v2602_v37, %v9102_v44  ;;  %7723 = vrot.lane.b32.xlu1 %v7722_v32, %s7885_s11 }
 0xafe   :  { %v7727_v60 = vpack.i.bf16 %v2819_v42, %v2818_v63  ;;  %v6535_v62 = vpop.f32.mrb[110].mxu0  ;;  %v9106_v52 = vpop.f32.mrb[102].mxu1 }
 0xaff   :  { %v2821_v15 = vsub.f32 %v6535_v62, %v9106_v52  ;;  %v2612_v1 = vpop.f32.mrb[111].mxu0  ;;  %v9109_v39 = vpop.f32.mrb[103].mxu1 }
 0xb00   :  { %v2820_v38 = vsub.f32 %v2612_v1, %v9109_v39  ;;  %7728 = vrot.lane.b32.xlu0 %v7727_v60, %s7885_s11 }
 0xb02   :  { %v7732_v58 = vpack.i.bf16 %v2821_v15, %v2820_v38  ;;  %v6538_v35 = vpop.f32.mrb[112].mxu0  ;;  %v9113_v34 = vpop.f32.mrb[104].mxu1 }
 0xb03   :  { %v2823_v37 = vsub.f32 %v6538_v35, %v9113_v34  ;;  %v2622_v32 = vpop.f32.mrb[113].mxu0  ;;  %v9116_v42 = vpop.f32.mrb[105].mxu1 }
 0xb04   :  { %v2822_v63 = vsub.f32 %v2622_v32, %v9116_v42  ;;  %7733 = vrot.lane.b32.xlu1 %v7732_v58, %s7885_s11 }
 0xb06   :  { %v7737_v62 = vpack.i.bf16 %v2823_v37, %v2822_v63  ;;  %v6541_v36 = vpop.f32.mrb[114].mxu0  ;;  %v9120_v40 = vpop.f32.mrb[106].mxu1 }
 0xb07   :  { %v2825_v1 = vsub.f32 %v6541_v36, %v9120_v40  ;;  %v2632_v60 = vpop.f32.mrb[115].mxu0  ;;  %v9123_v15 = vpop.f32.mrb[107].mxu1 }
 0xb08   :  { %v2824_v38 = vsub.f32 %v2632_v60, %v9123_v15  ;;  %7738 = vrot.lane.b32.xlu0 %v7737_v62, %s7885_s11 }
 0xb0a   :  { %v7742_v35 = vpack.i.bf16 %v2825_v1, %v2824_v38 }
 0xb0c   :  { %7743 = vrot.lane.b32.xlu1 %v7742_v35, %s7885_s11 }
 0xb5a   :  { %v7699_v0 = vpop.permute.xlu0 %7698 }
 0xb5b   :  { %v7701_v32 = vunpack.i.h.bf16 %v7699_v0  ;;  %v7700_v2 = vunpack.i.l.bf16 %v7699_v0 }
 0xb5d   :  { %v2906_v58 = vsel %vm241_vm4, %v9061_v61, %v7700_v2  ;;  %v2907_v37 = vsel %vm241_vm4, %v9058_v41, %v7701_v32 }
 0xb5e   :  { %6612 = vmatprep.mubr.f32.mxu0 %v2906_v58  ;;  %v7704_v36 = vpop.permute.xlu0 %7703 }
 0xb5f   :  { %v7706_v63 = vunpack.i.h.bf16 %v7704_v36  ;;  %v7705_v49 = vunpack.i.l.bf16 %v7704_v36  ;;  %6613 = vmatmul.mubr.f32.vlgmr.msra.gmra.mrb[116].mxu0 %v2907_v37 }
 0xb61   :  { %v2908_v62 = vsel %vm241_vm4, %v9067_v16, %v7705_v49  ;;  %v2909_v1 = vsel %vm241_vm4, %v9064_v7, %v7706_v63 }
 0xb62   :  { %6615 = vmatprep.mubr.f32.mxu0 %v2908_v62  ;;  %v7709_v60 = vpop.permute.xlu0 %7708 }
 0xb63   :  { %v7711_v0 = vunpack.i.h.bf16 %v7709_v60  ;;  %v7710_v38 = vunpack.i.l.bf16 %v7709_v60  ;;  %6616 = vmatmul.mubr.f32.gmra.mrb[118].mxu0 %v2909_v1 }
 0xb65   :  { %v2910_v2 = vsel %vm241_vm4, %v9074_v31, %v7710_v38  ;;  %v2911_v61 = vsel %vm241_vm4, %v9071_v29, %v7711_v0 }
 0xb66   :  { %6618 = vmatprep.mubr.f32.mxu0 %v2910_v2  ;;  %v7714_v41 = vpop.permute.xlu0 %7713 }
 0xb67   :  { %v7716_v35 = vunpack.i.h.bf16 %v7714_v41  ;;  %v7715_v32 = vunpack.i.l.bf16 %v7714_v41  ;;  %6619 = vmatmul.mubr.f32.gmra.mrb[120].mxu0 %v2911_v61 }
 0xb69   :  { %v2912_v49 = vsel %vm241_vm4, %v9081_v48, %v7715_v32  ;;  %v2913_v16 = vsel %vm241_vm4, %v9078_v3, %v7716_v35 }
 0xb6a   :  { %6621 = vmatprep.mubr.f32.mxu0 %v2912_v49  ;;  %v7719_v7 = vpop.permute.xlu0 %7718 }
 0xb6b   :  { %v7721_v58 = vunpack.i.h.bf16 %v7719_v7  ;;  %v7720_v37 = vunpack.i.l.bf16 %v7719_v7  ;;  %6622 = vmatmul.mubr.f32.gmra.mrb[122].mxu0 %v2913_v16 }
 0xb6d   :  { %v2914_v31 = vsel %vm241_vm4, %v9088_v21, %v7720_v37  ;;  %v2915_v29 = vsel %vm241_vm4, %v9085_v50, %v7721_v58 }
 0xb6e   :  { %6624 = vmatprep.mubr.f32.mxu0 %v2914_v31  ;;  %v7724_v36 = vpop.permute.xlu1 %7723 }
 0xb6f   :  { %v7726_v63 = vunpack.i.h.bf16 %v7724_v36  ;;  %v7725_v62 = vunpack.i.l.bf16 %v7724_v36  ;;  %6625 = vmatmul.mubr.f32.gmra.mrb[124].mxu0 %v2915_v29 }
 0xb71   :  { %v2916_v48 = vsel %vm241_vm4, %v9095_v54, %v7725_v62  ;;  %v2917_v3 = vsel %vm241_vm4, %v9092_v33, %v7726_v63 }
 0xb72   :  { %6627 = vmatprep.mubr.f32.mxu0 %v2916_v48  ;;  %v7729_v1 = vpop.permute.xlu0 %7728 }
 0xb73   :  { %v7731_v60 = vunpack.i.h.bf16 %v7729_v1  ;;  %v7730_v0 = vunpack.i.l.bf16 %v7729_v1  ;;  %6628 = vmatmul.mubr.f32.gmra.mrb[126].mxu0 %v2917_v3 }
 0xb75   :  { %v2918_v21 = vsel %vm241_vm4, %v9102_v44, %v7730_v0  ;;  %v2919_v50 = vsel %vm241_vm4, %v9099_v55, %v7731_v60 }
 0xb76   :  { %6630 = vmatprep.mubr.f32.mxu0 %v2918_v21  ;;  %v7734_v38 = vpop.permute.xlu1 %7733 }
 0xb77   :  { %v7736_v2 = vunpack.i.h.bf16 %v7734_v38  ;;  %v7735_v61 = vunpack.i.l.bf16 %v7734_v38  ;;  %6631 = vmatmul.mubr.f32.gmra.mrb[128].mxu0 %v2919_v50 }
 0xb79   :  { %v2920_v54 = vsel %vm241_vm4, %v9109_v39, %v7735_v61  ;;  %v2921_v33 = vsel %vm241_vm4, %v9106_v52, %v7736_v2 }
 0xb7a   :  { %6633 = vmatprep.mubr.f32.mxu0 %v2920_v54  ;;  %v7739_v41 = vpop.permute.xlu0 %7738 }
 0xb7b   :  { %v7741_v35 = vunpack.i.h.bf16 %v7739_v41  ;;  %v7740_v32 = vunpack.i.l.bf16 %v7739_v41  ;;  %6634 = vmatmul.mubr.f32.gmra.mrb[130].mxu0 %v2921_v33 }
 0xb7d   :  { %v2922_v44 = vsel %vm241_vm4, %v9116_v42, %v7740_v32  ;;  %v2923_v55 = vsel %vm241_vm4, %v9113_v34, %v7741_v35  ;;  %v9173_v34 = vld [vmem:[%s9720_s12] ss:$0 sm:$0xff] }
 0xb7e   :  { %6636 = vmatprep.mubr.f32.mxu0 %v2922_v44  ;;  %v7744_v49 = vpop.permute.xlu1 %7743 }
 0xb7f   :  { %v7746_v16 = vunpack.i.h.bf16 %v7744_v49  ;;  %v7745_v7 = vunpack.i.l.bf16 %v7744_v49  ;;  %6637 = vmatmul.mubr.f32.gmra.mrb[132].mxu0 %v2923_v55 }
 0xb81   :  { %v2924_v39 = vsel %vm241_vm4, %v9123_v15, %v7745_v7  ;;  %v2925_v52 = vsel %vm241_vm4, %v9120_v40, %v7746_v16 }
 0xb82   :  { %6639 = vmatprep.mubr.f32.mxu0 %v2924_v39 }
 0xb83   :  { %6640 = vmatmul.mubr.f32.gmra.mrb[134].mxu0 %v2925_v52 }
 0xb84   :  { %5267 = vmatprep.mubr.msk.f32.mxu0 %vm469_vm9, %v8596_v43 }
 0xc32   :  { %v6614_v42 = vpop.f32.mrb[116].mxu0 }
 0xc33   :  { %v2998_v58 = vadd.f32 %v9173_v34, %v6614_v42  ;;  %v2992_v37 = vpop.f32.mrb[117].mxu0 }
 0xc34   :  { %v2993_v31 = vadd.f32 %v9173_v34, %v2992_v37 }
 0xc35   :  { %v3092_v36 = vmax.f32 %v2998_v58, 0.0 }
 0xc36   :  { %v3091_v15 = vmax.f32 %v2993_v31, 0.0  ;;  %v6617_v29 = vpop.f32.mrb[118].mxu0 }
 0xc37   :  { %v3008_v40 = vadd.f32 %v9173_v34, %v6617_v29  ;;  %v3002_v63 = vpop.f32.mrb[119].mxu0 }
 0xc38   :  { %v3003_v62 = vadd.f32 %v9173_v34, %v3002_v63  ;;  %6674 = vmatprep.mubr.f32.mxu1 %v3091_v15 }
 0xc39   :  { %6675 = vmatmul.mubr.f32.vlgmr.msra.gmra.mrb[108].mxu1 %v3092_v36  ;;  %v3094_v1 = vmax.f32 %v3008_v40, 0.0 }
 0xc3a   :  { %v3093_v48 = vmax.f32 %v3003_v62, 0.0  ;;  %v6620_v3 = vpop.f32.mrb[120].mxu0 }
 0xc3b   :  { %v3018_v60 = vadd.f32 %v9173_v34, %v6620_v3  ;;  %v3012_v0 = vpop.f32.mrb[121].mxu0 }
 0xc3c   :  { %v3013_v21 = vadd.f32 %v9173_v34, %v3012_v0  ;;  %6677 = vmatprep.mubr.f32.mxu1 %v3093_v48 }
 0xc3d   :  { %6678 = vmatmul.mubr.f32.gmra.mrb[110].mxu1 %v3094_v1  ;;  %v3096_v2 = vmax.f32 %v3018_v60, 0.0 }
 0xc3e   :  { %v3095_v50 = vmax.f32 %v3013_v21, 0.0  ;;  %v6623_v38 = vpop.f32.mrb[122].mxu0 }
 0xc3f   :  { %v3028_v61 = vadd.f32 %v9173_v34, %v6623_v38  ;;  %v3022_v54 = vpop.f32.mrb[123].mxu0 }
 0xc40   :  { %v3023_v33 = vadd.f32 %v9173_v34, %v3022_v54  ;;  %6680 = vmatprep.mubr.f32.mxu1 %v3095_v50 }
 0xc41   :  { %6681 = vmatmul.mubr.f32.gmra.mrb[112].mxu1 %v3096_v2  ;;  %v3098_v32 = vmax.f32 %v3028_v61, 0.0 }
 0xc42   :  { %v3097_v41 = vmax.f32 %v3023_v33, 0.0  ;;  %v6626_v35 = vpop.f32.mrb[124].mxu0 }
 0xc43   :  { %v3038_v44 = vadd.f32 %v9173_v34, %v6626_v35  ;;  %v3032_v55 = vpop.f32.mrb[125].mxu0 }
 0xc44   :  { %v3033_v49 = vadd.f32 %v9173_v34, %v3032_v55  ;;  %6683 = vmatprep.mubr.f32.mxu1 %v3097_v41 }
 0xc45   :  { %6684 = vmatmul.mubr.f32.gmra.mrb[114].mxu1 %v3098_v32  ;;  %v3100_v39 = vmax.f32 %v3038_v44, 0.0 }
 0xc46   :  { %v3099_v16 = vmax.f32 %v3033_v49, 0.0  ;;  %v6629_v7 = vpop.f32.mrb[126].mxu0 }
 0xc47   :  { %v3048_v52 = vadd.f32 %v9173_v34, %v6629_v7  ;;  %v3042_v42 = vpop.f32.mrb[127].mxu0 }
 0xc48   :  { %v3043_v58 = vadd.f32 %v9173_v34, %v3042_v42  ;;  %6686 = vmatprep.mubr.f32.mxu1 %v3099_v16 }
 0xc49   :  { %6687 = vmatmul.mubr.f32.gmra.mrb[116].mxu1 %v3100_v39  ;;  %v3102_v15 = vmax.f32 %v3048_v52, 0.0 }
 0xc4a   :  { %v3101_v37 = vmax.f32 %v3043_v58, 0.0  ;;  %v6632_v31 = vpop.f32.mrb[128].mxu0 }
 0xc4b   :  { %v3058_v29 = vadd.f32 %v9173_v34, %v6632_v31  ;;  %v3052_v36 = vpop.f32.mrb[129].mxu0 }
 0xc4c   :  { %v3053_v40 = vadd.f32 %v9173_v34, %v3052_v36  ;;  %6689 = vmatprep.mubr.f32.mxu1 %v3101_v37 }
 0xc4d   :  { %6690 = vmatmul.mubr.f32.gmra.mrb[118].mxu1 %v3102_v15  ;;  %v3104_v48 = vmax.f32 %v3058_v29, 0.0 }
 0xc4e   :  { %v3103_v63 = vmax.f32 %v3053_v40, 0.0  ;;  %v6635_v62 = vpop.f32.mrb[130].mxu0 }
 0xc4f   :  { %v3068_v3 = vadd.f32 %v9173_v34, %v6635_v62  ;;  %v3062_v1 = vpop.f32.mrb[131].mxu0 }
 0xc50   :  { %v3063_v60 = vadd.f32 %v9173_v34, %v3062_v1  ;;  %6692 = vmatprep.mubr.f32.mxu1 %v3103_v63 }
 0xc51   :  { %6693 = vmatmul.mubr.f32.gmra.mrb[120].mxu1 %v3104_v48  ;;  %v3106_v50 = vmax.f32 %v3068_v3, 0.0 }
 0xc52   :  { %v3105_v0 = vmax.f32 %v3063_v60, 0.0  ;;  %v6638_v21 = vpop.f32.mrb[132].mxu0 }
 0xc53   :  { %v3078_v38 = vadd.f32 %v9173_v34, %v6638_v21  ;;  %v3072_v2 = vpop.f32.mrb[133].mxu0 }
 0xc54   :  { %v3073_v61 = vadd.f32 %v9173_v34, %v3072_v2  ;;  %6695 = vmatprep.mubr.f32.mxu1 %v3105_v0 }
 0xc55   :  { %6696 = vmatmul.mubr.f32.gmra.mrb[122].mxu1 %v3106_v50  ;;  %v3108_v41 = vmax.f32 %v3078_v38, 0.0 }
 0xc56   :  { %v3107_v54 = vmax.f32 %v3073_v61, 0.0  ;;  %v6641_v33 = vpop.f32.mrb[134].mxu0 }
 0xc57   :  { %v3088_v35 = vadd.f32 %v9173_v34, %v6641_v33  ;;  %v3082_v32 = vpop.f32.mrb[135].mxu0 }
 0xc58   :  { %v3083_v44 = vadd.f32 %v9173_v34, %v3082_v32  ;;  %6698 = vmatprep.mubr.f32.mxu1 %v3107_v54 }
 0xc59   :  { %6699 = vmatmul.mubr.f32.gmra.mrb[124].mxu1 %v3108_v41  ;;  %v3110_v49 = vmax.f32 %v3088_v35, 0.0 }
 0xc5a   :  { %v3109_v55 = vmax.f32 %v3083_v44, 0.0 }
 0xc5c   :  { %6701 = vmatprep.mubr.f32.mxu1 %v3109_v55 }
 0xc5d   :  { %6702 = vmatmul.mubr.f32.gmra.mrb[126].mxu1 %v3110_v49 }
 0xc5e   :  { %6712 = vmatprep.mubr.msk.f32.mxu1 %vm469_vm9, %v8061_v56 }
 0xd0c   :  { %v6676_v16 = vpop.f32.mrb[108].mxu1 }
 0xd0d   :  { %v3183_v7 = vadd.f32 %v8933_v30, %v6676_v16  ;;  %v3177_v39 = vpop.f32.mrb[109].mxu1 }
 0xd0e   :  { %v3178_v52 = vadd.f32 %v8933_v30, %v3177_v39 }
 0xd0f   :  { %v3277_v42 = vmax.f32 %v3183_v7, 0.0 }
 0xd10   :  { %v3276_v58 = vmax.f32 %v3178_v52, 0.0  ;;  %v6679_v37 = vpop.f32.mrb[110].mxu1 }
 0xd11   :  { %v3193_v31 = vadd.f32 %v8933_v30, %v6679_v37  ;;  %v3187_v15 = vpop.f32.mrb[111].mxu1 }
 0xd12   :  { %v7367_v29 = vpack.c.bf16 %v3277_v42, %v3276_v58  ;;  %v3188_v36 = vadd.f32 %v8933_v30, %v3187_v15 }
 0xd13   :  { %v3279_v40 = vmax.f32 %v3193_v31, 0.0 }
 0xd14   :  { %v3278_v63 = vmax.f32 %v3188_v36, 0.0  ;;  %v6682_v62 = vpop.f32.mrb[112].mxu1  ;;  %7368 = vmatpush1.bf16.msra.mxu0 %v7367_v29 }
 0xd15   :  { %v3203_v56 = vadd.f32 %v8933_v30, %v6682_v62  ;;  %v3197_v48 = vpop.f32.mrb[113].mxu1  ;;  %7369 = vmatprep.subr.bf16.mxu0 %v9894_v46 }
 0xd16   :  { %v7370_v3 = vpack.c.bf16 %v3279_v40, %v3278_v63  ;;  %v3198_v1 = vadd.f32 %v8933_v30, %v3197_v48 }
 0xd17   :  { %v3281_v60 = vmax.f32 %v3203_v56, 0.0 }
 0xd18   :  { %v3280_v0 = vmax.f32 %v3198_v1, 0.0  ;;  %v6685_v21 = vpop.f32.mrb[114].mxu1  ;;  %7371 = vmatpush1.bf16.msra.mxu0 %v7370_v3 }
 0xd19   :  { %v3213_v50 = vadd.f32 %v8933_v30, %v6685_v21  ;;  %v3207_v38 = vpop.f32.mrb[115].mxu1  ;;  %7372 = vmatprep.subr.bf16.mxu0 %v9894_v46 }
 0xd1a   :  { %v7373_v2 = vpack.c.bf16 %v3281_v60, %v3280_v0  ;;  %v3208_v61 = vadd.f32 %v8933_v30, %v3207_v38 }
 0xd1b   :  { %v3283_v54 = vmax.f32 %v3213_v50, 0.0 }
 0xd1c   :  { %v3282_v33 = vmax.f32 %v3208_v61, 0.0  ;;  %v6688_v41 = vpop.f32.mrb[116].mxu1  ;;  %7374 = vmatpush1.bf16.msra.mxu0 %v7373_v2 }
 0xd1d   :  { %v3223_v35 = vadd.f32 %v8933_v30, %v6688_v41  ;;  %v3217_v32 = vpop.f32.mrb[117].mxu1  ;;  %7375 = vmatprep.subr.bf16.mxu0 %v9894_v46 }
 0xd1e   :  { %v7376_v44 = vpack.c.bf16 %v3283_v54, %v3282_v33  ;;  %v3218_v55 = vadd.f32 %v8933_v30, %v3217_v32 }
 0xd1f   :  { %v3285_v49 = vmax.f32 %v3223_v35, 0.0 }
 0xd20   :  { %v3284_v16 = vmax.f32 %v3218_v55, 0.0  ;;  %v6691_v7 = vpop.f32.mrb[118].mxu1  ;;  %7377 = vmatpush1.bf16.msra.mxu0 %v7376_v44 }
 0xd21   :  { %v3233_v39 = vadd.f32 %v8933_v30, %v6691_v7  ;;  %v3227_v52 = vpop.f32.mrb[119].mxu1  ;;  %7378 = vmatprep.subr.bf16.mxu0 %v9894_v46 }
 0xd22   :  { %v7379_v42 = vpack.c.bf16 %v3285_v49, %v3284_v16  ;;  %v3228_v58 = vadd.f32 %v8933_v30, %v3227_v52 }
 0xd23   :  { %v3287_v37 = vmax.f32 %v3233_v39, 0.0 }
 0xd24   :  { %v3286_v31 = vmax.f32 %v3228_v58, 0.0  ;;  %v6694_v15 = vpop.f32.mrb[120].mxu1  ;;  %7380 = vmatpush1.bf16.msra.mxu0 %v7379_v42 }
 0xd25   :  { %v3243_v29 = vadd.f32 %v8933_v30, %v6694_v15  ;;  %v3237_v36 = vpop.f32.mrb[121].mxu1  ;;  %7381 = vmatprep.subr.bf16.mxu0 %v9894_v46 }
 0xd26   :  { %v7382_v40 = vpack.c.bf16 %v3287_v37, %v3286_v31  ;;  %v3238_v63 = vadd.f32 %v8933_v30, %v3237_v36 }
 0xd27   :  { %v3289_v62 = vmax.f32 %v3243_v29, 0.0 }
 0xd28   :  { %v3288_v56 = vmax.f32 %v3238_v63, 0.0  ;;  %v6697_v48 = vpop.f32.mrb[122].mxu1  ;;  %7383 = vmatpush1.bf16.msra.mxu0 %v7382_v40 }
 0xd29   :  { %v3253_v3 = vadd.f32 %v8933_v30, %v6697_v48  ;;  %v3247_v1 = vpop.f32.mrb[123].mxu1  ;;  %7384 = vmatprep.subr.bf16.mxu0 %v9894_v46  ;;  %v9952_v48 = vld [vmem:[#allocation20_spill] sm:$0xff] }
 0xd2a   :  { %v7385_v60 = vpack.c.bf16 %v3289_v62, %v3288_v56  ;;  %v3248_v0 = vadd.f32 %v8933_v30, %v3247_v1  ;;  %v9950_v62 = vld [vmem:[#allocation18_spill] sm:$0xff]  ;;  %v9951_v56 = vld [vmem:[#allocation19_spill] sm:$0xff]  ;;  %v9954_v1 = vld [vmem:[#allocation41_spill] sm:$0xff] }
 0xd2b   :  { %v3291_v21 = vmax.f32 %v3253_v3, 0.0  ;;  %v9953_v3 = vld [vmem:[#allocation36_spill] sm:$0xff] }
 0xd2c   :  { %v3290_v50 = vmax.f32 %v3248_v0, 0.0  ;;  %v6700_v38 = vpop.f32.mrb[124].mxu1  ;;  %7386 = vmatpush1.bf16.msra.mxu0 %v7385_v60  ;;  %v9955_v60 = vld [vmem:[#allocation21_spill] sm:$0xff]  ;;  %v9956_v0 = vld [vmem:[#allocation22_spill] sm:$0xff] }
 0xd2d   :  { %v3263_v2 = vadd.f32 %v8933_v30, %v6700_v38  ;;  %v3257_v61 = vpop.f32.mrb[125].mxu1  ;;  %7387 = vmatprep.subr.bf16.mxu0 %v9894_v46  ;;  %v9959_v38 = vld [vmem:[#allocation25_spill] sm:$0xff] }
 0xd2e   :  { %v7388_v54 = vpack.c.bf16 %v3291_v21, %v3290_v50  ;;  %v3258_v33 = vadd.f32 %v8933_v30, %v3257_v61  ;;  %v9957_v21 = vld [vmem:[#allocation23_spill] sm:$0xff]  ;;  %v9958_v50 = vld [vmem:[#allocation24_spill] sm:$0xff] }
 0xd2f   :  { %v3293_v41 = vmax.f32 %v3263_v2, 0.0  ;;  %v9960_v2 = vld [vmem:[#allocation26_spill] sm:$0xff]  ;;  %v9961_v61 = vld [vmem:[#allocation27_spill] sm:$0xff] }
 0xd30   :  { %v3292_v35 = vmax.f32 %v3258_v33, 0.0  ;;  %v6703_v32 = vpop.f32.mrb[126].mxu1  ;;  %7389 = vmatpush1.bf16.msra.mxu0 %v7388_v54  ;;  %v9962_v54 = vld [vmem:[#allocation28_spill] sm:$0xff]  ;;  %v9963_v33 = vld [vmem:[#allocation29_spill] sm:$0xff] }
 0xd31   :  { %v3273_v44 = vadd.f32 %v8933_v30, %v6703_v32  ;;  %v3267_v55 = vpop.f32.mrb[127].mxu1  ;;  %7390 = vmatprep.subr.bf16.mxu0 %v9894_v46 }
 0xd32   :  { %v7391_v49 = vpack.c.bf16 %v3293_v41, %v3292_v35  ;;  %v3268_v16 = vadd.f32 %v8933_v30, %v3267_v55  ;;  %v9964_v41 = vld [vmem:[#allocation30_spill] sm:$0xff] }
 0xd33   :  { %v3295_v7 = vmax.f32 %v3273_v44, 0.0 }
 0xd34   :  { %v3294_v39 = vmax.f32 %v3268_v16, 0.0  ;;  %7392 = vmatpush1.bf16.msra.mxu0 %v7391_v49 }
 0xd35   :  { %7393 = vmatprep.subr.bf16.mxu0 %v9894_v46 }
 0xd36   :  { %v7394_v52 = vpack.c.bf16 %v3295_v7, %v3294_v39 }
 0xd38   :  { %7395 = vmatpush1.bf16.msra.mxu0 %v7394_v52 }
 0xd3b   :  { %3361 = vmatmul.mubr.f32.vlgmr.msra.gmra.mrb[136].mxu0 %v8633_v27 }
 0xd3c   :  { %5268 = vmatprep.mubr.msk.f32.mxu0 %vm469_vm9, %v8636_v22 }
 0xd3f   :  { %3366 = vmatmul.mubr.f32.gmra.mrb[138].mxu0 %v8638_v28 }
 0xd40   :  { %5269 = vmatprep.mubr.msk.f32.mxu0 %vm469_vm9, %v8641_v51 }
 0xd43   :  { %3371 = vmatmul.mubr.f32.gmra.mrb[140].mxu0 %v8645_v9 }
 0xd44   :  { %5270 = vmatprep.mubr.msk.f32.mxu0 %vm469_vm9, %v8650_v10 }
 0xd47   :  { %3376 = vmatmul.mubr.f32.gmra.mrb[142].mxu0 %v8653_v4 }
 0xd48   :  { %6750 = vmatprep.mubr.msk.f32.mxu0 %vm469_vm9, %v8063_v57  ;;  %v9930_v57 = vld [vmem:[#allocation37_spill] sm:$0xff] }
 0xe0e   :  { %v3362_v30 = vpop.f32.mrb[136].mxu0 }
 0xe0f   :  { %v3364_v42 = vpop.f32.mrb[137].mxu0 }
 0xe12   :  { %v3367_v58 = vpop.f32.mrb[138].mxu0 }
 0xe13   :  { %v7396_v37 = vpack.c.bf16 %v3367_v58, %v3362_v30  ;;  %v3369_v31 = vpop.f32.mrb[139].mxu0 }
 0xe15   :  { %7397 = vmatprep.subr.bf16.mxu1 %v7396_v37  ;;  %7405 = vmatprep.subr.bf16.mxu0 %v7396_v37 }
 0xe16   :  { %v3372_v15 = vpop.f32.mrb[140].mxu0  ;;  %7399 = vmatpush3.bf16.msra.mxu1 %v7396_v37  ;;  %7407 = vmatpush3.bf16.msra.mxu0 %v7396_v37 }
 0xe17   :  { %v3374_v29 = vpop.f32.mrb[141].mxu0 }
 0xe1a   :  { %v3377_v36 = vpop.f32.mrb[142].mxu0 }
 0xe1b   :  { %v7400_v40 = vpack.c.bf16 %v3377_v36, %v3372_v15  ;;  %v3379_v63 = vpop.f32.mrb[143].mxu0 }
 0xe1d   :  { %7401 = vmatprep.subr.bf16.mxu1 %v7400_v40  ;;  %7409 = vmatprep.subr.bf16.mxu0 %v7400_v40 }
 0xe1e   :  { %7403 = vmatpush3.bf16.msra.mxu1 %v7400_v40  ;;  %7411 = vmatpush3.bf16.msra.mxu0 %v7400_v40 }
 0xe1f   :  { %7413 = vmatprep.subr.bf16.mxu1 %v8287_v6  ;;  %7445 = vmatprep.subr.bf16.mxu0 %v8429_v47 }
 0xe21   :  { %6713 = vmatmul.mubr.msk.f32.vlgmr.msra.gmra.mrb[128].mxu1 %vm469_vm9, %v8078_v11  ;;  %6751 = vmatmul.mubr.msk.f32.vlgmr.msra.gmra.mrb[144].mxu0 %vm469_vm9, %v8080_v12  ;;  %v9931_v11 = vld [vmem:[#allocation5_spill] sm:$0xff]  ;;  %v9932_v12 = vld [vmem:[#allocation6_spill] sm:$0xff] }
 0xe22   :  { %6715 = vmatprep.mubr.msk.f32.mxu1 %vm469_vm9, %v8082_v13  ;;  %6753 = vmatprep.mubr.msk.f32.mxu0 %vm469_vm9, %v8084_v14  ;;  %v9933_v13 = vld [vmem:[#allocation7_spill] sm:$0xff]  ;;  %v9934_v14 = vld [vmem:[#allocation8_spill] sm:$0xff] }
 0xe23   :  { %7415 = vmatpush3.bf16.msra.mxu1 %v8287_v6  ;;  %7447 = vmatpush3.bf16.msra.mxu0 %v8429_v47  ;;  %v9943_v6 = vld [vmem:[#allocation13_spill] sm:$0xff]  ;;  %v9945_v47 = vld [vmem:[#allocation15_spill] sm:$0xff] }
 0xe24   :  { %7417 = vmatprep.subr.bf16.mxu1 %v8292_v8  ;;  %7449 = vmatprep.subr.bf16.mxu0 %v8434_v45 }
 0xe25   :  { %6716 = vmatmul.mubr.msk.f32.gmra.mrb[130].mxu1 %vm469_vm9, %v8096_v17  ;;  %6754 = vmatmul.mubr.msk.f32.gmra.mrb[146].mxu0 %vm469_vm9, %v8098_v18  ;;  %v9935_v17 = vld [vmem:[#allocation33_spill] sm:$0xff]  ;;  %v9936_v18 = vld [vmem:[#allocation38_spill] sm:$0xff] }
 0xe26   :  { %6718 = vmatprep.mubr.msk.f32.mxu1 %vm469_vm9, %v8104_v19  ;;  %6756 = vmatprep.mubr.msk.f32.mxu0 %vm469_vm9, %v8106_v20  ;;  %v9937_v19 = vld [vmem:[#allocation9_spill] sm:$0xff]  ;;  %v9938_v20 = vld [vmem:[#allocation10_spill] sm:$0xff] }
 0xe27   :  { %7419 = vmatpush3.bf16.msra.mxu1 %v8292_v8  ;;  %7451 = vmatpush3.bf16.msra.mxu0 %v8434_v45  ;;  %v9944_v8 = vld [vmem:[#allocation14_spill] sm:$0xff]  ;;  %v9946_v45 = vld [vmem:[#allocation16_spill] sm:$0xff] }
 0xe28   :  { %7421 = vmatprep.subr.bf16.mxu1 %v9874_v53  ;;  %7453 = vmatprep.subr.bf16.mxu0 %v8452_v5 }
 0xe29   :  { %6719 = vmatmul.mubr.msk.f32.gmra.mrb[132].mxu1 %vm469_vm9, %v8118_v23  ;;  %6757 = vmatmul.mubr.msk.f32.gmra.mrb[148].mxu0 %vm469_vm9, %v8120_v24  ;;  %v9939_v23 = vld [vmem:[#allocation11_spill] sm:$0xff]  ;;  %v9940_v24 = vld [vmem:[#allocation12_spill] sm:$0xff] }
 0xe2a   :  { %6721 = vmatprep.mubr.msk.f32.mxu1 %vm469_vm9, %v8126_v25  ;;  %6759 = vmatprep.mubr.msk.f32.mxu0 %vm469_vm9, %v8128_v26  ;;  %v9941_v25 = vld [vmem:[#allocation34_spill] sm:$0xff]  ;;  %v9942_v26 = vld [vmem:[#allocation39_spill] sm:$0xff] }
 0xe2b   :  { %7423 = vmatpush3.bf16.msra.mxu1 %v9874_v53  ;;  %7455 = vmatpush3.bf16.msra.mxu0 %v8452_v5  ;;  %v9947_v5 = vld [vmem:[#allocation35_spill] sm:$0xff]  ;;  %v9948_v53 = vld [vmem:[#allocation40_spill] sm:$0xff] }
 0xe2c   :  { %7425 = vmatprep.subr.bf16.mxu1 %v9877_v59  ;;  %7457 = vmatprep.subr.bf16.mxu0 %v9930_v57 }
 0xe2d   :  { %6722 = vmatmul.mubr.msk.f32.gmra.mrb[134].mxu1 %vm469_vm9, %v9931_v11  ;;  %6760 = vmatmul.mubr.msk.f32.gmra.mrb[150].mxu0 %vm469_vm9, %v9932_v12 }
 0xe2e   :  { %6724 = vmatprep.mubr.msk.f32.mxu1 %vm469_vm9, %v9933_v13  ;;  %6762 = vmatprep.mubr.msk.f32.mxu0 %vm469_vm9, %v9934_v14 }
 0xe2f   :  { %7427 = vmatpush3.bf16.msra.mxu1 %v9877_v59  ;;  %7459 = vmatpush3.bf16.msra.mxu0 %v9930_v57  ;;  %v9949_v59 = vld [vmem:[#allocation17_spill] sm:$0xff] }
 0xe30   :  { %7429 = vmatprep.subr.bf16.mxu1 %v9935_v17  ;;  %7461 = vmatprep.subr.bf16.mxu0 %v9936_v18 }
 0xe31   :  { %6725 = vmatmul.mubr.msk.f32.gmra.mrb[136].mxu1 %vm469_vm9, %v9937_v19  ;;  %6763 = vmatmul.mubr.msk.f32.gmra.mrb[152].mxu0 %vm469_vm9, %v9938_v20 }
 0xe32   :  { %6727 = vmatprep.mubr.msk.f32.mxu1 %vm469_vm9, %v9939_v23  ;;  %6765 = vmatprep.mubr.msk.f32.mxu0 %vm469_vm9, %v9940_v24 }
 0xe33   :  { %7431 = vmatpush3.bf16.msra.mxu1 %v9935_v17  ;;  %7463 = vmatpush3.bf16.msra.mxu0 %v9936_v18 }
 0xe34   :  { %7433 = vmatprep.subr.bf16.mxu1 %v9941_v25  ;;  %7465 = vmatprep.subr.bf16.mxu0 %v9942_v26 }
 0xe35   :  { %6728 = vmatmul.mubr.msk.f32.gmra.mrb[138].mxu1 %vm469_vm9, %v9943_v6  ;;  %6766 = vmatmul.mubr.msk.f32.gmra.mrb[154].mxu0 %vm469_vm9, %v9944_v8 }
 0xe36   :  { %6730 = vmatprep.mubr.msk.f32.mxu1 %vm469_vm9, %v9945_v47  ;;  %6768 = vmatprep.mubr.msk.f32.mxu0 %vm469_vm9, %v9946_v45 }
 0xe37   :  { %7435 = vmatpush3.bf16.msra.mxu1 %v9941_v25  ;;  %7467 = vmatpush3.bf16.msra.mxu0 %v9942_v26 }
 0xe38   :  { %7437 = vmatprep.subr.bf16.mxu1 %v9947_v5  ;;  %7469 = vmatprep.subr.bf16.mxu0 %v9948_v53 }
 0xe39   :  { %6731 = vmatmul.mubr.msk.f32.gmra.mrb[140].mxu1 %vm469_vm9, %v9949_v59  ;;  %6769 = vmatmul.mubr.msk.f32.gmra.mrb[156].mxu0 %vm469_vm9, %v9950_v62 }
 0xe3a   :  { %6733 = vmatprep.mubr.msk.f32.mxu1 %vm469_vm9, %v9951_v56  ;;  %6771 = vmatprep.mubr.msk.f32.mxu0 %vm469_vm9, %v9952_v48 }
 0xe3b   :  { %7439 = vmatpush3.bf16.msra.mxu1 %v9947_v5  ;;  %7471 = vmatpush3.bf16.msra.mxu0 %v9948_v53 }
 0xe3c   :  { %7441 = vmatprep.subr.bf16.mxu1 %v9953_v3  ;;  %7473 = vmatprep.subr.bf16.mxu0 %v9954_v1 }
 0xe3d   :  { %6734 = vmatmul.mubr.msk.f32.gmra.mrb[142].mxu1 %vm469_vm9, %v9955_v60  ;;  %6772 = vmatmul.mubr.msk.f32.gmra.mrb[158].mxu0 %vm469_vm9, %v9956_v0 }
 0xe3e   :  { %6736 = vmatprep.mubr.msk.f32.mxu1 %vm469_vm9, %v9957_v21  ;;  %6774 = vmatprep.mubr.msk.f32.mxu0 %vm469_vm9, %v9958_v50 }
 0xe3f   :  { %7443 = vmatpush3.bf16.msra.mxu1 %v9953_v3  ;;  %7475 = vmatpush3.bf16.msra.mxu0 %v9954_v1 }
 0xe40   :  { %7476 = vmatprep.subr.bf16.mxu1 %v9894_v46 }
 0xe41   :  { %6737 = vmatmul.mubr.msk.f32.gmra.mrb[144].mxu1 %vm469_vm9, %v9959_v38  ;;  %6775 = vmatmul.mubr.msk.f32.gmra.mrb[160].mxu0 %vm469_vm9, %v9960_v2 }
 0xe42   :  { %6739 = vmatprep.mubr.msk.f32.mxu1 %vm469_vm9, %v9961_v61  ;;  %6777 = vmatprep.mubr.msk.f32.mxu0 %vm469_vm9, %v9962_v54 }
 0xe45   :  { %6740 = vmatmul.mubr.msk.f32.gmra.mrb[146].mxu1 %vm469_vm9, %v9963_v33  ;;  %6778 = vmatmul.mubr.msk.f32.gmra.mrb[162].mxu0 %vm469_vm9, %v9964_v41 }
 0xef4   :  { %v6714_v35 = vpop.f32.mrb[128].mxu1  ;;  %v9347_v32 = vpop.f32.mrb[144].mxu0 }
 0xef5   :  { %v3712_v44 = vsub.f32 %v6714_v35, %v9347_v32  ;;  %v3447_v55 = vpop.f32.mrb[129].mxu1  ;;  %v9350_v49 = vpop.f32.mrb[145].mxu0 }
 0xef6   :  { %v3711_v16 = vsub.f32 %v3447_v55, %v9350_v49 }
 0xef8   :  { %v7747_v7 = vpack.i.bf16 %v3712_v44, %v3711_v16  ;;  %v6717_v39 = vpop.f32.mrb[130].mxu1  ;;  %v9353_v52 = vpop.f32.mrb[146].mxu0 }
 0xef9   :  { %v3714_v30 = vsub.f32 %v6717_v39, %v9353_v52  ;;  %v3457_v42 = vpop.f32.mrb[131].mxu1  ;;  %v9356_v58 = vpop.f32.mrb[147].mxu0 }
 0xefa   :  { %v3713_v37 = vsub.f32 %v3457_v42, %v9356_v58  ;;  %7748 = vrot.lane.b32.xlu0 %v7747_v7, %s7885_s11 }
 0xefc   :  { %v7752_v31 = vpack.i.bf16 %v3714_v30, %v3713_v37  ;;  %v6720_v15 = vpop.f32.mrb[132].mxu1  ;;  %v9360_v29 = vpop.f32.mrb[148].mxu0 }
 0xefd   :  { %v3716_v36 = vsub.f32 %v6720_v15, %v9360_v29  ;;  %v3467_v40 = vpop.f32.mrb[133].mxu1  ;;  %v9363_v63 = vpop.f32.mrb[149].mxu0 }
 0xefe   :  { %v3715_v57 = vsub.f32 %v3467_v40, %v9363_v63  ;;  %7753 = vrot.lane.b32.xlu1 %v7752_v31, %s7885_s11 }
 0xf00   :  { %v7757_v11 = vpack.i.bf16 %v3716_v36, %v3715_v57  ;;  %v6723_v12 = vpop.f32.mrb[134].mxu1  ;;  %v9367_v13 = vpop.f32.mrb[150].mxu0 }
 0xf01   :  { %v3718_v14 = vsub.f32 %v6723_v12, %v9367_v13  ;;  %v3477_v17 = vpop.f32.mrb[135].mxu1  ;;  %v9370_v18 = vpop.f32.mrb[151].mxu0 }
 0xf02   :  { %v3717_v19 = vsub.f32 %v3477_v17, %v9370_v18  ;;  %7758 = vrot.lane.b32.xlu0 %v7757_v11, %s7885_s11 }
 0xf04   :  { %v7762_v20 = vpack.i.bf16 %v3718_v14, %v3717_v19  ;;  %v6726_v23 = vpop.f32.mrb[136].mxu1  ;;  %v9374_v24 = vpop.f32.mrb[152].mxu0 }
 0xf05   :  { %v3720_v25 = vsub.f32 %v6726_v23, %v9374_v24  ;;  %v3487_v26 = vpop.f32.mrb[137].mxu1  ;;  %v9377_v6 = vpop.f32.mrb[153].mxu0 }
 0xf06   :  { %v3719_v8 = vsub.f32 %v3487_v26, %v9377_v6  ;;  %7763 = vrot.lane.b32.xlu1 %v7762_v20, %s7885_s11 }
 0xf08   :  { %v7767_v47 = vpack.i.bf16 %v3720_v25, %v3719_v8  ;;  %v6729_v45 = vpop.f32.mrb[138].mxu1  ;;  %v9381_v5 = vpop.f32.mrb[154].mxu0 }
 0xf09   :  { %v3722_v53 = vsub.f32 %v6729_v45, %v9381_v5  ;;  %v3497_v59 = vpop.f32.mrb[139].mxu1  ;;  %v9384_v62 = vpop.f32.mrb[155].mxu0 }
 0xf0a   :  { %v3721_v56 = vsub.f32 %v3497_v59, %v9384_v62  ;;  %7768 = vrot.lane.b32.xlu0 %v7767_v47, %s7885_s11 }
 0xf0c   :  { %v7772_v48 = vpack.i.bf16 %v3722_v53, %v3721_v56  ;;  %v6732_v3 = vpop.f32.mrb[140].mxu1  ;;  %v9388_v1 = vpop.f32.mrb[156].mxu0 }
 0xf0d   :  { %v3724_v60 = vsub.f32 %v6732_v3, %v9388_v1  ;;  %v3507_v0 = vpop.f32.mrb[141].mxu1  ;;  %v9391_v21 = vpop.f32.mrb[157].mxu0 }
 0xf0e   :  { %v3723_v50 = vsub.f32 %v3507_v0, %v9391_v21  ;;  %7773 = vrot.lane.b32.xlu1 %v7772_v48, %s7885_s11 }
 0xf10   :  { %v7777_v38 = vpack.i.bf16 %v3724_v60, %v3723_v50  ;;  %v6735_v2 = vpop.f32.mrb[142].mxu1  ;;  %v9395_v61 = vpop.f32.mrb[158].mxu0 }
 0xf11   :  { %v3726_v54 = vsub.f32 %v6735_v2, %v9395_v61  ;;  %v3517_v33 = vpop.f32.mrb[143].mxu1  ;;  %v9398_v41 = vpop.f32.mrb[159].mxu0 }
 0xf12   :  { %v3725_v35 = vsub.f32 %v3517_v33, %v9398_v41  ;;  %7778 = vrot.lane.b32.xlu0 %v7777_v38, %s7885_s11 }
 0xf14   :  { %v7782_v44 = vpack.i.bf16 %v3726_v54, %v3725_v35  ;;  %v6738_v55 = vpop.f32.mrb[144].mxu1  ;;  %v9402_v16 = vpop.f32.mrb[160].mxu0 }
 0xf15   :  { %v3728_v7 = vsub.f32 %v6738_v55, %v9402_v16  ;;  %v3527_v39 = vpop.f32.mrb[145].mxu1  ;;  %v9405_v30 = vpop.f32.mrb[161].mxu0 }
 0xf16   :  { %v3727_v42 = vsub.f32 %v3527_v39, %v9405_v30  ;;  %7783 = vrot.lane.b32.xlu1 %v7782_v44, %s7885_s11 }
 0xf18   :  { %v7787_v37 = vpack.i.bf16 %v3728_v7, %v3727_v42  ;;  %v6741_v31 = vpop.f32.mrb[146].mxu1  ;;  %v9409_v15 = vpop.f32.mrb[162].mxu0 }
 0xf19   :  { %v3730_v36 = vsub.f32 %v6741_v31, %v9409_v15  ;;  %v3537_v40 = vpop.f32.mrb[147].mxu1  ;;  %v9412_v57 = vpop.f32.mrb[163].mxu0 }
 0xf1a   :  { %v3729_v11 = vsub.f32 %v3537_v40, %v9412_v57  ;;  %7788 = vrot.lane.b32.xlu0 %v7787_v37, %s7885_s11 }
 0xf1c   :  { %v7792_v12 = vpack.i.bf16 %v3730_v36, %v3729_v11 }
 0xf1e   :  { %7793 = vrot.lane.b32.xlu1 %v7792_v12, %s7885_s11 }
 0xf6c   :  { %v7749_v14 = vpop.permute.xlu0 %7748 }
 0xf6d   :  { %v7751_v17 = vunpack.i.h.bf16 %v7749_v14  ;;  %v7750_v19 = vunpack.i.l.bf16 %v7749_v14 }
 0xf6f   :  { %v3811_v20 = vsel %vm241_vm4, %v9350_v49, %v7750_v19  ;;  %v3812_v23 = vsel %vm241_vm4, %v9347_v32, %v7751_v17 }
 0xf70   :  { %6812 = vmatprep.mubr.f32.mxu1 %v3811_v20  ;;  %v7754_v25 = vpop.permute.xlu1 %7753 }
 0xf71   :  { %v7756_v26 = vunpack.i.h.bf16 %v7754_v25  ;;  %v7755_v8 = vunpack.i.l.bf16 %v7754_v25  ;;  %6813 = vmatmul.mubr.f32.vlgmr.msra.gmra.mrb[148].mxu1 %v3812_v23 }
 0xf73   :  { %v3813_v47 = vsel %vm241_vm4, %v9356_v58, %v7755_v8  ;;  %v3814_v45 = vsel %vm241_vm4, %v9353_v52, %v7756_v26 }
 0xf74   :  { %6815 = vmatprep.mubr.f32.mxu1 %v3813_v47  ;;  %v7759_v53 = vpop.permute.xlu0 %7758 }
 0xf75   :  { %v7761_v59 = vunpack.i.h.bf16 %v7759_v53  ;;  %v7760_v56 = vunpack.i.l.bf16 %v7759_v53  ;;  %6816 = vmatmul.mubr.f32.gmra.mrb[150].mxu1 %v3814_v45 }
 0xf77   :  { %v3815_v49 = vsel %vm241_vm4, %v9363_v63, %v7760_v56  ;;  %v3816_v32 = vsel %vm241_vm4, %v9360_v29, %v7761_v59 }
 0xf78   :  { %6818 = vmatprep.mubr.f32.mxu1 %v3815_v49  ;;  %v7764_v48 = vpop.permute.xlu1 %7763 }
 0xf79   :  { %v7766_v3 = vunpack.i.h.bf16 %v7764_v48  ;;  %v7765_v60 = vunpack.i.l.bf16 %v7764_v48  ;;  %6819 = vmatmul.mubr.f32.gmra.mrb[152].mxu1 %v3816_v32 }
 0xf7b   :  { %v3817_v58 = vsel %vm241_vm4, %v9370_v18, %v7765_v60  ;;  %v3818_v52 = vsel %vm241_vm4, %v9367_v13, %v7766_v3 }
 0xf7c   :  { %6821 = vmatprep.mubr.f32.mxu1 %v3817_v58  ;;  %v7769_v0 = vpop.permute.xlu0 %7768 }
 0xf7d   :  { %v7771_v50 = vunpack.i.h.bf16 %v7769_v0  ;;  %v7770_v38 = vunpack.i.l.bf16 %v7769_v0  ;;  %6822 = vmatmul.mubr.f32.gmra.mrb[154].mxu1 %v3818_v52 }
 0xf7f   :  { %v3819_v63 = vsel %vm241_vm4, %v9377_v6, %v7770_v38  ;;  %v3820_v29 = vsel %vm241_vm4, %v9374_v24, %v7771_v50 }
 0xf80   :  { %6824 = vmatprep.mubr.f32.mxu1 %v3819_v63  ;;  %v7774_v2 = vpop.permute.xlu1 %7773 }
 0xf81   :  { %v7776_v54 = vunpack.i.h.bf16 %v7774_v2  ;;  %v7775_v33 = vunpack.i.l.bf16 %v7774_v2  ;;  %6825 = vmatmul.mubr.f32.gmra.mrb[156].mxu1 %v3820_v29 }
 0xf83   :  { %v3821_v18 = vsel %vm241_vm4, %v9384_v62, %v7775_v33  ;;  %v3822_v13 = vsel %vm241_vm4, %v9381_v5, %v7776_v54 }
 0xf84   :  { %6827 = vmatprep.mubr.f32.mxu1 %v3821_v18  ;;  %v7779_v35 = vpop.permute.xlu0 %7778 }
 0xf85   :  { %v7781_v44 = vunpack.i.h.bf16 %v7779_v35  ;;  %v7780_v55 = vunpack.i.l.bf16 %v7779_v35  ;;  %6828 = vmatmul.mubr.f32.gmra.mrb[158].mxu1 %v3822_v13 }
 0xf87   :  { %v3823_v6 = vsel %vm241_vm4, %v9391_v21, %v7780_v55  ;;  %v3824_v24 = vsel %vm241_vm4, %v9388_v1, %v7781_v44 }
 0xf88   :  { %6830 = vmatprep.mubr.f32.mxu1 %v3823_v6  ;;  %v7784_v7 = vpop.permute.xlu1 %7783 }
 0xf89   :  { %v7786_v39 = vunpack.i.h.bf16 %v7784_v7  ;;  %v7785_v42 = vunpack.i.l.bf16 %v7784_v7  ;;  %6831 = vmatmul.mubr.f32.gmra.mrb[160].mxu1 %v3824_v24 }
 0xf8b   :  { %v3825_v62 = vsel %vm241_vm4, %v9398_v41, %v7785_v42  ;;  %v3826_v5 = vsel %vm241_vm4, %v9395_v61, %v7786_v39 }
 0xf8c   :  { %6833 = vmatprep.mubr.f32.mxu1 %v3825_v62  ;;  %v7789_v37 = vpop.permute.xlu0 %7788 }
 0xf8d   :  { %v7791_v31 = vunpack.i.h.bf16 %v7789_v37  ;;  %v7790_v36 = vunpack.i.l.bf16 %v7789_v37  ;;  %6834 = vmatmul.mubr.f32.gmra.mrb[162].mxu1 %v3826_v5 }
 0xf8f   :  { %v3827_v21 = vsel %vm241_vm4, %v9405_v30, %v7790_v36  ;;  %v3828_v1 = vsel %vm241_vm4, %v9402_v16, %v7791_v31 }
 0xf90   :  { %6836 = vmatprep.mubr.f32.mxu1 %v3827_v21  ;;  %v7794_v40 = vpop.permute.xlu1 %7793 }
 0xf91   :  { %v7796_v11 = vunpack.i.h.bf16 %v7794_v40  ;;  %v7795_v12 = vunpack.i.l.bf16 %v7794_v40  ;;  %6837 = vmatmul.mubr.f32.gmra.mrb[164].mxu1 %v3828_v1 }
 0xf93   :  { %v3829_v41 = vsel %vm241_vm4, %v9412_v57, %v7795_v12  ;;  %v3830_v61 = vsel %vm241_vm4, %v9409_v15, %v7796_v11 }
 0xf94   :  { %6839 = vmatprep.mubr.f32.mxu1 %v3829_v41 }
 0xf95   :  { %6840 = vmatmul.mubr.f32.gmra.mrb[166].mxu1 %v3830_v61 }
 0xf96   :  { %5311 = vmatprep.mubr.msk.f32.mxu1 %vm469_vm9, %v8596_v43 }
0x1044   :  { %v6814_v30 = vpop.f32.mrb[148].mxu1 }
0x1045   :  { %v3903_v14 = vadd.f32 %v9173_v34, %v6814_v30  ;;  %v3897_v16 = vpop.f32.mrb[149].mxu1 }
0x1046   :  { %v3898_v17 = vadd.f32 %v9173_v34, %v3897_v16 }
0x1047   :  { %v3997_v23 = vmax.f32 %v3903_v14, 0.0 }
0x1048   :  { %v3996_v19 = vmax.f32 %v3898_v17, 0.0  ;;  %v6817_v20 = vpop.f32.mrb[150].mxu1 }
0x1049   :  { %v3913_v25 = vadd.f32 %v9173_v34, %v6817_v20  ;;  %v3907_v57 = vpop.f32.mrb[151].mxu1 }
0x104a   :  { %v3908_v26 = vadd.f32 %v9173_v34, %v3907_v57  ;;  %6874 = vmatprep.mubr.f32.mxu0 %v3996_v19 }
0x104b   :  { %6875 = vmatmul.mubr.f32.vlgmr.msra.gmra.mrb[164].mxu0 %v3997_v23  ;;  %v3999_v47 = vmax.f32 %v3913_v25, 0.0  ;;  %v9482_v23 = vld [vmem:[%s9722_s14] ss:$0 sm:$0xff] }
0x104c   :  { %v3998_v15 = vmax.f32 %v3908_v26, 0.0  ;;  %v6820_v8 = vpop.f32.mrb[152].mxu1 }
0x104d   :  { %v3923_v43 = vadd.f32 %v9173_v34, %v6820_v8  ;;  %v3917_v45 = vpop.f32.mrb[153].mxu1 }
0x104e   :  { %v3918_v53 = vadd.f32 %v9173_v34, %v3917_v45  ;;  %6877 = vmatprep.mubr.f32.mxu0 %v3998_v15 }
0x104f   :  { %6878 = vmatmul.mubr.f32.gmra.mrb[166].mxu0 %v3999_v47  ;;  %v4001_v49 = vmax.f32 %v3923_v43, 0.0 }
0x1050   :  { %v4000_v59 = vmax.f32 %v3918_v53, 0.0  ;;  %v6823_v56 = vpop.f32.mrb[154].mxu1 }
0x1051   :  { %v3933_v32 = vadd.f32 %v9173_v34, %v6823_v56  ;;  %v3927_v48 = vpop.f32.mrb[155].mxu1 }
0x1052   :  { %v3928_v3 = vadd.f32 %v9173_v34, %v3927_v48  ;;  %6880 = vmatprep.mubr.f32.mxu0 %v4000_v59 }
0x1053   :  { %6881 = vmatmul.mubr.f32.gmra.mrb[168].mxu0 %v4001_v49  ;;  %v4003_v52 = vmax.f32 %v3933_v32, 0.0 }
0x1054   :  { %v4002_v60 = vmax.f32 %v3928_v3, 0.0  ;;  %v6826_v58 = vpop.f32.mrb[156].mxu1 }
0x1055   :  { %v3943_v0 = vadd.f32 %v9173_v34, %v6826_v58  ;;  %v3937_v50 = vpop.f32.mrb[157].mxu1 }
0x1056   :  { %v3938_v38 = vadd.f32 %v9173_v34, %v3937_v50  ;;  %6883 = vmatprep.mubr.f32.mxu0 %v4002_v60 }
0x1057   :  { %6884 = vmatmul.mubr.f32.gmra.mrb[170].mxu0 %v4003_v52  ;;  %v4005_v2 = vmax.f32 %v3943_v0, 0.0 }
0x1058   :  { %v4004_v63 = vmax.f32 %v3938_v38, 0.0  ;;  %v6829_v29 = vpop.f32.mrb[158].mxu1 }
0x1059   :  { %v3953_v54 = vadd.f32 %v9173_v34, %v6829_v29  ;;  %v3947_v33 = vpop.f32.mrb[159].mxu1 }
0x105a   :  { %v3948_v18 = vadd.f32 %v9173_v34, %v3947_v33  ;;  %6886 = vmatprep.mubr.f32.mxu0 %v4004_v63 }
0x105b   :  { %6887 = vmatmul.mubr.f32.gmra.mrb[172].mxu0 %v4005_v2  ;;  %v4007_v44 = vmax.f32 %v3953_v54, 0.0 }
0x105c   :  { %v4006_v13 = vmax.f32 %v3948_v18, 0.0  ;;  %v6832_v35 = vpop.f32.mrb[160].mxu1 }
0x105d   :  { %v3963_v55 = vadd.f32 %v9173_v34, %v6832_v35  ;;  %v3957_v6 = vpop.f32.mrb[161].mxu1 }
0x105e   :  { %v3958_v24 = vadd.f32 %v9173_v34, %v3957_v6  ;;  %6889 = vmatprep.mubr.f32.mxu0 %v4006_v13 }
0x105f   :  { %6890 = vmatmul.mubr.f32.gmra.mrb[174].mxu0 %v4007_v44  ;;  %v4009_v42 = vmax.f32 %v3963_v55, 0.0 }
0x1060   :  { %v4008_v7 = vmax.f32 %v3958_v24, 0.0  ;;  %v6835_v39 = vpop.f32.mrb[162].mxu1 }
0x1061   :  { %v3973_v62 = vadd.f32 %v9173_v34, %v6835_v39  ;;  %v3967_v5 = vpop.f32.mrb[163].mxu1 }
0x1062   :  { %v3968_v37 = vadd.f32 %v9173_v34, %v3967_v5  ;;  %6892 = vmatprep.mubr.f32.mxu0 %v4008_v7 }
0x1063   :  { %6893 = vmatmul.mubr.f32.gmra.mrb[176].mxu0 %v4009_v42  ;;  %v4011_v21 = vmax.f32 %v3973_v62, 0.0 }
0x1064   :  { %v4010_v31 = vmax.f32 %v3968_v37, 0.0  ;;  %v6838_v36 = vpop.f32.mrb[164].mxu1 }
0x1065   :  { %v3983_v1 = vadd.f32 %v9173_v34, %v6838_v36  ;;  %v3977_v40 = vpop.f32.mrb[165].mxu1 }
0x1066   :  { %v3978_v11 = vadd.f32 %v9173_v34, %v3977_v40  ;;  %6895 = vmatprep.mubr.f32.mxu0 %v4010_v31 }
0x1067   :  { %6896 = vmatmul.mubr.f32.gmra.mrb[178].mxu0 %v4011_v21  ;;  %v4013_v61 = vmax.f32 %v3983_v1, 0.0 }
0x1068   :  { %v4012_v12 = vmax.f32 %v3978_v11, 0.0  ;;  %v6841_v41 = vpop.f32.mrb[166].mxu1 }
0x1069   :  { %v3993_v30 = vadd.f32 %v9173_v34, %v6841_v41  ;;  %v3987_v14 = vpop.f32.mrb[167].mxu1 }
0x106a   :  { %v3988_v16 = vadd.f32 %v9173_v34, %v3987_v14  ;;  %6898 = vmatprep.mubr.f32.mxu0 %v4012_v12 }
0x106b   :  { %6899 = vmatmul.mubr.f32.gmra.mrb[180].mxu0 %v4013_v61  ;;  %v4015_v19 = vmax.f32 %v3993_v30, 0.0 }
0x106c   :  { %v4014_v17 = vmax.f32 %v3988_v16, 0.0 }
0x106e   :  { %6901 = vmatprep.mubr.f32.mxu0 %v4014_v17 }
0x106f   :  { %6902 = vmatmul.mubr.f32.gmra.mrb[182].mxu0 %v4015_v19 }
0x111e   :  { %v6876_v20 = vpop.f32.mrb[164].mxu0 }
0x111f   :  { %v4088_v25 = vadd.f32 %v9482_v23, %v6876_v20  ;;  %v4082_v57 = vpop.f32.mrb[165].mxu0 }
0x1120   :  { %v4083_v26 = vadd.f32 %v9482_v23, %v4082_v57 }
0x1121   :  { %v4182_v15 = vmax.f32 %v4088_v25, 0.0 }
0x1122   :  { %v4181_v8 = vmax.f32 %v4083_v26, 0.0  ;;  %v6879_v34 = vpop.f32.mrb[166].mxu0 }
0x1123   :  { %v4098_v47 = vadd.f32 %v9482_v23, %v6879_v34  ;;  %v4092_v43 = vpop.f32.mrb[167].mxu0 }
0x1124   :  { %v7477_v45 = vpack.c.bf16 %v4182_v15, %v4181_v8  ;;  %v4093_v53 = vadd.f32 %v9482_v23, %v4092_v43 }
0x1125   :  { %v4184_v59 = vmax.f32 %v4098_v47, 0.0 }
0x1126   :  { %v4183_v56 = vmax.f32 %v4093_v53, 0.0  ;;  %v6882_v49 = vpop.f32.mrb[168].mxu0  ;;  %7478 = vmatpush1.bf16.msra.mxu1 %v7477_v45 }
0x1127   :  { %v4108_v32 = vadd.f32 %v9482_v23, %v6882_v49  ;;  %v4102_v48 = vpop.f32.mrb[169].mxu0  ;;  %7479 = vmatprep.subr.bf16.mxu1 %v9894_v46 }
0x1128   :  { %v7480_v3 = vpack.c.bf16 %v4184_v59, %v4183_v56  ;;  %v4103_v60 = vadd.f32 %v9482_v23, %v4102_v48 }
0x1129   :  { %v4186_v58 = vmax.f32 %v4108_v32, 0.0 }
0x112a   :  { %v4185_v52 = vmax.f32 %v4103_v60, 0.0  ;;  %v6885_v0 = vpop.f32.mrb[170].mxu0  ;;  %7481 = vmatpush1.bf16.msra.mxu1 %v7480_v3 }
0x112b   :  { %v4118_v50 = vadd.f32 %v9482_v23, %v6885_v0  ;;  %v4112_v38 = vpop.f32.mrb[171].mxu0  ;;  %7482 = vmatprep.subr.bf16.mxu1 %v9894_v46  ;;  %v5491_v0 = vld [vmem:[%s9965_s28 + $0x8] sm:$0xff]  }
0x112c   :  { %v7483_v63 = vpack.c.bf16 %v4186_v58, %v4185_v52  ;;  %v4113_v29 = vadd.f32 %v9482_v23, %v4112_v38 }
0x112d   :  { %v4188_v2 = vmax.f32 %v4118_v50, 0.0  ;;  %v5488_v50 = vld [vmem:[%s9966_s9 + $0x8] sm:$0xff]  }
0x112e   :  { %v4187_v54 = vmax.f32 %v4113_v29, 0.0  ;;  %v6888_v33 = vpop.f32.mrb[172].mxu0  ;;  %7484 = vmatpush1.bf16.msra.mxu1 %v7483_v63  ;;  %v5460_v29 = vunpack.c.l.bf16 %v5491_v0 }
0x112f   :  { %v4128_v18 = vadd.f32 %v9482_v23, %v6888_v33  ;;  %v4122_v13 = vpop.f32.mrb[173].mxu0  ;;  %7485 = vmatprep.subr.bf16.mxu1 %v9894_v46  ;;  %v5489_v33 = vld [vmem:[%s9966_s9 + $0x10] sm:$0xff]  }
0x1130   :  { %v7486_v35 = vpack.c.bf16 %v4188_v2, %v4187_v54  ;;  %v4123_v44 = vadd.f32 %v9482_v23, %v4122_v13  ;;  %v5444_v2 = vunpack.c.l.bf16 %v5488_v50  ;;  %v5492_v54 = vld [vmem:[%s9965_s28 + $0x10] sm:$0xff]   ;;  %v5445_v13 = vunpack.c.h.bf16 %v5488_v50  ;;  %v4757_v50 = vld [vmem:[%s9725_s17 + $0x28] sm:$0xff] }
0x1131   :  { %v4190_v55 = vmax.f32 %v4128_v18, 0.0  ;;  %v5461_v18 = vunpack.c.h.bf16 %v5491_v0  ;;  %v4756_v0 = vld [vmem:[%s9725_s17 + $0x20] sm:$0xff] }
0x1132   :  { %v4189_v6 = vmax.f32 %v4123_v44, 0.0  ;;  %v6891_v24 = vpop.f32.mrb[174].mxu0  ;;  %7487 = vmatpush1.bf16.msra.mxu1 %v7486_v35  ;;  %v5464_v35 = vunpack.c.l.bf16 %v5492_v54  ;;  %v5448_v44 = vunpack.c.l.bf16 %v5489_v33 }
0x1133   :  { %v4138_v7 = vadd.f32 %v9482_v23, %v6891_v24  ;;  %v4132_v39 = vpop.f32.mrb[175].mxu0  ;;  %7488 = vmatprep.subr.bf16.mxu1 %v9894_v46  ;;  %v5465_v24 = vunpack.c.h.bf16 %v5492_v54 }
0x1134   :  { %v7489_v42 = vpack.c.bf16 %v4190_v55, %v4189_v6  ;;  %v4133_v62 = vadd.f32 %v9482_v23, %v4132_v39  ;;  %v5493_v55 = vld [vmem:[%s9965_s28 + $0x18] sm:$0xff]  }
0x1135   :  { %v4192_v5 = vmax.f32 %v4138_v7, 0.0  ;;  %v5490_v6 = vld [vmem:[%s9966_s9 + $0x18] sm:$0xff]   ;;  %v5449_v7 = vunpack.c.h.bf16 %v5489_v33  ;;  %v5468_v39 = vunpack.c.l.bf16 %v5493_v55 }
0x1136   :  { %v4191_v37 = vmax.f32 %v4133_v62, 0.0  ;;  %v6894_v31 = vpop.f32.mrb[176].mxu0  ;;  %7490 = vmatpush1.bf16.msra.mxu1 %v7489_v42  ;;  %v5452_v42 = vunpack.c.l.bf16 %v5490_v6  ;;  %v5469_v62 = vunpack.c.h.bf16 %v5493_v55 }
0x1137   :  { %v4148_v36 = vadd.f32 %v9482_v23, %v6894_v31  ;;  %v4142_v21 = vpop.f32.mrb[177].mxu0  ;;  %7491 = vmatprep.subr.bf16.mxu1 %v9894_v46  ;;  %v4617_v31 = vld [vmem:[%s9723_s15 + $0x8] sm:$0xff] }
0x1138   :  { %v7492_v1 = vpack.c.bf16 %v4192_v5, %v4191_v37  ;;  %v4143_v40 = vadd.f32 %v9482_v23, %v4142_v21  ;;  %v5453_v5 = vunpack.c.h.bf16 %v5490_v6  ;;  %v4616_v37 = vld [vmem:[%s9723_s15] sm:$0xff] }
0x1139   :  { %v4194_v11 = vmax.f32 %v4148_v36, 0.0  ;;  %v4618_v36 = vld [vmem:[%s9723_s15 + $0x10] sm:$0xff]  ;;  %v7522_v21 = vpack.c.bf16 %v4617_v31, %v4616_v37 }
0x113a   :  { %v4193_v12 = vmax.f32 %v4143_v40, 0.0  ;;  %v6897_v41 = vpop.f32.mrb[178].mxu0  ;;  %7493 = vmatpush1.bf16.msra.mxu1 %v7492_v1  ;;  %v4619_v1 = vld [vmem:[%s9723_s15 + $0x18] sm:$0xff] }
0x113b   :  { %v4158_v61 = vadd.f32 %v9482_v23, %v6897_v41  ;;  %v4152_v30 = vpop.f32.mrb[179].mxu0  ;;  %7494 = vmatprep.subr.bf16.mxu1 %v9894_v46  ;;  %v7526_v40 = vpack.c.bf16 %v4619_v1, %v4618_v36 }
0x113c   :  { %v7495_v14 = vpack.c.bf16 %v4194_v11, %v4193_v12  ;;  %v4153_v16 = vadd.f32 %v9482_v23, %v4152_v30  ;;  %v4620_v11 = vld [vmem:[%s9723_s15 + $0x20] sm:$0xff]  ;;  %v4621_v12 = vld [vmem:[%s9723_s15 + $0x28] sm:$0xff]  ;;  %v4623_v30 = vld [vmem:[%s9723_s15 + $0x38] sm:$0xff] }
0x113d   :  { %v4196_v17 = vmax.f32 %v4158_v61, 0.0  ;;  %v7530_v41 = vpack.c.bf16 %v4621_v12, %v4620_v11  ;;  %v4622_v61 = vld [vmem:[%s9723_s15 + $0x30] sm:$0xff] }
0x113e   :  { %v4195_v19 = vmax.f32 %v4153_v16, 0.0  ;;  %v6900_v20 = vpop.f32.mrb[180].mxu0  ;;  %7496 = vmatpush1.bf16.msra.mxu1 %v7495_v14  ;;  %v7534_v14 = vpack.c.bf16 %v4623_v30, %v4622_v61  ;;  %v4624_v16 = vld [vmem:[%s9723_s15 + $0x40] sm:$0xff]  ;;  %v4758_v61 = vld [vmem:[%s9725_s17 + $0x30] sm:$0xff]  ;;  %v4759_v30 = vld [vmem:[%s9725_s17 + $0x38] sm:$0xff] }
0x113f   :  { %v4168_v25 = vadd.f32 %v9482_v23, %v6900_v20  ;;  %v4162_v57 = vpop.f32.mrb[181].mxu0  ;;  %7497 = vmatprep.subr.bf16.mxu1 %v9894_v46  ;;  %v4626_v20 = vld [vmem:[%s9723_s15 + $0x50] sm:$0xff] }
0x1140   :  { %v7498_v26 = vpack.c.bf16 %v4196_v17, %v4195_v19  ;;  %v4163_v15 = vadd.f32 %v9482_v23, %v4162_v57  ;;  %v4625_v17 = vld [vmem:[%s9723_s15 + $0x48] sm:$0xff] }
0x1141   :  { %v4198_v8 = vmax.f32 %v4168_v25, 0.0  ;;  %v7538_v19 = vpack.c.bf16 %v4625_v17, %v4624_v16  ;;  %v4627_v25 = vld [vmem:[%s9723_s15 + $0x58] sm:$0xff]  ;;  %v4904_v16 = vld [vmem:[%s9727_s19] sm:$0xff]  ;;  %v4905_v17 = vld [vmem:[%s9727_s19 + $0x8] sm:$0xff] }
0x1142   :  { %v4197_v34 = vmax.f32 %v4163_v15, 0.0  ;;  %v6903_v47 = vpop.f32.mrb[182].mxu0  ;;  %7499 = vmatpush1.bf16.msra.mxu1 %v7498_v26  ;;  %v7542_v57 = vpack.c.bf16 %v4627_v25, %v4626_v20  ;;  %v4628_v26 = vld [vmem:[%s9723_s15 + $0x60] sm:$0xff]  ;;  %v4629_v15 = vld [vmem:[%s9723_s15 + $0x68] sm:$0xff] }
0x1143   :  { %v4178_v43 = vadd.f32 %v9482_v23, %v6903_v47  ;;  %v4172_v45 = vpop.f32.mrb[183].mxu0  ;;  %7500 = vmatprep.subr.bf16.mxu1 %v9894_v46  ;;  %v4631_v47 = vld [vmem:[%s9723_s15 + $0x78] sm:$0xff]  ;;  %v5331_v20 = vld [vmem:[%s9724_s16] ss:$0 sm:$0xff] }
0x1144   :  { %v7501_v53 = vpack.c.bf16 %v4198_v8, %v4197_v34  ;;  %v4173_v59 = vadd.f32 %v9482_v23, %v4172_v45  ;;  %v7546_v8 = vpack.c.bf16 %v4629_v15, %v4628_v26  ;;  %v4630_v34 = vld [vmem:[%s9723_s15 + $0x70] sm:$0xff] }
0x1145   :  { %v4200_v56 = vmax.f32 %v4178_v43, 0.0  ;;  %v7550_v43 = vpack.c.bf16 %v4631_v47, %v4630_v34  ;;  %v4907_v34 = vld [vmem:[%s9727_s19 + $0x18] sm:$0xff] }
0x1146   :  { %v4199_v49 = vmax.f32 %v4173_v59, 0.0  ;;  %7502 = vmatpush1.bf16.msra.mxu1 %v7501_v53 }
0x1147   :  { %7503 = vmatprep.subr.bf16.mxu1 %v9894_v46  ;;  %v5455_v46 = vld [vmem:[%s9965_s28] sm:$0xff]  }
0x1148   :  { %v7504_v32 = vpack.c.bf16 %v4200_v56, %v4199_v49  ;;  %v5457_v38 = vunpack.c.h.bf16 %v5455_v46 }
0x114a   :  { %7505 = vmatpush1.bf16.msra.mxu1 %v7504_v32 }
0x114d   :  { %4266 = vmatmul.mubr.f32.vlgmr.msra.gmra.mrb[168].mxu1 %v8633_v27  ;;  %v5456_v27 = vunpack.c.l.bf16 %v5455_v46 }
0x114e   :  { %5312 = vmatprep.mubr.msk.f32.mxu1 %vm469_vm9, %v8636_v22  ;;  %v5439_v22 = vld [vmem:[%s9966_s9] sm:$0xff]  }
0x114f   :  { %v5441_v63 = vunpack.c.h.bf16 %v5439_v22 }
0x1151   :  { %4271 = vmatmul.mubr.f32.gmra.mrb[170].mxu1 %v8638_v28  ;;  %v5440_v28 = vunpack.c.l.bf16 %v5439_v22 }
0x1152   :  { %5313 = vmatprep.mubr.msk.f32.mxu1 %vm469_vm9, %v8641_v51 }
0x1153   :  { %6912 = vmatprep.mubr.msk.f32.mxu0 %vm469_vm9, %v5440_v28 }
0x1155   :  { %4276 = vmatmul.mubr.f32.gmra.mrb[172].mxu1 %v8645_v9 }
0x1156   :  { %5314 = vmatprep.mubr.msk.f32.mxu1 %vm469_vm9, %v8650_v10 }
0x1159   :  { %4281 = vmatmul.mubr.f32.gmra.mrb[174].mxu1 %v8653_v4 }
0x115a   :  { %6932 = vmatprep.mubr.msk.f32.mxu1 %vm469_vm9, %v5456_v27 }
0x1220   :  { %v4267_v51 = vpop.f32.mrb[168].mxu1 }
0x1221   :  { %v4269_v9 = vpop.f32.mrb[169].mxu1 }
0x1222   :  { %v4753_v9 = vld [vmem:[%s9725_s17 + $0x8] sm:$0xff] }
0x1224   :  { %v4272_v23 = vpop.f32.mrb[170].mxu1 }
0x1225   :  { %v7506_v10 = vpack.c.bf16 %v4272_v23, %v4267_v51  ;;  %v4274_v48 = vpop.f32.mrb[171].mxu1  ;;  %v4752_v51 = vld [vmem:[%s9725_s17] sm:$0xff]  ;;  %v4754_v23 = vld [vmem:[%s9725_s17 + $0x10] sm:$0xff] }
0x1227   :  { %7507 = vmatprep.subr.bf16.mxu0 %v7506_v10  ;;  %7515 = vmatprep.subr.bf16.mxu1 %v7506_v10 }
0x1228   :  { %v4277_v4 = vpop.f32.mrb[172].mxu1  ;;  %7509 = vmatpush3.bf16.msra.mxu0 %v7506_v10  ;;  %7517 = vmatpush3.bf16.msra.mxu1 %v7506_v10 }
0x1229   :  { %v4279_v3 = vpop.f32.mrb[173].mxu1 }
0x122a   :  { %v4755_v3 = vld [vmem:[%s9725_s17 + $0x18] sm:$0xff] }
0x122c   :  { %v4282_v60 = vpop.f32.mrb[174].mxu1 }
0x122d   :  { %v7510_v58 = vpack.c.bf16 %v4282_v60, %v4277_v4  ;;  %v4284_v52 = vpop.f32.mrb[175].mxu1  ;;  %v7554_v4 = vpack.c.bf16 %v4753_v9, %v4752_v51 }
0x122e   :  { %v7558_v52 = vpack.c.bf16 %v4755_v3, %v4754_v23 }
0x122f   :  { %7511 = vmatprep.subr.bf16.mxu0 %v7510_v58  ;;  %7519 = vmatprep.subr.bf16.mxu1 %v7510_v58 }
0x1230   :  { %7513 = vmatpush3.bf16.msra.mxu0 %v7510_v58  ;;  %7521 = vmatpush3.bf16.msra.mxu1 %v7510_v58 }
0x1231   :  { %7523 = vmatprep.subr.bf16.mxu0 %v7522_v21  ;;  %7555 = vmatprep.subr.bf16.mxu1 %v7554_v4 }
0x1233   :  { %6933 = vmatmul.mubr.msk.f32.vlgmr.msra.gmra.mrb[176].mxu1 %vm469_vm9, %v5457_v38  ;;  %6913 = vmatmul.mubr.msk.f32.vlgmr.msra.gmra.mrb[184].mxu0 %vm469_vm9, %v5441_v63 }
0x1234   :  { %6935 = vmatprep.mubr.msk.f32.mxu1 %vm469_vm9, %v5460_v29  ;;  %6915 = vmatprep.mubr.msk.f32.mxu0 %vm469_vm9, %v5444_v2  ;;  %v7562_v2 = vpack.c.bf16 %v4757_v50, %v4756_v0 }
0x1235   :  { %7525 = vmatpush3.bf16.msra.mxu0 %v7522_v21  ;;  %7557 = vmatpush3.bf16.msra.mxu1 %v7554_v4 }
0x1236   :  { %7527 = vmatprep.subr.bf16.mxu0 %v7526_v40  ;;  %7559 = vmatprep.subr.bf16.mxu1 %v7558_v52 }
0x1237   :  { %6936 = vmatmul.mubr.msk.f32.gmra.mrb[178].mxu1 %vm469_vm9, %v5461_v18  ;;  %6916 = vmatmul.mubr.msk.f32.gmra.mrb[186].mxu0 %vm469_vm9, %v5445_v13 }
0x1238   :  { %6938 = vmatprep.mubr.msk.f32.mxu1 %vm469_vm9, %v5464_v35  ;;  %6918 = vmatprep.mubr.msk.f32.mxu0 %vm469_vm9, %v5448_v44 }
0x1239   :  { %7529 = vmatpush3.bf16.msra.mxu0 %v7526_v40  ;;  %7561 = vmatpush3.bf16.msra.mxu1 %v7558_v52 }
0x123a   :  { %7531 = vmatprep.subr.bf16.mxu0 %v7530_v41  ;;  %7563 = vmatprep.subr.bf16.mxu1 %v7562_v2 }
0x123b   :  { %6939 = vmatmul.mubr.msk.f32.gmra.mrb[180].mxu1 %vm469_vm9, %v5465_v24  ;;  %6919 = vmatmul.mubr.msk.f32.gmra.mrb[188].mxu0 %vm469_vm9, %v5449_v7 }
0x123c   :  { %6941 = vmatprep.mubr.msk.f32.mxu1 %vm469_vm9, %v5468_v39  ;;  %6921 = vmatprep.mubr.msk.f32.mxu0 %vm469_vm9, %v5452_v42 }
0x123d   :  { %7533 = vmatpush3.bf16.msra.mxu0 %v7530_v41  ;;  %7565 = vmatpush3.bf16.msra.mxu1 %v7562_v2  ;;  %v5332_v2 = vld [vmem:[%s9726_s18] ss:$0 sm:$0xff] }
0x123e   :  { %7535 = vmatprep.subr.bf16.mxu0 %v7534_v14 }
0x123f   :  { %6942 = vmatmul.mubr.msk.f32.gmra.mrb[182].mxu1 %vm469_vm9, %v5469_v62  ;;  %6922 = vmatmul.mubr.msk.f32.gmra.mrb[190].mxu0 %vm469_vm9, %v5453_v5 }
0x1241   :  { %7537 = vmatpush3.bf16.msra.mxu0 %v7534_v14  ;;  %v7566_v14 = vpack.c.bf16 %v4759_v30, %v4758_v61  ;;  %v5341_v30 = vld [vmem:[%s9728_s20] ss:$0 sm:$0xff]  ;;  %s7887_s20 = smov [#allocation2]  }
0x1242   :  { %7539 = vmatprep.subr.bf16.mxu0 %v7538_v19  ;;  %s5109_s10 = sshll.u32 %s7887_s20, 4  ;;  %s5110_s10 = int_to_ptr.vmem [resolvable:$true] %s5109_s10 }
0x1243   :  { %7567 = vmatprep.subr.bf16.mxu1 %v7566_v14  ;;  %s7860_s22 = scalar_lea.vmem %s5110_s10, 1024  ;;  %p7865_p1 = scmp.lt.s32.totalorder %s5110_s10, %s5110_s10 }
0x1244   :  { %7569 = vmatpush3.bf16.msra.mxu1 %v7566_v14  ;;  %p7861_p0 = scmp.ne.s32.totalorder %s5110_s10, %s7860_s22  ;;  %p7866_p2 = scmp.lt.s32.totalorder %s7860_s22, %s7860_s22 }
0x1245   :  { %7541 = vmatpush3.bf16.msra.mxu0 %v7538_v19  ;;  %v7570_v19 = vpack.c.bf16 %v4905_v17, %v4904_v16 }
0x1246   :  { %7543 = vmatprep.subr.bf16.mxu0 %v7542_v57  ;;  %p7867_p3 = por %p7866_p2, %p7865_p1 }
0x1247   :  { %7571 = vmatprep.subr.bf16.mxu1 %v7570_v19 }
0x1248   :  { %p7868_p4 = pnand %p7867_p3, %p7861_p0 }
0x1249   :  { %7545 = vmatpush3.bf16.msra.mxu0 %v7542_v57 }
0x124a   :  { %7547 = vmatprep.subr.bf16.mxu0 %v7546_v8 }
0x124d   :  { %7549 = vmatpush3.bf16.msra.mxu0 %v7546_v8  ;;  %v4906_v8 = vld [vmem:[%s9727_s19 + $0x10] sm:$0xff] }
0x124e   :  { %7551 = vmatprep.subr.bf16.mxu0 %v7550_v43 }
0x1251   :  { %7553 = vmatpush3.bf16.msra.mxu0 %v7550_v43 }
0x1306   :  { %v6934_v45 = vpop.f32.mrb[176].mxu1  ;;  %v6914_v53 = vpop.f32.mrb[184].mxu0 }
0x1307   :  { %v4537_v59 = vpop.f32.mrb[177].mxu1  ;;  %v4408_v56 = vpop.f32.mrb[185].mxu0 }
0x1308   :  { %v7797_v49 = vpack.i.bf16 %v6934_v45, %v4537_v59 }
0x130a   :  { %7798 = vrot.lane.b32.xlu0 %v7797_v49, %s7885_s11  ;;  %v6937_v32 = vpop.f32.mrb[178].mxu1  ;;  %v6917_v46 = vpop.f32.mrb[186].mxu0 }
0x130b   :  { %v4547_v27 = vpop.f32.mrb[179].mxu1  ;;  %v4418_v22 = vpop.f32.mrb[187].mxu0 }
0x130c   :  { %v7802_v28 = vpack.i.bf16 %v6937_v32, %v4547_v27  ;;  %v4908_v32 = vld [vmem:[%s9727_s19 + $0x20] sm:$0xff] }
0x130e   :  { %7803 = vrot.lane.b32.xlu1 %v7802_v28, %s7885_s11  ;;  %v6940_v10 = vpop.f32.mrb[180].mxu1  ;;  %v6920_v48 = vpop.f32.mrb[188].mxu0 }
0x130f   :  { %v4557_v60 = vpop.f32.mrb[181].mxu1  ;;  %v4428_v58 = vpop.f32.mrb[189].mxu0 }
0x1310   :  { %v7807_v38 = vpack.i.bf16 %v6940_v10, %v4557_v60 }
0x1312   :  { %7808 = vrot.lane.b32.xlu0 %v7807_v38, %s7885_s11  ;;  %v6943_v63 = vpop.f32.mrb[182].mxu1  ;;  %v6923_v29 = vpop.f32.mrb[190].mxu0  ;;  %v4910_v38 = vld [vmem:[%s9727_s19 + $0x30] sm:$0xff] }
0x1313   :  { %v4567_v54 = vpop.f32.mrb[183].mxu1  ;;  %v4438_v33 = vpop.f32.mrb[191].mxu0 }
0x1314   :  { %v7812_v18 = vpack.i.bf16 %v6943_v63, %v4567_v54  ;;  %v4911_v63 = vld [vmem:[%s9727_s19 + $0x38] sm:$0xff] }
0x1316   :  { %7813 = vrot.lane.b32.xlu1 %v7812_v18, %s7885_s11 }
0x137c   :  { %v7799_v13 = vpop.permute.xlu0 %7798 }
0x137d   :  { %v7801_v35 = vunpack.i.h.bf16 %v7799_v13  ;;  %v7800_v44 = vunpack.i.l.bf16 %v7799_v13 }
0x137f   :  { %v4609_v55 = vsel %vm241_vm4, %v6914_v53, %v7801_v35  ;;  %v4608_v6 = vsel %vm241_vm4, %v4408_v56, %v7800_v44  ;;  %v7574_v56 = vpack.c.bf16 %v4907_v34, %v4906_v8 }
0x1380   :  { %6976 = vmatprep.mubr.f32.mxu0 %v4608_v6  ;;  %v7804_v24 = vpop.permute.xlu1 %7803 }
0x1381   :  { %v7806_v7 = vunpack.i.h.bf16 %v7804_v24  ;;  %v7805_v39 = vunpack.i.l.bf16 %v7804_v24  ;;  %6977 = vmatmul.mubr.f32.vlgmr.msra.gmra.mrb[192].mxu0 %v4609_v55 }
0x1383   :  { %v4610_v42 = vsel %vm241_vm4, %v4418_v22, %v7805_v39  ;;  %v4611_v62 = vsel %vm241_vm4, %v6917_v46, %v7806_v7  ;;  %v4909_v46 = vld [vmem:[%s9727_s19 + $0x28] sm:$0xff] }
0x1384   :  { %6979 = vmatprep.mubr.f32.mxu0 %v4610_v42  ;;  %v7809_v5 = vpop.permute.xlu0 %7808  ;;  %v7578_v23 = vpack.c.bf16 %v4909_v46, %v4908_v32 }
0x1385   :  { %v7811_v37 = vunpack.i.h.bf16 %v7809_v5  ;;  %v7810_v31 = vunpack.i.l.bf16 %v7809_v5  ;;  %6980 = vmatmul.mubr.f32.gmra.mrb[194].mxu0 %v4611_v62 }
0x1387   :  { %v4612_v36 = vsel %vm241_vm4, %v4428_v58, %v7810_v31  ;;  %v4613_v21 = vsel %vm241_vm4, %v6920_v48, %v7811_v37 }
0x1388   :  { %6982 = vmatprep.mubr.f32.mxu0 %v4612_v36  ;;  %v7814_v1 = vpop.permute.xlu1 %7813 }
0x1389   :  { %v7816_v40 = vunpack.i.h.bf16 %v7814_v1  ;;  %v7815_v11 = vunpack.i.l.bf16 %v7814_v1  ;;  %6983 = vmatmul.mubr.f32.gmra.mrb[196].mxu0 %v4613_v21 }
0x138b   :  { %v4614_v12 = vsel %vm241_vm4, %v4438_v33, %v7815_v11  ;;  %v4615_v41 = vsel %vm241_vm4, %v6923_v29, %v7816_v40  ;;  %v7582_v29 = vpack.c.bf16 %v4911_v63, %v4910_v38 }
0x138c   :  { %6985 = vmatprep.mubr.f32.mxu0 %v4614_v12 }
0x138d   :  { %6986 = vmatmul.mubr.f32.gmra.mrb[198].mxu0 %v4615_v41 }
0x1454   :  { %v6978_v25 = vpop.f32.mrb[192].mxu0 }
0x1455   :  { %v4711_v57 = vadd.f32 %v6978_v25, %v5331_v20  ;;  %v4705_v26 = vpop.f32.mrb[193].mxu0 }
0x1456   :  { %v4706_v15 = vadd.f32 %v5331_v20, %v4705_v26 }
0x1457   :  { %v4745_v45 = vmax.f32 %v4711_v57, 0.0 }
0x1458   :  { %v4744_v47 = vmax.f32 %v4706_v15, 0.0  ;;  %v6981_v43 = vpop.f32.mrb[194].mxu0 }
0x1459   :  { %v4721_v53 = vadd.f32 %v6981_v43, %v5331_v20  ;;  %v4715_v59 = vpop.f32.mrb[195].mxu0 }
0x145a   :  { %v4716_v49 = vadd.f32 %v5331_v20, %v4715_v59  ;;  %7004 = vmatprep.mubr.msk.f32.mxu1 %vm241_vm4, %v4744_v47 }
0x145b   :  { %7005 = vmatmul.mubr.msk.f32.vlgmr.msra.gmra.mrb[184].mxu1 %vm241_vm4, %v4745_v45  ;;  %v4747_v28 = vmax.f32 %v4721_v53, 0.0 }
0x145c   :  { %v4746_v27 = vmax.f32 %v4716_v49, 0.0  ;;  %v6984_v22 = vpop.f32.mrb[196].mxu0  ;;  %7573 = vmatpush3.bf16.msra.mxu1 %v7570_v19 }
0x145d   :  { %v4731_v51 = vadd.f32 %v6984_v22, %v5331_v20  ;;  %v4725_v9 = vpop.f32.mrb[197].mxu0  ;;  %7575 = vmatprep.subr.bf16.mxu1 %v7574_v56 }
0x145e   :  { %v4726_v10 = vadd.f32 %v5331_v20, %v4725_v9  ;;  %7007 = vmatprep.mubr.msk.f32.mxu1 %vm241_vm4, %v4746_v27 }
0x145f   :  { %7008 = vmatmul.mubr.msk.f32.gmra.mrb[186].mxu1 %vm241_vm4, %v4747_v28  ;;  %v4749_v3 = vmax.f32 %v4731_v51, 0.0 }
0x1460   :  { %v4748_v48 = vmax.f32 %v4726_v10, 0.0  ;;  %v6987_v4 = vpop.f32.mrb[198].mxu0  ;;  %7577 = vmatpush3.bf16.msra.mxu1 %v7574_v56 }
0x1461   :  { %v4741_v60 = vadd.f32 %v6987_v4, %v5331_v20  ;;  %v4735_v58 = vpop.f32.mrb[199].mxu0  ;;  %7579 = vmatprep.subr.bf16.mxu1 %v7578_v23 }
0x1462   :  { %v4736_v52 = vadd.f32 %v5331_v20, %v4735_v58  ;;  %7010 = vmatprep.mubr.msk.f32.mxu1 %vm241_vm4, %v4748_v48 }
0x1463   :  { %7011 = vmatmul.mubr.msk.f32.gmra.mrb[188].mxu1 %vm241_vm4, %v4749_v3  ;;  %v4751_v50 = vmax.f32 %v4741_v60, 0.0 }
0x1464   :  { %v4750_v0 = vmax.f32 %v4736_v52, 0.0  ;;  %7581 = vmatpush3.bf16.msra.mxu1 %v7578_v23 }
0x1465   :  { %7583 = vmatprep.subr.bf16.mxu1 %v7582_v29 }
0x1466   :  { %7013 = vmatprep.mubr.msk.f32.mxu1 %vm241_vm4, %v4750_v0 }
0x1467   :  { %7014 = vmatmul.mubr.msk.f32.gmra.mrb[190].mxu1 %vm241_vm4, %v4751_v50 }
0x1468   :  { %7585 = vmatpush3.bf16.msra.mxu1 %v7582_v29 }
0x152e   :  { %v7006_v54 = vpop.f32.mrb[184].mxu1 }
0x152f   :  { %v4863_v33 = vadd.f32 %v7006_v54, %v5332_v2  ;;  %v4857_v18 = vpop.f32.mrb[185].mxu1 }
0x1530   :  { %v4858_v13 = vadd.f32 %v5332_v2, %v4857_v18 }
0x1531   :  { %v4897_v55 = vmax.f32 %v4863_v33, 0.0 }
0x1532   :  { %v4896_v35 = vmax.f32 %v4858_v13, 0.0  ;;  %v7009_v44 = vpop.f32.mrb[186].mxu1 }
0x1533   :  { %v4873_v6 = vadd.f32 %v7009_v44, %v5332_v2  ;;  %v4867_v24 = vpop.f32.mrb[187].mxu1 }
0x1534   :  { %v4868_v7 = vadd.f32 %v5332_v2, %v4867_v24  ;;  %7032 = vmatprep.mubr.msk.f32.mxu1 %vm241_vm4, %v4896_v35 }
0x1535   :  { %7033 = vmatmul.mubr.msk.f32.vlgmr.msra.gmra.mrb[192].mxu1 %vm241_vm4, %v4897_v55  ;;  %v4899_v62 = vmax.f32 %v4873_v6, 0.0 }
0x1536   :  { %v4898_v39 = vmax.f32 %v4868_v7, 0.0  ;;  %v7012_v42 = vpop.f32.mrb[188].mxu1 }
0x1537   :  { %v4883_v5 = vadd.f32 %v7012_v42, %v5332_v2  ;;  %v4877_v37 = vpop.f32.mrb[189].mxu1 }
0x1538   :  { %v4878_v31 = vadd.f32 %v5332_v2, %v4877_v37  ;;  %7035 = vmatprep.mubr.msk.f32.mxu1 %vm241_vm4, %v4898_v39 }
0x1539   :  { %7036 = vmatmul.mubr.msk.f32.gmra.mrb[194].mxu1 %vm241_vm4, %v4899_v62  ;;  %v4901_v1 = vmax.f32 %v4883_v5, 0.0 }
0x153a   :  { %v4900_v36 = vmax.f32 %v4878_v31, 0.0  ;;  %v7015_v21 = vpop.f32.mrb[190].mxu1 }
0x153b   :  { %v4893_v40 = vadd.f32 %v7015_v21, %v5332_v2  ;;  %v4887_v11 = vpop.f32.mrb[191].mxu1 }
0x153c   :  { %v4888_v12 = vadd.f32 %v5332_v2, %v4887_v11  ;;  %7038 = vmatprep.mubr.msk.f32.mxu1 %vm241_vm4, %v4900_v36 }
0x153d   :  { %7039 = vmatmul.mubr.msk.f32.gmra.mrb[196].mxu1 %vm241_vm4, %v4901_v1  ;;  %v4903_v61 = vmax.f32 %v4893_v40, 0.0 }
0x153e   :  { %v4902_v41 = vmax.f32 %v4888_v12, 0.0 }
0x1540   :  { %7041 = vmatprep.mubr.msk.f32.mxu1 %vm241_vm4, %v4902_v41 }
0x1541   :  { %7042 = vmatmul.mubr.msk.f32.gmra.mrb[198].mxu1 %vm241_vm4, %v4903_v61 }
0x1608   :  { %v7034_v14 = vpop.f32.mrb[192].mxu1 }
0x1609   :  { %v5015_v16 = vadd.f32 %v7034_v14, %v5341_v30  ;;  %v5009_v17 = vpop.f32.mrb[193].mxu1 }
0x160a   :  { %v5010_v19 = vadd.f32 %v5341_v30, %v5009_v17 }
0x160b   :  { %v5351_v20 = vmul.f32 -1.442695, %v5015_v16 }
0x160c   :  { %v5350_v25 = vmul.f32 -1.442695, %v5010_v19  ;;  %v7037_v57 = vpop.f32.mrb[194].mxu1 }
0x160d   :  { %7825 = vpow2.f32 %v5351_v20  ;;  %v5025_v26 = vadd.f32 %v7037_v57, %v5341_v30  ;;  %v5019_v15 = vpop.f32.mrb[195].mxu1 }
0x160e   :  { %7827 = vpow2.f32 %v5350_v25  ;;  %v5020_v8 = vadd.f32 %v5341_v30, %v5019_v15 }
0x160f   :  { %v5353_v34 = vmul.f32 -1.442695, %v5025_v26 }
0x1610   :  { %v5352_v47 = vmul.f32 -1.442695, %v5020_v8  ;;  %v7040_v43 = vpop.f32.mrb[196].mxu1 }
0x1611   :  { %7829 = vpow2.f32 %v5353_v34  ;;  %v5035_v45 = vadd.f32 %v7040_v43, %v5341_v30  ;;  %v5029_v53 = vpop.f32.mrb[197].mxu1 }
0x1612   :  { %7831 = vpow2.f32 %v5352_v47  ;;  %v5030_v59 = vadd.f32 %v5341_v30, %v5029_v53 }
0x1613   :  { %v5355_v56 = vmul.f32 -1.442695, %v5035_v45 }
0x1614   :  { %v5354_v49 = vmul.f32 -1.442695, %v5030_v59  ;;  %v7043_v32 = vpop.f32.mrb[198].mxu1 }
0x1615   :  { %7833 = vpow2.f32 %v5355_v56  ;;  %v5045_v46 = vadd.f32 %v7043_v32, %v5341_v30  ;;  %v5039_v27 = vpop.f32.mrb[199].mxu1 }
0x1616   :  { %7835 = vpow2.f32 %v5354_v49  ;;  %v5040_v22 = vadd.f32 %v5341_v30, %v5039_v27 }
0x1617   :  { %v7826_v28 = vpop.eup %7825  ;;  %v5357_v51 = vmul.f32 -1.442695, %v5045_v46 }
0x1618   :  { %v7828_v9 = vpop.eup %7827  ;;  %v5073_v23 = vadd.f32 1.0, %v7826_v28  ;;  %v5356_v10 = vmul.f32 -1.442695, %v5040_v22 }
0x1619   :  { %v5072_v48 = vadd.f32 1.0, %v7828_v9  ;;  %7837 = vpow2.f32 %v5357_v51 }
0x161a   :  { %7839 = vrcp.f32 %v5073_v23 }
0x161b   :  { %v7830_v4 = vpop.eup %7829  ;;  %7841 = vrcp.f32 %v5072_v48 }
0x161c   :  { %v7832_v3 = vpop.eup %7831  ;;  %v5075_v60 = vadd.f32 1.0, %v7830_v4  ;;  %7843 = vpow2.f32 %v5356_v10 }
0x161d   :  { %v5074_v58 = vadd.f32 1.0, %v7832_v3 }
0x161e   :  { %7845 = vrcp.f32 %v5075_v60 }
0x161f   :  { %v7834_v52 = vpop.eup %7833  ;;  %7847 = vrcp.f32 %v5074_v58 }
0x1620   :  { %v7836_v0 = vpop.eup %7835  ;;  %v5077_v50 = vadd.f32 1.0, %v7834_v52 }
0x1621   :  { %v5076_v38 = vadd.f32 1.0, %v7836_v0 }
0x1622   :  { %7849 = vrcp.f32 %v5077_v50 }
0x1623   :  { %v7838_v63 = vpop.eup %7837  ;;  %7851 = vrcp.f32 %v5076_v38 }
0x1624   :  { %v7840_v29 = vpop.eup %7839  ;;  %v5079_v2 = vadd.f32 1.0, %v7838_v63 }
0x1625   :  { %v7842_v54 = vpop.eup %7841  ;;  %5097 = vst [vmem:[#allocation2 + $0x8] sm:$0xff] %v7840_v29 }
0x1626   :  { %v7844_v33 = vpop.eup %7843  ;;  %5096 = vst [vmem:[#allocation2] sm:$0xff] %v7842_v54  ;;  %7853 = vrcp.f32 %v5079_v2 }
0x1627   :  { %v5078_v18 = vadd.f32 1.0, %v7844_v33 }
0x1628   :  { %v7846_v13 = vpop.eup %7845 }
0x1629   :  { %v7848_v35 = vpop.eup %7847  ;;  %5099 = vst [vmem:[#allocation2 + $0x18] sm:$0xff] %v7846_v13  ;;  %7855 = vrcp.f32 %v5078_v18 }
0x162a   :  { %5098 = vst [vmem:[#allocation2 + $0x10] sm:$0xff] %v7848_v35 }
0x162c   :  { %v7850_v44 = vpop.eup %7849 }
0x162d   :  { %v7852_v55 = vpop.eup %7851  ;;  %5101 = vst [vmem:[#allocation2 + $0x28] sm:$0xff] %v7850_v44 }
0x162e   :  { %5100 = vst [vmem:[#allocation2 + $0x20] sm:$0xff] %v7852_v55 }
0x1630   :  { %v7854_v6 = vpop.eup %7853 }
0x1631   :  { %5103 = vst [vmem:[#allocation2 + $0x38] sm:$0xff] %v7854_v6 }
0x1633   :  { %v7856_v24 = vpop.eup %7855 }
0x1634   :  { %5102 = vst [vmem:[#allocation2 + $0x30] sm:$0xff] %v7856_v24 }
0x1635   :  { %7871 = shalt.err (!%p7868_p4)
}
0x1636   :  { %s7872_s13 = scalar_lea.hbm %s9729_s21, 1024 }
0x1637   :  { %p7873_p5 = scmp.ne.s32.totalorder %s9729_s21, %s7872_s13  ;;  %p7876_p6 = scmp.lt.u32.totalorder %s7872_s13, %s9729_s21 }
0x1639   :  { %p7878_p7 = pnand %p7876_p6, %p7873_p5 }
0x163b   :  { %7881 = shalt.err (!%p7878_p7)
}
0x163c   :  { %s7888_s26 = smov 128   ;;  %s7889_s12 = smov 8  }
0x163d   :  { %5115 = dma.vmem_to_hbm [thread:$0]  %s5110_s10, 1024, %s9729_s21, [#allocation3], %s7888_s26, %s7888_s26, %s7889_s12  }
0x163e   :  { %7882 = dma.done.wait [#allocation3], 1024  }
0x163f   :  { %7883 = vsyncadd [#allocation3], 4294966272 }
0x1640   :  { %5119 = vsyncpa [#allocation3], 1 }

</bundles_post_ra>
